<compile_context>
chip_gen: v6e
topology: v6e:2x2x1
jax: 0.10.0
libtpu: 0.0.40
codegen_flags: <defaults>
</compile_context>

<pallas_src>
import numpy as np
import jax
import jax.numpy as jnp
from jax.experimental import pallas as pl
from jax.experimental.pallas import tpu as pltpu

# -------- small hyperparameters consistent with the CRNNAttn forward --------
N_MELS = 16          # n_mels (divisible by 4)
BASE_CHANNELS = 4    # base_channels C0
CNN_K = 3
LSTM_HIDDEN = 32     # lstm_hidden H
HEADS = 4
N_CLASSES = 32
BATCH = 2
T_FRAMES = 16        # input time frames
EPS = 1e-5

T_P = T_FRAMES // 4                      # time frames after two 2x2 pools (= 4)
M_P = N_MELS // 4                        # mel bins after two 2x2 pools (= 4)
C3 = BASE_CHANNELS * 4                   # channels after conv3 (= 16)
FEAT = C3 * M_P                          # LSTM per-frame input dim (= flat_dim = 64)
D2 = 2 * LSTM_HIDDEN                     # bidirectional feature dim (= 64)

_VMEM = pl.BlockSpec(memory_space=pltpu.MemorySpace.VMEM)


# ------------------------------ the fused kernel ----------------------------
def _crnn_attn_kernel(x_ref,
                      m1_ref, cb1_ref, m2_ref, cb2_ref, m3_ref, cb3_ref,
                      wih0_ref, whh0_ref, b0_ref,
                      wih1_ref, whh1_ref, b1_ref,
                      lng_ref, lnb_ref, ab_ref, fcw_ref, fcb_ref,
                      o_ref,
                      zbt_ref, h0_ref, h1_ref):
    f32 = jnp.float32
    bf16 = jnp.bfloat16
    B, H, T = BATCH, LSTM_HIDDEN, T_P
    H4, H8 = 4 * H, 8 * H
    NC = N_CLASSES

    def dot(a, b):
        # Default MXU precision (bf16 passes) — matches the bf16 conv operands.
        return jnp.dot(a, b, preferred_element_type=f32)

    def pool4(v):
        # 2x2 max-pool == max over the 4 pre-arranged (dy, dx) column groups.
        q = v.shape[1] // 4
        return jnp.maximum(jnp.maximum(v[:, 0:q], v[:, q:2 * q]),
                           jnp.maximum(v[:, 2 * q:3 * q], v[:, 3 * q:4 * q]))

    # ---------------- CNN: conv(+folded BN)+ReLU as one bf16 matmul per stage ----------
    z = jnp.maximum(dot(x_ref[...].astype(bf16), m1_ref[...]) + cb1_ref[...], 0.0)
    z = pool4(z)
    z = jnp.maximum(dot(z.astype(bf16), m2_ref[...]) + cb2_ref[...], 0.0)
    z = pool4(z)
    z = jnp.maximum(dot(z.astype(bf16), m3_ref[...]) + cb3_ref[...], 0.0)
    # z: (B, T_P * FEAT); per-frame columns (c, m) == torch permute(0,2,1,3).view(B,T,C*M)
    # nn.Dropout after the CNN: identity at inference.

    # ---------------- restack to (T*B, FEAT) on sublanes, (t, b)-major -----------------
    for t in range(T):
        zbt_ref[2 * t:2 * t + B, :] = z[:, t * FEAT:(t + 1) * FEAT]

    def cell(g, c):
        # PyTorch gate order: i, f, g, o
        i = jax.nn.sigmoid(g[:, 0:H])
        f = jax.nn.sigmoid(g[:, H:2 * H])
        gg = jnp.tanh(g[:, 2 * H:3 * H])
        o = jax.nn.sigmoid(g[:, 3 * H:4 * H])
        c = f * c + i * gg
        return o * jnp.tanh(c), c

    def bilstm(x_tb, wih_ref_, whh_ref_, b_ref_, out_ref_):
        # (1) hoisted input projection: ONE matmul for all T steps and BOTH directions.
        #     gx row (2t+b): lanes [0:4H) fwd gates at time t, [4H:8H) bwd gates at time t.
        gx = dot(x_tb, wih_ref_[...]) + b_ref_[...]              # (T*B, 8H)
        # (2) serial recurrence: one block-diagonal matmul per step for both directions.
        whh = whh_ref_[...]                                      # (2H, 8H) block-diagonal
        cf = jnp.zeros((B, H), f32)
        cb = jnp.zeros((B, H), f32)
        hcat = jnp.zeros((B, 2 * H), f32)                        # [hf | hb] on lanes
        for s in range(T):
            rF, rB = 2 * s, 2 * (T - 1 - s)
            if s == 0:                                           # h == 0: skip the matmul
                gf = gx[rF:rF + B, 0:H4]
                gb = gx[rB:rB + B, H4:H8]
            else:
                gh = dot(hcat, whh)                              # (B, 8H), both directions
                gf = gh[:, 0:H4] + gx[rF:rF + B, 0:H4]
                gb = gh[:, H4:H8] + gx[rB:rB + B, H4:H8]
            hf, cf = cell(gf, cf)
            hb, cb = cell(gb, cb)
            hcat = jnp.concatenate([hf, hb], axis=1)             # (B, 2H)
            out_ref_[rF:rF + B, 0:H] = hf                        # fwd output at time s
            out_ref_[rB:rB + B, H:2 * H] = hb                    # bwd output at time T-1-s

    bilstm(zbt_ref[...], wih0_ref, whh0_ref, b0_ref, h0_ref)     # layer 0 (bidirectional)
    bilstm(h0_ref[...], wih1_ref, whh1_ref, b1_ref, h1_ref)      # layer 1 (dropout = id)

    # --------------- tail on ONE (T*B, 2H) = (8, 64) tile: LN + fused attn/avg/FC ------
    h = h1_ref[...]                                              # (8, 64), rows (t, b)
    mean = jnp.sum(h, axis=-1, keepdims=True) * (1.0 / D2)
    xc = h - mean
    var = jnp.sum(xc * xc, axis=-1, keepdims=True) * (1.0 / D2)  # biased, like torch LN
    hn = xc * jax.lax.rsqrt(var + EPS) * lng_ref[...] + lnb_ref[...]

    # P columns: [head0 | head1 | head2 | head3 | avg (1/T folded) | attention logits]
    P = dot(hn, fcw_ref[...])                                    # (8, 5*NC + HEADS)
    logit = P[:, 5 * NC:5 * NC + HEADS] + ab_ref[...]            # (8, HEADS), rows (t, b)

    # softmax over time (time lives on sublanes with stride B)
    m = logit[0:B]
    for t in range(1, T):
        m = jnp.maximum(m, logit[2 * t:2 * t + B])
    e = jnp.exp(logit - jnp.concatenate([m] * T, axis=0))
    den = e[0:B]
    for t in range(1, T):
        den = den + e[2 * t:2 * t + B]
    w = e / jnp.concatenate([den] * T, axis=0)                   # (8, HEADS)

    # per-row fused head contexts + avg term, then reduce over the time rows
    ctx = P[:, 4 * NC:5 * NC]                                    # avg block (1/T pre-folded)
    for k in range(HEADS):
        ctx = ctx + w[:, k:k + 1] * P[:, k * NC:(k + 1) * NC]
    out = ctx[0:B]
    for t in range(1, T):
        out = out + ctx[2 * t:2 * t + B]                         # (B, NC), rows = batch
    o_ref[...] = (out + fcb_ref[...]).astype(o_ref.dtype)


# -------------------- init-time parameter folding / packing (runs once) -----------------
def _fold_bn(conv):
    w = np.asarray(conv["w"], np.float32)
    b = np.asarray(conv["b"], np.float32)
    scale = np.asarray(conv["gamma"], np.float32) / np.sqrt(
        np.asarray(conv["var"], np.float32) + EPS)
    w_f = w * scale[:, None, None, None]
    b_f = (b - np.asarray(conv["mean"], np.float32)) * scale \
        + np.asarray(conv["beta"], np.float32)
    return w_f, b_f


def _conv_matrix_pooled(w, H, W):
    """Conv2d(3x3, pad=1) as a (H*W*Cin, 4*(H/2)*(W/2)*Cout) matrix.

    Input columns ordered (h, w, c); output columns (dy, dx, h2, w2, cout) so that the
    2x2 max-pool is a max over the 4 leading column groups and the pooled layout
    (h2, w2, cout) directly matches the next stage's input columns."""
    Cout, Cin, _, _ = w.shape
    H2, W2 = H // 2, W // 2
    grp = H2 * W2 * Cout
    M = np.zeros((H * W * Cin, 4 * grp), np.float32)
    for dy in range(2):
        for dx in range(2):
            for h2 in range(H2):
                for w2 in range(W2):
                    ho, wo = 2 * h2 + dy, 2 * w2 + dx
                    c0 = (dy * 2 + dx) * grp + (h2 * W2 + w2) * Cout
                    for ky in range(3):
                        hi = ho + ky - 1
                        if hi < 0 or hi >= H:
                            continue
                        for kx in range(3):
                            wi = wo + kx - 1
                            if wi < 0 or wi >= W:
                                continue
                            r0 = (hi * W + wi) * Cin
                            M[r0:r0 + Cin, c0:c0 + Cout] += w[:, :, ky, kx].T
    return M


def _conv_matrix_last(w, H, W):
    """Final conv (no pool): output columns ordered (h, cout, w) so each time step's
    feature block equals torch's permute(0, 2, 1, 3).view(B, T, C*M) layout."""
    Cout, Cin, _, _ = w.shape
    M = np.zeros((H * W * Cin, H * Cout * W), np.float32)
    for h in range(H):
        for wo in range(W):
            c0 = h * Cout * W + wo
            for ky in range(3):
                hi = h + ky - 1
                if hi < 0 or hi >= H:
                    continue
                for kx in range(3):
                    wi = wo + kx - 1
                    if wi < 0 or wi >= W:
                        continue
                    r0 = (hi * W + wi) * Cin
                    M[r0:r0 + Cin, c0:c0 + Cout * W:W] += w[:, :, ky, kx].T
    return M


def _bias_pooled(b, H2, W2):
    grp = np.tile(b[None, :], (H2 * W2, 1)).reshape(-1)
    return np.tile(grp, 4)[None, :].astype(np.float32)


def _bias_last(b, H, W):
    return np.tile(np.repeat(b, W), H)[None, :].astype(np.float32)


def pack_params(p):
    """Fold BN, lower convs to pool-grouped Toeplitz matmul operands (bf16), build the
    direction-fused LSTM operands and the fused tail projection — all ONCE at init."""
    H = LSTM_HIDDEN
    w1, b1c = _fold_bn(p["conv1"])
    w2, b2c = _fold_bn(p["conv2"])
    w3, b3c = _fold_bn(p["conv3"])
    m1 = _conv_matrix_pooled(w1, T_FRAMES, N_MELS)
    m2 = _conv_matrix_pooled(w2, T_FRAMES // 2, N_MELS // 2)
    m3 = _conv_matrix_last(w3, T_P, M_P)
    cb1 = _bias_pooled(b1c, T_FRAMES // 2, N_MELS // 2)
    cb2 = _bias_pooled(b2c, T_FRAMES // 4, N_MELS // 4)
    cb3 = _bias_last(b3c, T_P, M_P)

    def np32(a):
        return np.asarray(a, np.float32)

    def tr(a):
        return np32(a).T

    (f0, r0), (f1, r1) = p["lstm"]

    def pack_layer(fwd, bwd):
        # column layout: [fwd gates i,f,g,o (4H) | bwd gates i,f,g,o (4H)]
        wih = np.concatenate([tr(fwd[0]), tr(bwd[0])], axis=1)            # (Din, 8H)
        bias = np.concatenate([np32(fwd[2]) + np32(fwd[3]),
                               np32(bwd[2]) + np32(bwd[3])])[None, :]     # (1, 8H)
        whh = np.zeros((2 * H, 8 * H), np.float32)                        # block diagonal
        whh[:H, :4 * H] = tr(fwd[1])                                      # hf -> fwd gates
        whh[H:, 4 * H:] = tr(bwd[1])                                      # hb -> bwd gates
        return wih, whh, bias

    wih0, whh0, b0 = pack_layer(f0, r0)
    wih1, whh1, b1v = pack_layer(f1, r1)

    lng = np32(p["ln_gamma"])[None, :]                                    # (1, 2H)
    lnb = np32(p["ln_beta"])[None, :]
    awT = tr(p["attn_w"])                                                 # (2H, HEADS)
    ab = np32(p["attn_b"])[None, :]
    fcwT = tr(p["fc_w"])                                                  # (2H*(HEADS+1), NC)
    head_blocks = [fcwT[k * 2 * H:(k + 1) * 2 * H] for k in range(HEADS)]  # each (2H, NC)
    avg_block = fcwT[HEADS * 2 * H:] * (1.0 / T_P)                        # fold mean over T
    fcw_all = np.concatenate(head_blocks + [avg_block, awT], axis=1)      # (2H, 5*NC+HEADS)
    fcb = np32(p["fc_b"])[None, :]

    def J(a, dt=jnp.float32):
        return jnp.asarray(np.asarray(a, np.float32), dtype=dt)

    return (J(m1, jnp.bfloat16), J(cb1), J(m2, jnp.bfloat16), J(cb2),
            J(m3, jnp.bfloat16), J(cb3),
            J(wih0), J(whh0), J(b0), J(wih1), J(whh1), J(b1v),
            J(lng), J(lnb), J(ab), J(fcw_all), J(fcb))


# ------------------------- raw parameters (PyTorch-like) --------------------------------
def init_params(key):
    def nrm(k, shape, scale=0.1):
        return scale * jax.random.normal(k, shape, dtype=jnp.float32)

    keys = iter(jax.random.split(key, 64))
    p = {}
    chans = [(1, BASE_CHANNELS),
             (BASE_CHANNELS, BASE_CHANNELS * 2),
             (BASE_CHANNELS * 2, BASE_CHANNELS * 4)]
    for idx, (cin, cout) in enumerate(chans, start=1):
        p[f"conv{idx}"] = dict(
            w=nrm(next(keys), (cout, cin, CNN_K, CNN_K)),
            b=nrm(next(keys), (cout,)),
            gamma=1.0 + nrm(next(keys), (cout,)),
            beta=nrm(next(keys), (cout,)),
            mean=nrm(next(keys), (cout,)),
            var=1.0 + jnp.abs(nrm(next(keys), (cout,))),
        )
    flat_dim = FEAT
    H = LSTM_HIDDEN

    def lstm_dir(k, din):
        ks = jax.random.split(k, 4)
        return (nrm(ks[0], (4 * H, din)), nrm(ks[1], (4 * H, H)),
                nrm(ks[2], (4 * H,)), nrm(ks[3], (4 * H,)))

    p["lstm"] = [
        (lstm_dir(next(keys), flat_dim), lstm_dir(next(keys), flat_dim)),   # layer 0 f/b
        (lstm_dir(next(keys), 2 * H), lstm_dir(next(keys), 2 * H)),         # layer 1 f/b
    ]
    p["ln_gamma"] = 1.0 + nrm(next(keys), (2 * H,))
    p["ln_beta"] = nrm(next(keys), (2 * H,))
    p["attn_w"] = nrm(next(keys), (HEADS, 2 * H))
    p["attn_b"] = nrm(next(keys), (HEADS,))
    fc_in = 2 * H * HEADS + 2 * H
    p["fc_w"] = nrm(next(keys), (N_CLASSES, fc_in))
    p["fc_b"] = nrm(next(keys), (N_CLASSES,))
    return p


# ------------------------------ the forward (1 kernel) ----------------------------------
@jax.jit
def crnn_attn_forward(x_nchw, packed):
    # x: (B, 1, T, n_mels) NCHW; flattening to (B, T*n_mels) is a free reshape matching
    # the (h, w, c) input-column order of the conv1 Toeplitz matrix.
    x2d = x_nchw.reshape(BATCH, T_FRAMES * N_MELS).astype(jnp.float32)
    return pl.pallas_call(
        _crnn_attn_kernel,
        out_shape=jax.ShapeDtypeStruct((BATCH, N_CLASSES), jnp.float32),
        in_specs=[_VMEM] * (1 + len(packed)),
        out_specs=_VMEM,
        scratch_shapes=[
            pltpu.VMEM((T_P * BATCH, FEAT), jnp.float32),   # restacked CNN output (8, 64)
            pltpu.VMEM((T_P * BATCH, D2), jnp.float32),     # layer-0 LSTM outputs  (8, 64)
            pltpu.VMEM((T_P * BATCH, D2), jnp.float32),     # layer-1 LSTM outputs  (8, 64)
        ],
    )(x2d, *packed)


if __name__ == "__main__":
    key = jax.random.PRNGKey(0)
    pkey, xkey = jax.random.split(key)
    raw = init_params(pkey)
    packed = pack_params(raw)          # one-time weight folding / packing
    x = jax.random.normal(xkey, (BATCH, 1, T_FRAMES, N_MELS), dtype=jnp.float32)
    out = crnn_attn_forward(x, packed)
    out = jax.block_until_ready(out)
    assert out.shape == (BATCH, N_CLASSES)
    assert bool(jnp.all(jnp.isfinite(out)))
    print("KERNEL_OK")
</pallas_src>

<mosaic_0001>
module attributes {stable_mosaic.version = 11 : i64} {
  func.func @_crnn_attn_kernel(%arg0: memref<2x256xf32, #tpu.memory_space<vmem>>, %arg1: memref<256x1024xbf16, #tpu.memory_space<vmem>>, %arg2: memref<1x1024xf32, #tpu.memory_space<vmem>>, %arg3: memref<256x512xbf16, #tpu.memory_space<vmem>>, %arg4: memref<1x512xf32, #tpu.memory_space<vmem>>, %arg5: memref<128x256xbf16, #tpu.memory_space<vmem>>, %arg6: memref<1x256xf32, #tpu.memory_space<vmem>>, %arg7: memref<64x256xf32, #tpu.memory_space<vmem>>, %arg8: memref<64x256xf32, #tpu.memory_space<vmem>>, %arg9: memref<1x256xf32, #tpu.memory_space<vmem>>, %arg10: memref<64x256xf32, #tpu.memory_space<vmem>>, %arg11: memref<64x256xf32, #tpu.memory_space<vmem>>, %arg12: memref<1x256xf32, #tpu.memory_space<vmem>>, %arg13: memref<1x64xf32, #tpu.memory_space<vmem>>, %arg14: memref<1x64xf32, #tpu.memory_space<vmem>>, %arg15: memref<1x4xf32, #tpu.memory_space<vmem>>, %arg16: memref<64x164xf32, #tpu.memory_space<vmem>>, %arg17: memref<1x32xf32, #tpu.memory_space<vmem>>, %arg18: memref<2x32xf32, #tpu.memory_space<vmem>>, %arg19: memref<8x64xf32, #tpu.memory_space<vmem>>, %arg20: memref<8x64xf32, #tpu.memory_space<vmem>>, %arg21: memref<8x64xf32, #tpu.memory_space<vmem>>) attributes {dimension_semantics = [], scalar_prefetch = 0 : i64, scratch_operands = 3 : i64, tpu.core_type = #tpu.core_type<tc>} {
    %c0 = arith.constant 0 : index
    %c0_0 = arith.constant 0 : index
    %0 = vector.load %arg0[%c0, %c0_0] : memref<2x256xf32, #tpu.memory_space<vmem>>, vector<2x256xf32>
    %1 = arith.truncf %0 : vector<2x256xf32> to vector<2x256xbf16>
    %c0_1 = arith.constant 0 : index
    %c0_2 = arith.constant 0 : index
    %2 = vector.load %arg1[%c0_1, %c0_2] : memref<256x1024xbf16, #tpu.memory_space<vmem>>, vector<256x1024xbf16>
    %cst = arith.constant dense<0.000000e+00> : vector<2x1024xf32>
    %3 = tpu.matmul %1, %2, %cst {dimension_numbers = #tpu.dot_dimension_numbers<[1], [0], [0], [1], [0, 0, 1, 1], [], []>} : vector<2x256xbf16>, vector<256x1024xbf16>, vector<2x1024xf32> -> vector<2x1024xf32>
    %c0_3 = arith.constant 0 : index
    %c0_4 = arith.constant 0 : index
    %4 = vector.load %arg2[%c0_3, %c0_4] : memref<1x1024xf32, #tpu.memory_space<vmem>>, vector<1x1024xf32>
    %5 = vector.broadcast %4 : vector<1x1024xf32> to vector<2x1024xf32>
    %6 = arith.addf %3, %5 : vector<2x1024xf32>
    %cst_5 = arith.constant 0.000000e+00 : f32
    %7 = vector.broadcast %cst_5 : f32 to vector<2x1024xf32>
    %8 = arith.maximumf %6, %7 : vector<2x1024xf32>
    %9 = vector.extract_strided_slice %8 {offsets = [0, 0], sizes = [2, 256], strides = [1, 1]} : vector<2x1024xf32> to vector<2x256xf32>
    %10 = vector.extract_strided_slice %8 {offsets = [0, 256], sizes = [2, 256], strides = [1, 1]} : vector<2x1024xf32> to vector<2x256xf32>
    %11 = arith.maximumf %9, %10 : vector<2x256xf32>
    %12 = vector.extract_strided_slice %8 {offsets = [0, 512], sizes = [2, 256], strides = [1, 1]} : vector<2x1024xf32> to vector<2x256xf32>
    %13 = vector.extract_strided_slice %8 {offsets = [0, 768], sizes = [2, 256], strides = [1, 1]} : vector<2x1024xf32> to vector<2x256xf32>
    %14 = arith.maximumf %12, %13 : vector<2x256xf32>
    %15 = arith.maximumf %11, %14 : vector<2x256xf32>
    %16 = arith.truncf %15 : vector<2x256xf32> to vector<2x256xbf16>
    %c0_6 = arith.constant 0 : index
    %c0_7 = arith.constant 0 : index
    %17 = vector.load %arg3[%c0_6, %c0_7] : memref<256x512xbf16, #tpu.memory_space<vmem>>, vector<256x512xbf16>
    %cst_8 = arith.constant dense<0.000000e+00> : vector<2x512xf32>
    %18 = tpu.matmul %16, %17, %cst_8 {dimension_numbers = #tpu.dot_dimension_numbers<[1], [0], [0], [1], [0, 0, 1, 1], [], []>} : vector<2x256xbf16>, vector<256x512xbf16>, vector<2x512xf32> -> vector<2x512xf32>
    %c0_9 = arith.constant 0 : index
    %c0_10 = arith.constant 0 : index
    %19 = vector.load %arg4[%c0_9, %c0_10] : memref<1x512xf32, #tpu.memory_space<vmem>>, vector<1x512xf32>
    %20 = vector.broadcast %19 : vector<1x512xf32> to vector<2x512xf32>
    %21 = arith.addf %18, %20 : vector<2x512xf32>
    %cst_11 = arith.constant 0.000000e+00 : f32
    %22 = vector.broadcast %cst_11 : f32 to vector<2x512xf32>
    %23 = arith.maximumf %21, %22 : vector<2x512xf32>
    %24 = vector.extract_strided_slice %23 {offsets = [0, 0], sizes = [2, 128], strides = [1, 1]} : vector<2x512xf32> to vector<2x128xf32>
    %25 = vector.extract_strided_slice %23 {offsets = [0, 128], sizes = [2, 128], strides = [1, 1]} : vector<2x512xf32> to vector<2x128xf32>
    %26 = arith.maximumf %24, %25 : vector<2x128xf32>
    %27 = vector.extract_strided_slice %23 {offsets = [0, 256], sizes = [2, 128], strides = [1, 1]} : vector<2x512xf32> to vector<2x128xf32>
    %28 = vector.extract_strided_slice %23 {offsets = [0, 384], sizes = [2, 128], strides = [1, 1]} : vector<2x512xf32> to vector<2x128xf32>
    %29 = arith.maximumf %27, %28 : vector<2x128xf32>
    %30 = arith.maximumf %26, %29 : vector<2x128xf32>
    %31 = arith.truncf %30 : vector<2x128xf32> to vector<2x128xbf16>
    %c0_12 = arith.constant 0 : index
    %c0_13 = arith.constant 0 : index
    %32 = vector.load %arg5[%c0_12, %c0_13] : memref<128x256xbf16, #tpu.memory_space<vmem>>, vector<128x256xbf16>
    %cst_14 = arith.constant dense<0.000000e+00> : vector<2x256xf32>
    %33 = tpu.matmul %31, %32, %cst_14 {dimension_numbers = #tpu.dot_dimension_numbers<[1], [0], [0], [1], [0, 0, 1, 1], [], []>} : vector<2x128xbf16>, vector<128x256xbf16>, vector<2x256xf32> -> vector<2x256xf32>
    %c0_15 = arith.constant 0 : index
    %c0_16 = arith.constant 0 : index
    %34 = vector.load %arg6[%c0_15, %c0_16] : memref<1x256xf32, #tpu.memory_space<vmem>>, vector<1x256xf32>
    %35 = vector.broadcast %34 : vector<1x256xf32> to vector<2x256xf32>
    %36 = arith.addf %33, %35 : vector<2x256xf32>
    %cst_17 = arith.constant 0.000000e+00 : f32
    %37 = vector.broadcast %cst_17 : f32 to vector<2x256xf32>
    %38 = arith.maximumf %36, %37 : vector<2x256xf32>
    %39 = vector.extract_strided_slice %38 {offsets = [0, 0], sizes = [2, 64], strides = [1, 1]} : vector<2x256xf32> to vector<2x64xf32>
    %c0_18 = arith.constant 0 : index
    %c0_19 = arith.constant 0 : index
    %40 = vector.load %arg19[%c0_18, %c0_19] : memref<8x64xf32, #tpu.memory_space<vmem>>, vector<2x64xf32>
    tpu.vector_store %arg19[%c0_18, %c0_19], %39 {strides = array<i32>} : memref<8x64xf32, #tpu.memory_space<vmem>>, vector<2x64xf32>,
    %41 = vector.extract_strided_slice %38 {offsets = [0, 64], sizes = [2, 64], strides = [1, 1]} : vector<2x256xf32> to vector<2x64xf32>
    %c2 = arith.constant 2 : index
    %c0_20 = arith.constant 0 : index
    %42 = vector.load %arg19[%c2, %c0_20] : memref<8x64xf32, #tpu.memory_space<vmem>>, vector<2x64xf32>
    tpu.vector_store %arg19[%c2, %c0_20], %41 {strides = array<i32>} : memref<8x64xf32, #tpu.memory_space<vmem>>, vector<2x64xf32>,
    %43 = vector.extract_strided_slice %38 {offsets = [0, 128], sizes = [2, 64], strides = [1, 1]} : vector<2x256xf32> to vector<2x64xf32>
    %c4 = arith.constant 4 : index
    %c0_21 = arith.constant 0 : index
    %44 = vector.load %arg19[%c4, %c0_21] : memref<8x64xf32, #tpu.memory_space<vmem>>, vector<2x64xf32>
    tpu.vector_store %arg19[%c4, %c0_21], %43 {strides = array<i32>} : memref<8x64xf32, #tpu.memory_space<vmem>>, vector<2x64xf32>,
    %45 = vector.extract_strided_slice %38 {offsets = [0, 192], sizes = [2, 64], strides = [1, 1]} : vector<2x256xf32> to vector<2x64xf32>
    %c6 = arith.constant 6 : index
    %c0_22 = arith.constant 0 : index
    %46 = vector.load %arg19[%c6, %c0_22] : memref<8x64xf32, #tpu.memory_space<vmem>>, vector<2x64xf32>
    tpu.vector_store %arg19[%c6, %c0_22], %45 {strides = array<i32>} : memref<8x64xf32, #tpu.memory_space<vmem>>, vector<2x64xf32>,
    %c0_23 = arith.constant 0 : index
    %c0_24 = arith.constant 0 : index
    %47 = vector.load %arg19[%c0_23, %c0_24] : memref<8x64xf32, #tpu.memory_space<vmem>>, vector<8x64xf32>
    %c0_25 = arith.constant 0 : index
    %c0_26 = arith.constant 0 : index
    %48 = vector.load %arg7[%c0_25, %c0_26] : memref<64x256xf32, #tpu.memory_space<vmem>>, vector<64x256xf32>
    %cst_27 = arith.constant dense<0.000000e+00> : vector<8x256xf32>
    %49 = tpu.matmul %47, %48, %cst_27 {dimension_numbers = #tpu.dot_dimension_numbers<[1], [0], [0], [1], [0, 0, 1, 1], [], []>} : vector<8x64xf32>, vector<64x256xf32>, vector<8x256xf32> -> vector<8x256xf32>
    %c0_28 = arith.constant 0 : index
    %c0_29 = arith.constant 0 : index
    %50 = vector.load %arg9[%c0_28, %c0_29] : memref<1x256xf32, #tpu.memory_space<vmem>>, vector<1x256xf32>
    %51 = vector.broadcast %50 : vector<1x256xf32> to vector<8x256xf32>
    %52 = arith.addf %49, %51 : vector<8x256xf32>
    %c0_30 = arith.constant 0 : index
    %c0_31 = arith.constant 0 : index
    %53 = vector.load %arg8[%c0_30, %c0_31] : memref<64x256xf32, #tpu.memory_space<vmem>>, vector<64x256xf32>
    %cst_32 = arith.constant 0.000000e+00 : f32
    %54 = vector.broadcast %cst_32 : f32 to vector<2x32xf32>
    %cst_33 = arith.constant 0.000000e+00 : f32
    %55 = vector.broadcast %cst_33 : f32 to vector<2x32xf32>
    %56 = vector.extract_strided_slice %52 {offsets = [0, 0], sizes = [2, 128], strides = [1, 1]} : vector<8x256xf32> to vector<2x128xf32>
    %57 = vector.extract_strided_slice %52 {offsets = [6, 128], sizes = [2, 128], strides = [1, 1]} : vector<8x256xf32> to vector<2x128xf32>
    %58 = vector.extract_strided_slice %56 {offsets = [0, 0], sizes = [2, 32], strides = [1, 1]} : vector<2x128xf32> to vector<2x32xf32>
    %59 = arith.negf %58 : vector<2x32xf32>
    %60 = math.exp %59 : vector<2x32xf32>
    %cst_34 = arith.constant 1.000000e+00 : f32
    %61 = vector.broadcast %cst_34 : f32 to vector<2x32xf32>
    %62 = arith.addf %61, %60 : vector<2x32xf32>
    %63 = arith.divf %61, %62 : vector<2x32xf32>
    %64 = vector.extract_strided_slice %56 {offsets = [0, 32], sizes = [2, 32], strides = [1, 1]} : vector<2x128xf32> to vector<2x32xf32>
    %65 = arith.negf %64 : vector<2x32xf32>
    %66 = math.exp %65 : vector<2x32xf32>
    %cst_35 = arith.constant 1.000000e+00 : f32
    %67 = vector.broadcast %cst_35 : f32 to vector<2x32xf32>
    %68 = arith.addf %67, %66 : vector<2x32xf32>
    %69 = arith.divf %67, %68 : vector<2x32xf32>
    %70 = vector.extract_strided_slice %56 {offsets = [0, 64], sizes = [2, 32], strides = [1, 1]} : vector<2x128xf32> to vector<2x32xf32>
    %71 = math.tanh %70 : vector<2x32xf32>
    %72 = vector.extract_strided_slice %56 {offsets = [0, 96], sizes = [2, 32], strides = [1, 1]} : vector<2x128xf32> to vector<2x32xf32>
    %73 = arith.negf %72 : vector<2x32xf32>
    %74 = math.exp %73 : vector<2x32xf32>
    %cst_36 = arith.constant 1.000000e+00 : f32
    %75 = vector.broadcast %cst_36 : f32 to vector<2x32xf32>
    %76 = arith.addf %75, %74 : vector<2x32xf32>
    %77 = arith.divf %75, %76 : vector<2x32xf32>
    %78 = arith.mulf %69, %54 : vector<2x32xf32>
    %79 = arith.mulf %63, %71 : vector<2x32xf32>
    %80 = arith.addf %78, %79 : vector<2x32xf32>
    %81 = math.tanh %80 : vector<2x32xf32>
    %82 = arith.mulf %77, %81 : vector<2x32xf32>
    %83 = vector.extract_strided_slice %57 {offsets = [0, 0], sizes = [2, 32], strides = [1, 1]} : vector<2x128xf32> to vector<2x32xf32>
    %84 = arith.negf %83 : vector<2x32xf32>
    %85 = math.exp %84 : vector<2x32xf32>
    %cst_37 = arith.constant 1.000000e+00 : f32
    %86 = vector.broadcast %cst_37 : f32 to vector<2x32xf32>
    %87 = arith.addf %86, %85 : vector<2x32xf32>
    %88 = arith.divf %86, %87 : vector<2x32xf32>
    %89 = vector.extract_strided_slice %57 {offsets = [0, 32], sizes = [2, 32], strides = [1, 1]} : vector<2x128xf32> to vector<2x32xf32>
    %90 = arith.negf %89 : vector<2x32xf32>
    %91 = math.exp %90 : vector<2x32xf32>
    %cst_38 = arith.constant 1.000000e+00 : f32
    %92 = vector.broadcast %cst_38 : f32 to vector<2x32xf32>
    %93 = arith.addf %92, %91 : vector<2x32xf32>
    %94 = arith.divf %92, %93 : vector<2x32xf32>
    %95 = vector.extract_strided_slice %57 {offsets = [0, 64], sizes = [2, 32], strides = [1, 1]} : vector<2x128xf32> to vector<2x32xf32>
    %96 = math.tanh %95 : vector<2x32xf32>
    %97 = vector.extract_strided_slice %57 {offsets = [0, 96], sizes = [2, 32], strides = [1, 1]} : vector<2x128xf32> to vector<2x32xf32>
    %98 = arith.negf %97 : vector<2x32xf32>
    %99 = math.exp %98 : vector<2x32xf32>
    %cst_39 = arith.constant 1.000000e+00 : f32
    %100 = vector.broadcast %cst_39 : f32 to vector<2x32xf32>
    %101 = arith.addf %100, %99 : vector<2x32xf32>
    %102 = arith.divf %100, %101 : vector<2x32xf32>
    %103 = arith.mulf %94, %55 : vector<2x32xf32>
    %104 = arith.mulf %88, %96 : vector<2x32xf32>
    %105 = arith.addf %103, %104 : vector<2x32xf32>
    %106 = math.tanh %105 : vector<2x32xf32>
    %107 = arith.mulf %102, %106 : vector<2x32xf32>
    %108 = tpu.concatenate %82, %107 in 1 : vector<2x32xf32>, vector<2x32xf32> -> vector<2x64xf32>
    %c0_40 = arith.constant 0 : index
    %c0_41 = arith.constant 0 : index
    %109 = vector.load %arg20[%c0_40, %c0_41] : memref<8x64xf32, #tpu.memory_space<vmem>>, vector<2x32xf32>
    tpu.vector_store %arg20[%c0_40, %c0_41], %82 {strides = array<i32>} : memref<8x64xf32, #tpu.memory_space<vmem>>, vector<2x32xf32>,
    %c6_42 = arith.constant 6 : index
    %c32 = arith.constant 32 : index
    %110 = vector.load %arg20[%c6_42, %c32] : memref<8x64xf32, #tpu.memory_space<vmem>>, vector<2x32xf32>
    tpu.vector_store %arg20[%c6_42, %c32], %107 {strides = array<i32>} : memref<8x64xf32, #tpu.memory_space<vmem>>, vector<2x32xf32>,
    %cst_43 = arith.constant dense<0.000000e+00> : vector<2x256xf32>
    %111 = tpu.matmul %108, %53, %cst_43 {dimension_numbers = #tpu.dot_dimension_numbers<[1], [0], [0], [1], [0, 0, 1, 1], [], []>} : vector<2x64xf32>, vector<64x256xf32>, vector<2x256xf32> -> vector<2x256xf32>
    %112 = vector.extract_strided_slice %111 {offsets = [0, 0], sizes = [2, 128], strides = [1, 1]} : vector<2x256xf32> to vector<2x128xf32>
    %113 = vector.extract_strided_slice %52 {offsets = [2, 0], sizes = [2, 128], strides = [1, 1]} : vector<8x256xf32> to vector<2x128xf32>
    %114 = arith.addf %112, %113 : vector<2x128xf32>
    %115 = vector.extract_strided_slice %111 {offsets = [0, 128], sizes = [2, 128], strides = [1, 1]} : vector<2x256xf32> to vector<2x128xf32>
    %116 = vector.extract_strided_slice %52 {offsets = [4, 128], sizes = [2, 128], strides = [1, 1]} : vector<8x256xf32> to vector<2x128xf32>
    %117 = arith.addf %115, %116 : vector<2x128xf32>
    %118 = vector.extract_strided_slice %114 {offsets = [0, 0], sizes = [2, 32], strides = [1, 1]} : vector<2x128xf32> to vector<2x32xf32>
    %119 = arith.negf %118 : vector<2x32xf32>
    %120 = math.exp %119 : vector<2x32xf32>
    %cst_44 = arith.constant 1.000000e+00 : f32
    %121 = vector.broadcast %cst_44 : f32 to vector<2x32xf32>
    %122 = arith.addf %121, %120 : vector<2x32xf32>
    %123 = arith.divf %121, %122 : vector<2x32xf32>
    %124 = vector.extract_strided_slice %114 {offsets = [0, 32], sizes = [2, 32], strides = [1, 1]} : vector<2x128xf32> to vector<2x32xf32>
    %125 = arith.negf %124 : vector<2x32xf32>
    %126 = math.exp %125 : vector<2x32xf32>
    %cst_45 = arith.constant 1.000000e+00 : f32
    %127 = vector.broadcast %cst_45 : f32 to vector<2x32xf32>
    %128 = arith.addf %127, %126 : vector<2x32xf32>
    %129 = arith.divf %127, %128 : vector<2x32xf32>
    %130 = vector.extract_strided_slice %114 {offsets = [0, 64], sizes = [2, 32], strides = [1, 1]} : vector<2x128xf32> to vector<2x32xf32>
    %131 = math.tanh %130 : vector<2x32xf32>
    %132 = vector.extract_strided_slice %114 {offsets = [0, 96], sizes = [2, 32], strides = [1, 1]} : vector<2x128xf32> to vector<2x32xf32>
    %133 = arith.negf %132 : vector<2x32xf32>
    %134 = math.exp %133 : vector<2x32xf32>
    %cst_46 = arith.constant 1.000000e+00 : f32
    %135 = vector.broadcast %cst_46 : f32 to vector<2x32xf32>
    %136 = arith.addf %135, %134 : vector<2x32xf32>
    %137 = arith.divf %135, %136 : vector<2x32xf32>
    %138 = arith.mulf %129, %80 : vector<2x32xf32>
    %139 = arith.mulf %123, %131 : vector<2x32xf32>
    %140 = arith.addf %138, %139 : vector<2x32xf32>
    %141 = math.tanh %140 : vector<2x32xf32>
    %142 = arith.mulf %137, %141 : vector<2x32xf32>
    %143 = vector.extract_strided_slice %117 {offsets = [0, 0], sizes = [2, 32], strides = [1, 1]} : vector<2x128xf32> to vector<2x32xf32>
    %144 = arith.negf %143 : vector<2x32xf32>
    %145 = math.exp %144 : vector<2x32xf32>
    %cst_47 = arith.constant 1.000000e+00 : f32
    %146 = vector.broadcast %cst_47 : f32 to vector<2x32xf32>
    %147 = arith.addf %146, %145 : vector<2x32xf32>
    %148 = arith.divf %146, %147 : vector<2x32xf32>
    %149 = vector.extract_strided_slice %117 {offsets = [0, 32], sizes = [2, 32], strides = [1, 1]} : vector<2x128xf32> to vector<2x32xf32>
    %150 = arith.negf %149 : vector<2x32xf32>
    %151 = math.exp %150 : vector<2x32xf32>
    %cst_48 = arith.constant 1.000000e+00 : f32
    %152 = vector.broadcast %cst_48 : f32 to vector<2x32xf32>
    %153 = arith.addf %152, %151 : vector<2x32xf32>
    %154 = arith.divf %152, %153 : vector<2x32xf32>
    %155 = vector.extract_strided_slice %117 {offsets = [0, 64], sizes = [2, 32], strides = [1, 1]} : vector<2x128xf32> to vector<2x32xf32>
    %156 = math.tanh %155 : vector<2x32xf32>
    %157 = vector.extract_strided_slice %117 {offsets = [0, 96], sizes = [2, 32], strides = [1, 1]} : vector<2x128xf32> to vector<2x32xf32>
    %158 = arith.negf %157 : vector<2x32xf32>
    %159 = math.exp %158 : vector<2x32xf32>
    %cst_49 = arith.constant 1.000000e+00 : f32
    %160 = vector.broadcast %cst_49 : f32 to vector<2x32xf32>
    %161 = arith.addf %160, %159 : vector<2x32xf32>
    %162 = arith.divf %160, %161 : vector<2x32xf32>
    %163 = arith.mulf %154, %105 : vector<2x32xf32>
    %164 = arith.mulf %148, %156 : vector<2x32xf32>
    %165 = arith.addf %163, %164 : vector<2x32xf32>
    %166 = math.tanh %165 : vector<2x32xf32>
    %167 = arith.mulf %162, %166 : vector<2x32xf32>
    %168 = tpu.concatenate %142, %167 in 1 : vector<2x32xf32>, vector<2x32xf32> -> vector<2x64xf32>
    %c2_50 = arith.constant 2 : index
    %c0_51 = arith.constant 0 : index
    %169 = vector.load %arg20[%c2_50, %c0_51] : memref<8x64xf32, #tpu.memory_space<vmem>>, vector<2x32xf32>
    tpu.vector_store %arg20[%c2_50, %c0_51], %142 {strides = array<i32>} : memref<8x64xf32, #tpu.memory_space<vmem>>, vector<2x32xf32>,
    %c4_52 = arith.constant 4 : index
    %c32_53 = arith.constant 32 : index
    %170 = vector.load %arg20[%c4_52, %c32_53] : memref<8x64xf32, #tpu.memory_space<vmem>>, vector<2x32xf32>
    tpu.vector_store %arg20[%c4_52, %c32_53], %167 {strides = array<i32>} : memref<8x64xf32, #tpu.memory_space<vmem>>, vector<2x32xf32>,
    %cst_54 = arith.constant dense<0.000000e+00> : vector<2x256xf32>
    %171 = tpu.matmul %168, %53, %cst_54 {dimension_numbers = #tpu.dot_dimension_numbers<[1], [0], [0], [1], [0, 0, 1, 1], [], []>} : vector<2x64xf32>, vector<64x256xf32>, vector<2x256xf32> -> vector<2x256xf32>
    %172 = vector.extract_strided_slice %171 {offsets = [0, 0], sizes = [2, 128], strides = [1, 1]} : vector<2x256xf32> to vector<2x128xf32>
    %173 = vector.extract_strided_slice %52 {offsets = [4, 0], sizes = [2, 128], strides = [1, 1]} : vector<8x256xf32> to vector<2x128xf32>
    %174 = arith.addf %172, %173 : vector<2x128xf32>
    %175 = vector.extract_strided_slice %171 {offsets = [0, 128], sizes = [2, 128], strides = [1, 1]} : vector<2x256xf32> to vector<2x128xf32>
    %176 = vector.extract_strided_slice %52 {offsets = [2, 128], sizes = [2, 128], strides = [1, 1]} : vector<8x256xf32> to vector<2x128xf32>
    %177 = arith.addf %175, %176 : vector<2x128xf32>
    %178 = vector.extract_strided_slice %174 {offsets = [0, 0], sizes = [2, 32], strides = [1, 1]} : vector<2x128xf32> to vector<2x32xf32>
    %179 = arith.negf %178 : vector<2x32xf32>
    %180 = math.exp %179 : vector<2x32xf32>
    %cst_55 = arith.constant 1.000000e+00 : f32
    %181 = vector.broadcast %cst_55 : f32 to vector<2x32xf32>
    %182 = arith.addf %181, %180 : vector<2x32xf32>
    %183 = arith.divf %181, %182 : vector<2x32xf32>
    %184 = vector.extract_strided_slice %174 {offsets = [0, 32], sizes = [2, 32], strides = [1, 1]} : vector<2x128xf32> to vector<2x32xf32>
    %185 = arith.negf %184 : vector<2x32xf32>
    %186 = math.exp %185 : vector<2x32xf32>
    %cst_56 = arith.constant 1.000000e+00 : f32
    %187 = vector.broadcast %cst_56 : f32 to vector<2x32xf32>
    %188 = arith.addf %187, %186 : vector<2x32xf32>
    %189 = arith.divf %187, %188 : vector<2x32xf32>
    %190 = vector.extract_strided_slice %174 {offsets = [0, 64], sizes = [2, 32], strides = [1, 1]} : vector<2x128xf32> to vector<2x32xf32>
    %191 = math.tanh %190 : vector<2x32xf32>
    %192 = vector.extract_strided_slice %174 {offsets = [0, 96], sizes = [2, 32], strides = [1, 1]} : vector<2x128xf32> to vector<2x32xf32>
    %193 = arith.negf %192 : vector<2x32xf32>
    %194 = math.exp %193 : vector<2x32xf32>
    %cst_57 = arith.constant 1.000000e+00 : f32
    %195 = vector.broadcast %cst_57 : f32 to vector<2x32xf32>
    %196 = arith.addf %195, %194 : vector<2x32xf32>
    %197 = arith.divf %195, %196 : vector<2x32xf32>
    %198 = arith.mulf %189, %140 : vector<2x32xf32>
    %199 = arith.mulf %183, %191 : vector<2x32xf32>
    %200 = arith.addf %198, %199 : vector<2x32xf32>
    %201 = math.tanh %200 : vector<2x32xf32>
    %202 = arith.mulf %197, %201 : vector<2x32xf32>
    %203 = vector.extract_strided_slice %177 {offsets = [0, 0], sizes = [2, 32], strides = [1, 1]} : vector<2x128xf32> to vector<2x32xf32>
    %204 = arith.negf %203 : vector<2x32xf32>
    %205 = math.exp %204 : vector<2x32xf32>
    %cst_58 = arith.constant 1.000000e+00 : f32
    %206 = vector.broadcast %cst_58 : f32 to vector<2x32xf32>
    %207 = arith.addf %206, %205 : vector<2x32xf32>
    %208 = arith.divf %206, %207 : vector<2x32xf32>
    %209 = vector.extract_strided_slice %177 {offsets = [0, 32], sizes = [2, 32], strides = [1, 1]} : vector<2x128xf32> to vector<2x32xf32>
    %210 = arith.negf %209 : vector<2x32xf32>
    %211 = math.exp %210 : vector<2x32xf32>
    %cst_59 = arith.constant 1.000000e+00 : f32
    %212 = vector.broadcast %cst_59 : f32 to vector<2x32xf32>
    %213 = arith.addf %212, %211 : vector<2x32xf32>
    %214 = arith.divf %212, %213 : vector<2x32xf32>
    %215 = vector.extract_strided_slice %177 {offsets = [0, 64], sizes = [2, 32], strides = [1, 1]} : vector<2x128xf32> to vector<2x32xf32>
    %216 = math.tanh %215 : vector<2x32xf32>
    %217 = vector.extract_strided_slice %177 {offsets = [0, 96], sizes = [2, 32], strides = [1, 1]} : vector<2x128xf32> to vector<2x32xf32>
    %218 = arith.negf %217 : vector<2x32xf32>
    %219 = math.exp %218 : vector<2x32xf32>
    %cst_60 = arith.constant 1.000000e+00 : f32
    %220 = vector.broadcast %cst_60 : f32 to vector<2x32xf32>
    %221 = arith.addf %220, %219 : vector<2x32xf32>
    %222 = arith.divf %220, %221 : vector<2x32xf32>
    %223 = arith.mulf %214, %165 : vector<2x32xf32>
    %224 = arith.mulf %208, %216 : vector<2x32xf32>
    %225 = arith.addf %223, %224 : vector<2x32xf32>
    %226 = math.tanh %225 : vector<2x32xf32>
    %227 = arith.mulf %222, %226 : vector<2x32xf32>
    %228 = tpu.concatenate %202, %227 in 1 : vector<2x32xf32>, vector<2x32xf32> -> vector<2x64xf32>
    %c4_61 = arith.constant 4 : index
    %c0_62 = arith.constant 0 : index
    %229 = vector.load %arg20[%c4_61, %c0_62] : memref<8x64xf32, #tpu.memory_space<vmem>>, vector<2x32xf32>
    tpu.vector_store %arg20[%c4_61, %c0_62], %202 {strides = array<i32>} : memref<8x64xf32, #tpu.memory_space<vmem>>, vector<2x32xf32>,
    %c2_63 = arith.constant 2 : index
    %c32_64 = arith.constant 32 : index
    %230 = vector.load %arg20[%c2_63, %c32_64] : memref<8x64xf32, #tpu.memory_space<vmem>>, vector<2x32xf32>
    tpu.vector_store %arg20[%c2_63, %c32_64], %227 {strides = array<i32>} : memref<8x64xf32, #tpu.memory_space<vmem>>, vector<2x32xf32>,
    %cst_65 = arith.constant dense<0.000000e+00> : vector<2x256xf32>
    %231 = tpu.matmul %228, %53, %cst_65 {dimension_numbers = #tpu.dot_dimension_numbers<[1], [0], [0], [1], [0, 0, 1, 1], [], []>} : vector<2x64xf32>, vector<64x256xf32>, vector<2x256xf32> -> vector<2x256xf32>
    %232 = vector.extract_strided_slice %231 {offsets = [0, 0], sizes = [2, 128], strides = [1, 1]} : vector<2x256xf32> to vector<2x128xf32>
    %233 = vector.extract_strided_slice %52 {offsets = [6, 0], sizes = [2, 128], strides = [1, 1]} : vector<8x256xf32> to vector<2x128xf32>
    %234 = arith.addf %232, %233 : vector<2x128xf32>
    %235 = vector.extract_strided_slice %231 {offsets = [0, 128], sizes = [2, 128], strides = [1, 1]} : vector<2x256xf32> to vector<2x128xf32>
    %236 = vector.extract_strided_slice %52 {offsets = [0, 128], sizes = [2, 128], strides = [1, 1]} : vector<8x256xf32> to vector<2x128xf32>
    %237 = arith.addf %235, %236 : vector<2x128xf32>
    %238 = vector.extract_strided_slice %234 {offsets = [0, 0], sizes = [2, 32], strides = [1, 1]} : vector<2x128xf32> to vector<2x32xf32>
    %239 = arith.negf %238 : vector<2x32xf32>
    %240 = math.exp %239 : vector<2x32xf32>
    %cst_66 = arith.constant 1.000000e+00 : f32
    %241 = vector.broadcast %cst_66 : f32 to vector<2x32xf32>
    %242 = arith.addf %241, %240 : vector<2x32xf32>
    %243 = arith.divf %241, %242 : vector<2x32xf32>
    %244 = vector.extract_strided_slice %234 {offsets = [0, 32], sizes = [2, 32], strides = [1, 1]} : vector<2x128xf32> to vector<2x32xf32>
    %245 = arith.negf %244 : vector<2x32xf32>
    %246 = math.exp %245 : vector<2x32xf32>
    %cst_67 = arith.constant 1.000000e+00 : f32
    %247 = vector.broadcast %cst_67 : f32 to vector<2x32xf32>
    %248 = arith.addf %247, %246 : vector<2x32xf32>
    %249 = arith.divf %247, %248 : vector<2x32xf32>
    %250 = vector.extract_strided_slice %234 {offsets = [0, 64], sizes = [2, 32], strides = [1, 1]} : vector<2x128xf32> to vector<2x32xf32>
    %251 = math.tanh %250 : vector<2x32xf32>
    %252 = vector.extract_strided_slice %234 {offsets = [0, 96], sizes = [2, 32], strides = [1, 1]} : vector<2x128xf32> to vector<2x32xf32>
    %253 = arith.negf %252 : vector<2x32xf32>
    %254 = math.exp %253 : vector<2x32xf32>
    %cst_68 = arith.constant 1.000000e+00 : f32
    %255 = vector.broadcast %cst_68 : f32 to vector<2x32xf32>
    %256 = arith.addf %255, %254 : vector<2x32xf32>
    %257 = arith.divf %255, %256 : vector<2x32xf32>
    %258 = arith.mulf %249, %200 : vector<2x32xf32>
    %259 = arith.mulf %243, %251 : vector<2x32xf32>
    %260 = arith.addf %258, %259 : vector<2x32xf32>
    %261 = math.tanh %260 : vector<2x32xf32>
    %262 = arith.mulf %257, %261 : vector<2x32xf32>
    %263 = vector.extract_strided_slice %237 {offsets = [0, 0], sizes = [2, 32], strides = [1, 1]} : vector<2x128xf32> to vector<2x32xf32>
    %264 = arith.negf %263 : vector<2x32xf32>
    %265 = math.exp %264 : vector<2x32xf32>
    %cst_69 = arith.constant 1.000000e+00 : f32
    %266 = vector.broadcast %cst_69 : f32 to vector<2x32xf32>
    %267 = arith.addf %266, %265 : vector<2x32xf32>
    %268 = arith.divf %266, %267 : vector<2x32xf32>
    %269 = vector.extract_strided_slice %237 {offsets = [0, 32], sizes = [2, 32], strides = [1, 1]} : vector<2x128xf32> to vector<2x32xf32>
    %270 = arith.negf %269 : vector<2x32xf32>
    %271 = math.exp %270 : vector<2x32xf32>
    %cst_70 = arith.constant 1.000000e+00 : f32
    %272 = vector.broadcast %cst_70 : f32 to vector<2x32xf32>
    %273 = arith.addf %272, %271 : vector<2x32xf32>
    %274 = arith.divf %272, %273 : vector<2x32xf32>
    %275 = vector.extract_strided_slice %237 {offsets = [0, 64], sizes = [2, 32], strides = [1, 1]} : vector<2x128xf32> to vector<2x32xf32>
    %276 = math.tanh %275 : vector<2x32xf32>
    %277 = vector.extract_strided_slice %237 {offsets = [0, 96], sizes = [2, 32], strides = [1, 1]} : vector<2x128xf32> to vector<2x32xf32>
    %278 = arith.negf %277 : vector<2x32xf32>
    %279 = math.exp %278 : vector<2x32xf32>
    %cst_71 = arith.constant 1.000000e+00 : f32
    %280 = vector.broadcast %cst_71 : f32 to vector<2x32xf32>
    %281 = arith.addf %280, %279 : vector<2x32xf32>
    %282 = arith.divf %280, %281 : vector<2x32xf32>
    %283 = arith.mulf %274, %225 : vector<2x32xf32>
    %284 = arith.mulf %268, %276 : vector<2x32xf32>
    %285 = arith.addf %283, %284 : vector<2x32xf32>
    %286 = math.tanh %285 : vector<2x32xf32>
    %287 = arith.mulf %282, %286 : vector<2x32xf32>
    %c6_72 = arith.constant 6 : index
    %c0_73 = arith.constant 0 : index
    %288 = vector.load %arg20[%c6_72, %c0_73] : memref<8x64xf32, #tpu.memory_space<vmem>>, vector<2x32xf32>
    tpu.vector_store %arg20[%c6_72, %c0_73], %262 {strides = array<i32>} : memref<8x64xf32, #tpu.memory_space<vmem>>, vector<2x32xf32>,
    %c0_74 = arith.constant 0 : index
    %c32_75 = arith.constant 32 : index
    %289 = vector.load %arg20[%c0_74, %c32_75] : memref<8x64xf32, #tpu.memory_space<vmem>>, vector<2x32xf32>
    tpu.vector_store %arg20[%c0_74, %c32_75], %287 {strides = array<i32>} : memref<8x64xf32, #tpu.memory_space<vmem>>, vector<2x32xf32>,
    %c0_76 = arith.constant 0 : index
    %c0_77 = arith.constant 0 : index
    %290 = vector.load %arg20[%c0_76, %c0_77] : memref<8x64xf32, #tpu.memory_space<vmem>>, vector<8x64xf32>
    %c0_78 = arith.constant 0 : index
    %c0_79 = arith.constant 0 : index
    %291 = vector.load %arg10[%c0_78, %c0_79] : memref<64x256xf32, #tpu.memory_space<vmem>>, vector<64x256xf32>
    %cst_80 = arith.constant dense<0.000000e+00> : vector<8x256xf32>
    %292 = tpu.matmul %290, %291, %cst_80 {dimension_numbers = #tpu.dot_dimension_numbers<[1], [0], [0], [1], [0, 0, 1, 1], [], []>} : vector<8x64xf32>, vector<64x256xf32>, vector<8x256xf32> -> vector<8x256xf32>
    %c0_81 = arith.constant 0 : index
    %c0_82 = arith.constant 0 : index
    %293 = vector.load %arg12[%c0_81, %c0_82] : memref<1x256xf32, #tpu.memory_space<vmem>>, vector<1x256xf32>
    %294 = vector.broadcast %293 : vector<1x256xf32> to vector<8x256xf32>
    %295 = arith.addf %292, %294 : vector<8x256xf32>
    %c0_83 = arith.constant 0 : index
    %c0_84 = arith.constant 0 : index
    %296 = vector.load %arg11[%c0_83, %c0_84] : memref<64x256xf32, #tpu.memory_space<vmem>>, vector<64x256xf32>
    %cst_85 = arith.constant 0.000000e+00 : f32
    %297 = vector.broadcast %cst_85 : f32 to vector<2x32xf32>
    %cst_86 = arith.constant 0.000000e+00 : f32
    %298 = vector.broadcast %cst_86 : f32 to vector<2x32xf32>
    %299 = vector.extract_strided_slice %295 {offsets = [0, 0], sizes = [2, 128], strides = [1, 1]} : vector<8x256xf32> to vector<2x128xf32>
    %300 = vector.extract_strided_slice %295 {offsets = [6, 128], sizes = [2, 128], strides = [1, 1]} : vector<8x256xf32> to vector<2x128xf32>
    %301 = vector.extract_strided_slice %299 {offsets = [0, 0], sizes = [2, 32], strides = [1, 1]} : vector<2x128xf32> to vector<2x32xf32>
    %302 = arith.negf %301 : vector<2x32xf32>
    %303 = math.exp %302 : vector<2x32xf32>
    %cst_87 = arith.constant 1.000000e+00 : f32
    %304 = vector.broadcast %cst_87 : f32 to vector<2x32xf32>
    %305 = arith.addf %304, %303 : vector<2x32xf32>
    %306 = arith.divf %304, %305 : vector<2x32xf32>
    %307 = vector.extract_strided_slice %299 {offsets = [0, 32], sizes = [2, 32], strides = [1, 1]} : vector<2x128xf32> to vector<2x32xf32>
    %308 = arith.negf %307 : vector<2x32xf32>
    %309 = math.exp %308 : vector<2x32xf32>
    %cst_88 = arith.constant 1.000000e+00 : f32
    %310 = vector.broadcast %cst_88 : f32 to vector<2x32xf32>
    %311 = arith.addf %310, %309 : vector<2x32xf32>
    %312 = arith.divf %310, %311 : vector<2x32xf32>
    %313 = vector.extract_strided_slice %299 {offsets = [0, 64], sizes = [2, 32], strides = [1, 1]} : vector<2x128xf32> to vector<2x32xf32>
    %314 = math.tanh %313 : vector<2x32xf32>
    %315 = vector.extract_strided_slice %299 {offsets = [0, 96], sizes = [2, 32], strides = [1, 1]} : vector<2x128xf32> to vector<2x32xf32>
    %316 = arith.negf %315 : vector<2x32xf32>
    %317 = math.exp %316 : vector<2x32xf32>
    %cst_89 = arith.constant 1.000000e+00 : f32
    %318 = vector.broadcast %cst_89 : f32 to vector<2x32xf32>
    %319 = arith.addf %318, %317 : vector<2x32xf32>
    %320 = arith.divf %318, %319 : vector<2x32xf32>
    %321 = arith.mulf %312, %297 : vector<2x32xf32>
    %322 = arith.mulf %306, %314 : vector<2x32xf32>
    %323 = arith.addf %321, %322 : vector<2x32xf32>
    %324 = math.tanh %323 : vector<2x32xf32>
    %325 = arith.mulf %320, %324 : vector<2x32xf32>
    %326 = vector.extract_strided_slice %300 {offsets = [0, 0], sizes = [2, 32], strides = [1, 1]} : vector<2x128xf32> to vector<2x32xf32>
    %327 = arith.negf %326 : vector<2x32xf32>
    %328 = math.exp %327 : vector<2x32xf32>
    %cst_90 = arith.constant 1.000000e+00 : f32
    %329 = vector.broadcast %cst_90 : f32 to vector<2x32xf32>
    %330 = arith.addf %329, %328 : vector<2x32xf32>
    %331 = arith.divf %329, %330 : vector<2x32xf32>
    %332 = vector.extract_strided_slice %300 {offsets = [0, 32], sizes = [2, 32], strides = [1, 1]} : vector<2x128xf32> to vector<2x32xf32>
    %333 = arith.negf %332 : vector<2x32xf32>
    %334 = math.exp %333 : vector<2x32xf32>
    %cst_91 = arith.constant 1.000000e+00 : f32
    %335 = vector.broadcast %cst_91 : f32 to vector<2x32xf32>
    %336 = arith.addf %335, %334 : vector<2x32xf32>
    %337 = arith.divf %335, %336 : vector<2x32xf32>
    %338 = vector.extract_strided_slice %300 {offsets = [0, 64], sizes = [2, 32], strides = [1, 1]} : vector<2x128xf32> to vector<2x32xf32>
    %339 = math.tanh %338 : vector<2x32xf32>
    %340 = vector.extract_strided_slice %300 {offsets = [0, 96], sizes = [2, 32], strides = [1, 1]} : vector<2x128xf32> to vector<2x32xf32>
    %341 = arith.negf %340 : vector<2x32xf32>
    %342 = math.exp %341 : vector<2x32xf32>
    %cst_92 = arith.constant 1.000000e+00 : f32
    %343 = vector.broadcast %cst_92 : f32 to vector<2x32xf32>
    %344 = arith.addf %343, %342 : vector<2x32xf32>
    %345 = arith.divf %343, %344 : vector<2x32xf32>
    %346 = arith.mulf %337, %298 : vector<2x32xf32>
    %347 = arith.mulf %331, %339 : vector<2x32xf32>
    %348 = arith.addf %346, %347 : vector<2x32xf32>
    %349 = math.tanh %348 : vector<2x32xf32>
    %350 = arith.mulf %345, %349 : vector<2x32xf32>
    %351 = tpu.concatenate %325, %350 in 1 : vector<2x32xf32>, vector<2x32xf32> -> vector<2x64xf32>
    %c0_93 = arith.constant 0 : index
    %c0_94 = arith.constant 0 : index
    %352 = vector.load %arg21[%c0_93, %c0_94] : memref<8x64xf32, #tpu.memory_space<vmem>>, vector<2x32xf32>
    tpu.vector_store %arg21[%c0_93, %c0_94], %325 {strides = array<i32>} : memref<8x64xf32, #tpu.memory_space<vmem>>, vector<2x32xf32>,
    %c6_95 = arith.constant 6 : index
    %c32_96 = arith.constant 32 : index
    %353 = vector.load %arg21[%c6_95, %c32_96] : memref<8x64xf32, #tpu.memory_space<vmem>>, vector<2x32xf32>
    tpu.vector_store %arg21[%c6_95, %c32_96], %350 {strides = array<i32>} : memref<8x64xf32, #tpu.memory_space<vmem>>, vector<2x32xf32>,
    %cst_97 = arith.constant dense<0.000000e+00> : vector<2x256xf32>
    %354 = tpu.matmul %351, %296, %cst_97 {dimension_numbers = #tpu.dot_dimension_numbers<[1], [0], [0], [1], [0, 0, 1, 1], [], []>} : vector<2x64xf32>, vector<64x256xf32>, vector<2x256xf32> -> vector<2x256xf32>
    %355 = vector.extract_strided_slice %354 {offsets = [0, 0], sizes = [2, 128], strides = [1, 1]} : vector<2x256xf32> to vector<2x128xf32>
    %356 = vector.extract_strided_slice %295 {offsets = [2, 0], sizes = [2, 128], strides = [1, 1]} : vector<8x256xf32> to vector<2x128xf32>
    %357 = arith.addf %355, %356 : vector<2x128xf32>
    %358 = vector.extract_strided_slice %354 {offsets = [0, 128], sizes = [2, 128], strides = [1, 1]} : vector<2x256xf32> to vector<2x128xf32>
    %359 = vector.extract_strided_slice %295 {offsets = [4, 128], sizes = [2, 128], strides = [1, 1]} : vector<8x256xf32> to vector<2x128xf32>
    %360 = arith.addf %358, %359 : vector<2x128xf32>
    %361 = vector.extract_strided_slice %357 {offsets = [0, 0], sizes = [2, 32], strides = [1, 1]} : vector<2x128xf32> to vector<2x32xf32>
    %362 = arith.negf %361 : vector<2x32xf32>
    %363 = math.exp %362 : vector<2x32xf32>
    %cst_98 = arith.constant 1.000000e+00 : f32
    %364 = vector.broadcast %cst_98 : f32 to vector<2x32xf32>
    %365 = arith.addf %364, %363 : vector<2x32xf32>
    %366 = arith.divf %364, %365 : vector<2x32xf32>
    %367 = vector.extract_strided_slice %357 {offsets = [0, 32], sizes = [2, 32], strides = [1, 1]} : vector<2x128xf32> to vector<2x32xf32>
    %368 = arith.negf %367 : vector<2x32xf32>
    %369 = math.exp %368 : vector<2x32xf32>
    %cst_99 = arith.constant 1.000000e+00 : f32
    %370 = vector.broadcast %cst_99 : f32 to vector<2x32xf32>
    %371 = arith.addf %370, %369 : vector<2x32xf32>
    %372 = arith.divf %370, %371 : vector<2x32xf32>
    %373 = vector.extract_strided_slice %357 {offsets = [0, 64], sizes = [2, 32], strides = [1, 1]} : vector<2x128xf32> to vector<2x32xf32>
    %374 = math.tanh %373 : vector<2x32xf32>
    %375 = vector.extract_strided_slice %357 {offsets = [0, 96], sizes = [2, 32], strides = [1, 1]} : vector<2x128xf32> to vector<2x32xf32>
    %376 = arith.negf %375 : vector<2x32xf32>
    %377 = math.exp %376 : vector<2x32xf32>
    %cst_100 = arith.constant 1.000000e+00 : f32
    %378 = vector.broadcast %cst_100 : f32 to vector<2x32xf32>
    %379 = arith.addf %378, %377 : vector<2x32xf32>
    %380 = arith.divf %378, %379 : vector<2x32xf32>
    %381 = arith.mulf %372, %323 : vector<2x32xf32>
    %382 = arith.mulf %366, %374 : vector<2x32xf32>
    %383 = arith.addf %381, %382 : vector<2x32xf32>
    %384 = math.tanh %383 : vector<2x32xf32>
    %385 = arith.mulf %380, %384 : vector<2x32xf32>
    %386 = vector.extract_strided_slice %360 {offsets = [0, 0], sizes = [2, 32], strides = [1, 1]} : vector<2x128xf32> to vector<2x32xf32>
    %387 = arith.negf %386 : vector<2x32xf32>
    %388 = math.exp %387 : vector<2x32xf32>
    %cst_101 = arith.constant 1.000000e+00 : f32
    %389 = vector.broadcast %cst_101 : f32 to vector<2x32xf32>
    %390 = arith.addf %389, %388 : vector<2x32xf32>
    %391 = arith.divf %389, %390 : vector<2x32xf32>
    %392 = vector.extract_strided_slice %360 {offsets = [0, 32], sizes = [2, 32], strides = [1, 1]} : vector<2x128xf32> to vector<2x32xf32>
    %393 = arith.negf %392 : vector<2x32xf32>
    %394 = math.exp %393 : vector<2x32xf32>
    %cst_102 = arith.constant 1.000000e+00 : f32
    %395 = vector.broadcast %cst_102 : f32 to vector<2x32xf32>
    %396 = arith.addf %395, %394 : vector<2x32xf32>
    %397 = arith.divf %395, %396 : vector<2x32xf32>
    %398 = vector.extract_strided_slice %360 {offsets = [0, 64], sizes = [2, 32], strides = [1, 1]} : vector<2x128xf32> to vector<2x32xf32>
    %399 = math.tanh %398 : vector<2x32xf32>
    %400 = vector.extract_strided_slice %360 {offsets = [0, 96], sizes = [2, 32], strides = [1, 1]} : vector<2x128xf32> to vector<2x32xf32>
    %401 = arith.negf %400 : vector<2x32xf32>
    %402 = math.exp %401 : vector<2x32xf32>
    %cst_103 = arith.constant 1.000000e+00 : f32
    %403 = vector.broadcast %cst_103 : f32 to vector<2x32xf32>
    %404 = arith.addf %403, %402 : vector<2x32xf32>
    %405 = arith.divf %403, %404 : vector<2x32xf32>
    %406 = arith.mulf %397, %348 : vector<2x32xf32>
    %407 = arith.mulf %391, %399 : vector<2x32xf32>
    %408 = arith.addf %406, %407 : vector<2x32xf32>
    %409 = math.tanh %408 : vector<2x32xf32>
    %410 = arith.mulf %405, %409 : vector<2x32xf32>
    %411 = tpu.concatenate %385, %410 in 1 : vector<2x32xf32>, vector<2x32xf32> -> vector<2x64xf32>
    %c2_104 = arith.constant 2 : index
    %c0_105 = arith.constant 0 : index
    %412 = vector.load %arg21[%c2_104, %c0_105] : memref<8x64xf32, #tpu.memory_space<vmem>>, vector<2x32xf32>
    tpu.vector_store %arg21[%c2_104, %c0_105], %385 {strides = array<i32>} : memref<8x64xf32, #tpu.memory_space<vmem>>, vector<2x32xf32>,
    %c4_106 = arith.constant 4 : index
    %c32_107 = arith.constant 32 : index
    %413 = vector.load %arg21[%c4_106, %c32_107] : memref<8x64xf32, #tpu.memory_space<vmem>>, vector<2x32xf32>
    tpu.vector_store %arg21[%c4_106, %c32_107], %410 {strides = array<i32>} : memref<8x64xf32, #tpu.memory_space<vmem>>, vector<2x32xf32>,
    %cst_108 = arith.constant dense<0.000000e+00> : vector<2x256xf32>
    %414 = tpu.matmul %411, %296, %cst_108 {dimension_numbers = #tpu.dot_dimension_numbers<[1], [0], [0], [1], [0, 0, 1, 1], [], []>} : vector<2x64xf32>, vector<64x256xf32>, vector<2x256xf32> -> vector<2x256xf32>
    %415 = vector.extract_strided_slice %414 {offsets = [0, 0], sizes = [2, 128], strides = [1, 1]} : vector<2x256xf32> to vector<2x128xf32>
    %416 = vector.extract_strided_slice %295 {offsets = [4, 0], sizes = [2, 128], strides = [1, 1]} : vector<8x256xf32> to vector<2x128xf32>
    %417 = arith.addf %415, %416 : vector<2x128xf32>
    %418 = vector.extract_strided_slice %414 {offsets = [0, 128], sizes = [2, 128], strides = [1, 1]} : vector<2x256xf32> to vector<2x128xf32>
    %419 = vector.extract_strided_slice %295 {offsets = [2, 128], sizes = [2, 128], strides = [1, 1]} : vector<8x256xf32> to vector<2x128xf32>
    %420 = arith.addf %418, %419 : vector<2x128xf32>
    %421 = vector.extract_strided_slice %417 {offsets = [0, 0], sizes = [2, 32], strides = [1, 1]} : vector<2x128xf32> to vector<2x32xf32>
    %422 = arith.negf %421 : vector<2x32xf32>
    %423 = math.exp %422 : vector<2x32xf32>
    %cst_109 = arith.constant 1.000000e+00 : f32
    %424 = vector.broadcast %cst_109 : f32 to vector<2x32xf32>
    %425 = arith.addf %424, %423 : vector<2x32xf32>
    %426 = arith.divf %424, %425 : vector<2x32xf32>
    %427 = vector.extract_strided_slice %417 {offsets = [0, 32], sizes = [2, 32], strides = [1, 1]} : vector<2x128xf32> to vector<2x32xf32>
    %428 = arith.negf %427 : vector<2x32xf32>
    %429 = math.exp %428 : vector<2x32xf32>
    %cst_110 = arith.constant 1.000000e+00 : f32
    %430 = vector.broadcast %cst_110 : f32 to vector<2x32xf32>
    %431 = arith.addf %430, %429 : vector<2x32xf32>
    %432 = arith.divf %430, %431 : vector<2x32xf32>
    %433 = vector.extract_strided_slice %417 {offsets = [0, 64], sizes = [2, 32], strides = [1, 1]} : vector<2x128xf32> to vector<2x32xf32>
    %434 = math.tanh %433 : vector<2x32xf32>
    %435 = vector.extract_strided_slice %417 {offsets = [0, 96], sizes = [2, 32], strides = [1, 1]} : vector<2x128xf32> to vector<2x32xf32>
    %436 = arith.negf %435 : vector<2x32xf32>
    %437 = math.exp %436 : vector<2x32xf32>
    %cst_111 = arith.constant 1.000000e+00 : f32
    %438 = vector.broadcast %cst_111 : f32 to vector<2x32xf32>
    %439 = arith.addf %438, %437 : vector<2x32xf32>
    %440 = arith.divf %438, %439 : vector<2x32xf32>
    %441 = arith.mulf %432, %383 : vector<2x32xf32>
    %442 = arith.mulf %426, %434 : vector<2x32xf32>
    %443 = arith.addf %441, %442 : vector<2x32xf32>
    %444 = math.tanh %443 : vector<2x32xf32>
    %445 = arith.mulf %440, %444 : vector<2x32xf32>
    %446 = vector.extract_strided_slice %420 {offsets = [0, 0], sizes = [2, 32], strides = [1, 1]} : vector<2x128xf32> to vector<2x32xf32>
    %447 = arith.negf %446 : vector<2x32xf32>
    %448 = math.exp %447 : vector<2x32xf32>
    %cst_112 = arith.constant 1.000000e+00 : f32
    %449 = vector.broadcast %cst_112 : f32 to vector<2x32xf32>
    %450 = arith.addf %449, %448 : vector<2x32xf32>
    %451 = arith.divf %449, %450 : vector<2x32xf32>
    %452 = vector.extract_strided_slice %420 {offsets = [0, 32], sizes = [2, 32], strides = [1, 1]} : vector<2x128xf32> to vector<2x32xf32>
    %453 = arith.negf %452 : vector<2x32xf32>
    %454 = math.exp %453 : vector<2x32xf32>
    %cst_113 = arith.constant 1.000000e+00 : f32
    %455 = vector.broadcast %cst_113 : f32 to vector<2x32xf32>
    %456 = arith.addf %455, %454 : vector<2x32xf32>
    %457 = arith.divf %455, %456 : vector<2x32xf32>
    %458 = vector.extract_strided_slice %420 {offsets = [0, 64], sizes = [2, 32], strides = [1, 1]} : vector<2x128xf32> to vector<2x32xf32>
    %459 = math.tanh %458 : vector<2x32xf32>
    %460 = vector.extract_strided_slice %420 {offsets = [0, 96], sizes = [2, 32], strides = [1, 1]} : vector<2x128xf32> to vector<2x32xf32>
    %461 = arith.negf %460 : vector<2x32xf32>
    %462 = math.exp %461 : vector<2x32xf32>
    %cst_114 = arith.constant 1.000000e+00 : f32
    %463 = vector.broadcast %cst_114 : f32 to vector<2x32xf32>
    %464 = arith.addf %463, %462 : vector<2x32xf32>
    %465 = arith.divf %463, %464 : vector<2x32xf32>
    %466 = arith.mulf %457, %408 : vector<2x32xf32>
    %467 = arith.mulf %451, %459 : vector<2x32xf32>
    %468 = arith.addf %466, %467 : vector<2x32xf32>
    %469 = math.tanh %468 : vector<2x32xf32>
    %470 = arith.mulf %465, %469 : vector<2x32xf32>
    %471 = tpu.concatenate %445, %470 in 1 : vector<2x32xf32>, vector<2x32xf32> -> vector<2x64xf32>
    %c4_115 = arith.constant 4 : index
    %c0_116 = arith.constant 0 : index
    %472 = vector.load %arg21[%c4_115, %c0_116] : memref<8x64xf32, #tpu.memory_space<vmem>>, vector<2x32xf32>
    tpu.vector_store %arg21[%c4_115, %c0_116], %445 {strides = array<i32>} : memref<8x64xf32, #tpu.memory_space<vmem>>, vector<2x32xf32>,
    %c2_117 = arith.constant 2 : index
    %c32_118 = arith.constant 32 : index
    %473 = vector.load %arg21[%c2_117, %c32_118] : memref<8x64xf32, #tpu.memory_space<vmem>>, vector<2x32xf32>
    tpu.vector_store %arg21[%c2_117, %c32_118], %470 {strides = array<i32>} : memref<8x64xf32, #tpu.memory_space<vmem>>, vector<2x32xf32>,
    %cst_119 = arith.constant dense<0.000000e+00> : vector<2x256xf32>
    %474 = tpu.matmul %471, %296, %cst_119 {dimension_numbers = #tpu.dot_dimension_numbers<[1], [0], [0], [1], [0, 0, 1, 1], [], []>} : vector<2x64xf32>, vector<64x256xf32>, vector<2x256xf32> -> vector<2x256xf32>
    %475 = vector.extract_strided_slice %474 {offsets = [0, 0], sizes = [2, 128], strides = [1, 1]} : vector<2x256xf32> to vector<2x128xf32>
    %476 = vector.extract_strided_slice %295 {offsets = [6, 0], sizes = [2, 128], strides = [1, 1]} : vector<8x256xf32> to vector<2x128xf32>
    %477 = arith.addf %475, %476 : vector<2x128xf32>
    %478 = vector.extract_strided_slice %474 {offsets = [0, 128], sizes = [2, 128], strides = [1, 1]} : vector<2x256xf32> to vector<2x128xf32>
    %479 = vector.extract_strided_slice %295 {offsets = [0, 128], sizes = [2, 128], strides = [1, 1]} : vector<8x256xf32> to vector<2x128xf32>
    %480 = arith.addf %478, %479 : vector<2x128xf32>
    %481 = vector.extract_strided_slice %477 {offsets = [0, 0], sizes = [2, 32], strides = [1, 1]} : vector<2x128xf32> to vector<2x32xf32>
    %482 = arith.negf %481 : vector<2x32xf32>
    %483 = math.exp %482 : vector<2x32xf32>
    %cst_120 = arith.constant 1.000000e+00 : f32
    %484 = vector.broadcast %cst_120 : f32 to vector<2x32xf32>
    %485 = arith.addf %484, %483 : vector<2x32xf32>
    %486 = arith.divf %484, %485 : vector<2x32xf32>
    %487 = vector.extract_strided_slice %477 {offsets = [0, 32], sizes = [2, 32], strides = [1, 1]} : vector<2x128xf32> to vector<2x32xf32>
    %488 = arith.negf %487 : vector<2x32xf32>
    %489 = math.exp %488 : vector<2x32xf32>
    %cst_121 = arith.constant 1.000000e+00 : f32
    %490 = vector.broadcast %cst_121 : f32 to vector<2x32xf32>
    %491 = arith.addf %490, %489 : vector<2x32xf32>
    %492 = arith.divf %490, %491 : vector<2x32xf32>
    %493 = vector.extract_strided_slice %477 {offsets = [0, 64], sizes = [2, 32], strides = [1, 1]} : vector<2x128xf32> to vector<2x32xf32>
    %494 = math.tanh %493 : vector<2x32xf32>
    %495 = vector.extract_strided_slice %477 {offsets = [0, 96], sizes = [2, 32], strides = [1, 1]} : vector<2x128xf32> to vector<2x32xf32>
    %496 = arith.negf %495 : vector<2x32xf32>
    %497 = math.exp %496 : vector<2x32xf32>
    %cst_122 = arith.constant 1.000000e+00 : f32
    %498 = vector.broadcast %cst_122 : f32 to vector<2x32xf32>
    %499 = arith.addf %498, %497 : vector<2x32xf32>
    %500 = arith.divf %498, %499 : vector<2x32xf32>
    %501 = arith.mulf %492, %443 : vector<2x32xf32>
    %502 = arith.mulf %486, %494 : vector<2x32xf32>
    %503 = arith.addf %501, %502 : vector<2x32xf32>
    %504 = math.tanh %503 : vector<2x32xf32>
    %505 = arith.mulf %500, %504 : vector<2x32xf32>
    %506 = vector.extract_strided_slice %480 {offsets = [0, 0], sizes = [2, 32], strides = [1, 1]} : vector<2x128xf32> to vector<2x32xf32>
    %507 = arith.negf %506 : vector<2x32xf32>
    %508 = math.exp %507 : vector<2x32xf32>
    %cst_123 = arith.constant 1.000000e+00 : f32
    %509 = vector.broadcast %cst_123 : f32 to vector<2x32xf32>
    %510 = arith.addf %509, %508 : vector<2x32xf32>
    %511 = arith.divf %509, %510 : vector<2x32xf32>
    %512 = vector.extract_strided_slice %480 {offsets = [0, 32], sizes = [2, 32], strides = [1, 1]} : vector<2x128xf32> to vector<2x32xf32>
    %513 = arith.negf %512 : vector<2x32xf32>
    %514 = math.exp %513 : vector<2x32xf32>
    %cst_124 = arith.constant 1.000000e+00 : f32
    %515 = vector.broadcast %cst_124 : f32 to vector<2x32xf32>
    %516 = arith.addf %515, %514 : vector<2x32xf32>
    %517 = arith.divf %515, %516 : vector<2x32xf32>
    %518 = vector.extract_strided_slice %480 {offsets = [0, 64], sizes = [2, 32], strides = [1, 1]} : vector<2x128xf32> to vector<2x32xf32>
    %519 = math.tanh %518 : vector<2x32xf32>
    %520 = vector.extract_strided_slice %480 {offsets = [0, 96], sizes = [2, 32], strides = [1, 1]} : vector<2x128xf32> to vector<2x32xf32>
    %521 = arith.negf %520 : vector<2x32xf32>
    %522 = math.exp %521 : vector<2x32xf32>
    %cst_125 = arith.constant 1.000000e+00 : f32
    %523 = vector.broadcast %cst_125 : f32 to vector<2x32xf32>
    %524 = arith.addf %523, %522 : vector<2x32xf32>
    %525 = arith.divf %523, %524 : vector<2x32xf32>
    %526 = arith.mulf %517, %468 : vector<2x32xf32>
    %527 = arith.mulf %511, %519 : vector<2x32xf32>
    %528 = arith.addf %526, %527 : vector<2x32xf32>
    %529 = math.tanh %528 : vector<2x32xf32>
    %530 = arith.mulf %525, %529 : vector<2x32xf32>
    %c6_126 = arith.constant 6 : index
    %c0_127 = arith.constant 0 : index
    %531 = vector.load %arg21[%c6_126, %c0_127] : memref<8x64xf32, #tpu.memory_space<vmem>>, vector<2x32xf32>
    tpu.vector_store %arg21[%c6_126, %c0_127], %505 {strides = array<i32>} : memref<8x64xf32, #tpu.memory_space<vmem>>, vector<2x32xf32>,
    %c0_128 = arith.constant 0 : index
    %c32_129 = arith.constant 32 : index
    %532 = vector.load %arg21[%c0_128, %c32_129] : memref<8x64xf32, #tpu.memory_space<vmem>>, vector<2x32xf32>
    tpu.vector_store %arg21[%c0_128, %c32_129], %530 {strides = array<i32>} : memref<8x64xf32, #tpu.memory_space<vmem>>, vector<2x32xf32>,
    %c0_130 = arith.constant 0 : index
    %c0_131 = arith.constant 0 : index
    %533 = vector.load %arg21[%c0_130, %c0_131] : memref<8x64xf32, #tpu.memory_space<vmem>>, vector<8x64xf32>
    %cst_132 = arith.constant dense<0.000000e+00> : vector<8xf32>
    %534 = vector.multi_reduction <add>, %533, %cst_132 [1] : vector<8x64xf32> to vector<8xf32>
    %535 = vector.shape_cast %534 : vector<8xf32> to vector<8x1xf32>
    %cst_133 = arith.constant 1.562500e-02 : f32
    %536 = vector.broadcast %cst_133 : f32 to vector<8x1xf32>
    %537 = arith.mulf %535, %536 : vector<8x1xf32>
    %538 = vector.broadcast %537 : vector<8x1xf32> to vector<8x64xf32>
    %539 = arith.subf %533, %538 : vector<8x64xf32>
    %540 = arith.mulf %539, %539 : vector<8x64xf32>
    %cst_134 = arith.constant dense<0.000000e+00> : vector<8xf32>
    %541 = vector.multi_reduction <add>, %540, %cst_134 [1] : vector<8x64xf32> to vector<8xf32>
    %542 = vector.shape_cast %541 : vector<8xf32> to vector<8x1xf32>
    %cst_135 = arith.constant 1.562500e-02 : f32
    %543 = vector.broadcast %cst_135 : f32 to vector<8x1xf32>
    %544 = arith.mulf %542, %543 : vector<8x1xf32>
    %cst_136 = arith.constant 9.99999974E-6 : f32
    %545 = vector.broadcast %cst_136 : f32 to vector<8x1xf32>
    %546 = arith.addf %544, %545 : vector<8x1xf32>
    %547 = math.rsqrt %546 : vector<8x1xf32>
    %548 = vector.broadcast %547 : vector<8x1xf32> to vector<8x64xf32>
    %549 = arith.mulf %539, %548 : vector<8x64xf32>
    %c0_137 = arith.constant 0 : index
    %c0_138 = arith.constant 0 : index
    %550 = vector.load %arg13[%c0_137, %c0_138] : memref<1x64xf32, #tpu.memory_space<vmem>>, vector<1x64xf32>
    %551 = vector.broadcast %550 : vector<1x64xf32> to vector<8x64xf32>
    %552 = arith.mulf %549, %551 : vector<8x64xf32>
    %c0_139 = arith.constant 0 : index
    %c0_140 = arith.constant 0 : index
    %553 = vector.load %arg14[%c0_139, %c0_140] : memref<1x64xf32, #tpu.memory_space<vmem>>, vector<1x64xf32>
    %554 = vector.broadcast %553 : vector<1x64xf32> to vector<8x64xf32>
    %555 = arith.addf %552, %554 : vector<8x64xf32>
    %c0_141 = arith.constant 0 : index
    %c0_142 = arith.constant 0 : index
    %556 = vector.load %arg16[%c0_141, %c0_142] : memref<64x164xf32, #tpu.memory_space<vmem>>, vector<64x164xf32>
    %cst_143 = arith.constant dense<0.000000e+00> : vector<8x164xf32>
    %557 = tpu.matmul %555, %556, %cst_143 {dimension_numbers = #tpu.dot_dimension_numbers<[1], [0], [0], [1], [0, 0, 1, 1], [], []>} : vector<8x64xf32>, vector<64x164xf32>, vector<8x164xf32> -> vector<8x164xf32>
    %558 = vector.extract_strided_slice %557 {offsets = [0, 160], sizes = [8, 4], strides = [1, 1]} : vector<8x164xf32> to vector<8x4xf32>
    %c0_144 = arith.constant 0 : index
    %c0_145 = arith.constant 0 : index
    %559 = vector.load %arg15[%c0_144, %c0_145] : memref<1x4xf32, #tpu.memory_space<vmem>>, vector<1x4xf32>
    %560 = vector.broadcast %559 : vector<1x4xf32> to vector<8x4xf32>
    %561 = arith.addf %558, %560 : vector<8x4xf32>
    %562 = vector.extract_strided_slice %561 {offsets = [0, 0], sizes = [2, 4], strides = [1, 1]} : vector<8x4xf32> to vector<2x4xf32>
    %563 = vector.extract_strided_slice %561 {offsets = [2, 0], sizes = [2, 4], strides = [1, 1]} : vector<8x4xf32> to vector<2x4xf32>
    %564 = arith.maximumf %562, %563 : vector<2x4xf32>
    %565 = vector.extract_strided_slice %561 {offsets = [4, 0], sizes = [2, 4], strides = [1, 1]} : vector<8x4xf32> to vector<2x4xf32>
    %566 = arith.maximumf %564, %565 : vector<2x4xf32>
    %567 = vector.extract_strided_slice %561 {offsets = [6, 0], sizes = [2, 4], strides = [1, 1]} : vector<8x4xf32> to vector<2x4xf32>
    %568 = arith.maximumf %566, %567 : vector<2x4xf32>
    %569 = tpu.concatenate %568, %568, %568, %568 in 0 : vector<2x4xf32>, vector<2x4xf32>, vector<2x4xf32>, vector<2x4xf32> -> vector<8x4xf32>
    %570 = arith.subf %561, %569 : vector<8x4xf32>
    %571 = math.exp %570 : vector<8x4xf32>
    %572 = vector.extract_strided_slice %571 {offsets = [0, 0], sizes = [2, 4], strides = [1, 1]} : vector<8x4xf32> to vector<2x4xf32>
    %573 = vector.extract_strided_slice %571 {offsets = [2, 0], sizes = [2, 4], strides = [1, 1]} : vector<8x4xf32> to vector<2x4xf32>
    %574 = arith.addf %572, %573 : vector<2x4xf32>
    %575 = vector.extract_strided_slice %571 {offsets = [4, 0], sizes = [2, 4], strides = [1, 1]} : vector<8x4xf32> to vector<2x4xf32>
    %576 = arith.addf %574, %575 : vector<2x4xf32>
    %577 = vector.extract_strided_slice %571 {offsets = [6, 0], sizes = [2, 4], strides = [1, 1]} : vector<8x4xf32> to vector<2x4xf32>
    %578 = arith.addf %576, %577 : vector<2x4xf32>
    %579 = tpu.concatenate %578, %578, %578, %578 in 0 : vector<2x4xf32>, vector<2x4xf32>, vector<2x4xf32>, vector<2x4xf32> -> vector<8x4xf32>
    %580 = arith.divf %571, %579 : vector<8x4xf32>
    %581 = vector.extract_strided_slice %557 {offsets = [0, 128], sizes = [8, 32], strides = [1, 1]} : vector<8x164xf32> to vector<8x32xf32>
    %582 = vector.extract_strided_slice %580 {offsets = [0, 0], sizes = [8, 1], strides = [1, 1]} : vector<8x4xf32> to vector<8x1xf32>
    %583 = vector.extract_strided_slice %557 {offsets = [0, 0], sizes = [8, 32], strides = [1, 1]} : vector<8x164xf32> to vector<8x32xf32>
    %584 = vector.broadcast %582 : vector<8x1xf32> to vector<8x32xf32>
    %585 = arith.mulf %584, %583 : vector<8x32xf32>
    %586 = arith.addf %581, %585 : vector<8x32xf32>
    %587 = vector.extract_strided_slice %580 {offsets = [0, 1], sizes = [8, 1], strides = [1, 1]} : vector<8x4xf32> to vector<8x1xf32>
    %588 = vector.extract_strided_slice %557 {offsets = [0, 32], sizes = [8, 32], strides = [1, 1]} : vector<8x164xf32> to vector<8x32xf32>
    %589 = vector.broadcast %587 : vector<8x1xf32> to vector<8x32xf32>
    %590 = arith.mulf %589, %588 : vector<8x32xf32>
    %591 = arith.addf %586, %590 : vector<8x32xf32>
    %592 = vector.extract_strided_slice %580 {offsets = [0, 2], sizes = [8, 1], strides = [1, 1]} : vector<8x4xf32> to vector<8x1xf32>
    %593 = vector.extract_strided_slice %557 {offsets = [0, 64], sizes = [8, 32], strides = [1, 1]} : vector<8x164xf32> to vector<8x32xf32>
    %594 = vector.broadcast %592 : vector<8x1xf32> to vector<8x32xf32>
    %595 = arith.mulf %594, %593 : vector<8x32xf32>
    %596 = arith.addf %591, %595 : vector<8x32xf32>
    %597 = vector.extract_strided_slice %580 {offsets = [0, 3], sizes = [8, 1], strides = [1, 1]} : vector<8x4xf32> to vector<8x1xf32>
    %598 = vector.extract_strided_slice %557 {offsets = [0, 96], sizes = [8, 32], strides = [1, 1]} : vector<8x164xf32> to vector<8x32xf32>
    %599 = vector.broadcast %597 : vector<8x1xf32> to vector<8x32xf32>
    %600 = arith.mulf %599, %598 : vector<8x32xf32>
    %601 = arith.addf %596, %600 : vector<8x32xf32>
    %602 = vector.extract_strided_slice %601 {offsets = [0, 0], sizes = [2, 32], strides = [1, 1]} : vector<8x32xf32> to vector<2x32xf32>
    %603 = vector.extract_strided_slice %601 {offsets = [2, 0], sizes = [2, 32], strides = [1, 1]} : vector<8x32xf32> to vector<2x32xf32>
    %604 = arith.addf %602, %603 : vector<2x32xf32>
    %605 = vector.extract_strided_slice %601 {offsets = [4, 0], sizes = [2, 32], strides = [1, 1]} : vector<8x32xf32> to vector<2x32xf32>
    %606 = arith.addf %604, %605 : vector<2x32xf32>
    %607 = vector.extract_strided_slice %601 {offsets = [6, 0], sizes = [2, 32], strides = [1, 1]} : vector<8x32xf32> to vector<2x32xf32>
    %608 = arith.addf %606, %607 : vector<2x32xf32>
    %c0_146 = arith.constant 0 : index
    %c0_147 = arith.constant 0 : index
    %609 = vector.load %arg17[%c0_146, %c0_147] : memref<1x32xf32, #tpu.memory_space<vmem>>, vector<1x32xf32>
    %610 = vector.broadcast %609 : vector<1x32xf32> to vector<2x32xf32>
    %611 = arith.addf %608, %610 : vector<2x32xf32>
    %c0_148 = arith.constant 0 : index
    %c0_149 = arith.constant 0 : index
    %612 = vector.load %arg18[%c0_148, %c0_149] : memref<2x32xf32, #tpu.memory_space<vmem>>, vector<2x32xf32>
    tpu.vector_store %arg18[%c0_148, %c0_149], %611 {strides = array<i32>} : memref<2x32xf32, #tpu.memory_space<vmem>>, vector<2x32xf32>,
    return
  }
}

</mosaic_0001>

<bundles_post_ra>
// kernel: crnn_attn_forward.1
= control target key start
LH: loop header
LB: loop body
LE: loop exit
PB: predicated region body
PF: predicated region fallthrough
CT: control target
= control target key end

     0   :  { %s4481_s0 = inlined_call_operand.vmem [shape: f32[2,256], index: 0, kind: input, shape index: {}]   ;;  %s4482_s1 = inlined_call_operand.hbm [shape: bf16[256,1024], index: 1, kind: input, shape index: {}]   ;;  %s4483_s2 = inlined_call_operand.vmem [shape: f32[1,1024], index: 2, kind: input, shape index: {}]   ;;  %s4484_s3 = inlined_call_operand.hbm [shape: bf16[256,512], index: 3, kind: input, shape index: {}]   ;;  %s4485_s4 = inlined_call_operand.vmem [shape: f32[1,512], index: 4, kind: input, shape index: {}]   ;;  %s4486_s5 = inlined_call_operand.hbm [shape: bf16[128,256], index: 5, kind: input, shape index: {}]   ;;  %s4487_s6 = inlined_call_operand.vmem [shape: f32[1,256], index: 6, kind: input, shape index: {}]   ;;  %s4488_s7 = inlined_call_operand.hbm [shape: f32[64,256], index: 7, kind: input, shape index: {}]   ;;  %s4489_s8 = inlined_call_operand.hbm [shape: f32[64,256], index: 8, kind: input, shape index: {}]   ;;  %s4490_s9 = inlined_call_operand.vmem [shape: f32[1,256], index: 9, kind: input, shape index: {}]   ;;  %s4491_s10 = inlined_call_operand.hbm [shape: f32[64,256], index: 10, kind: input, shape index: {}]   ;;  %s4492_s11 = inlined_call_operand.hbm [shape: f32[64,256], index: 11, kind: input, shape index: {}]   ;;  %s4493_s12 = inlined_call_operand.vmem [shape: f32[1,256], index: 12, kind: input, shape index: {}]   ;;  %s4494_s13 = inlined_call_operand.vmem [shape: f32[1,64], index: 13, kind: input, shape index: {}]   ;;  %s4495_s14 = inlined_call_operand.vmem [shape: f32[1,64], index: 14, kind: input, shape index: {}]   ;;  %s4496_s15 = inlined_call_operand.vmem [shape: f32[1,4], index: 15, kind: input, shape index: {}]   ;;  %s4497_s16 = inlined_call_operand.hbm [shape: f32[64,164], index: 16, kind: input, shape index: {}]   ;;  %s4498_s17 = inlined_call_operand.vmem [shape: f32[1,32], index: 17, kind: input, shape index: {}]   ;;  %s4499_s18 = inlined_call_operand.hbm [shape: f32[2,32], index: 18, kind: output, shape index: {}]  }
   0x1   :  { %4500 = sst [smem:[#allocation26_spill]] %s4481_s0 }
   0x2   :  { %4501 = sst [smem:[#allocation27_spill]] %s4482_s1 }
   0x3   :  { %4502 = sst [smem:[#allocation28_spill]] %s4483_s2 }
   0x4   :  { %23 = vsyncpa [#allocation6], 0 }
   0x5   :  { %24 = vsyncpa [#allocation9], 0 }
   0x6   :  { %25 = vsyncpa [#allocation12], 0 }
   0x7   :  { %26 = vsyncpa [#allocation15], 0 }
   0x8   :  { %27 = vsyncpa [#allocation18], 0 }
   0x9   :  { %28 = vsyncpa [#allocation7], 0  ;;  %s4006_s27 = smov [#allocation8]  }
   0xa   :  { %s50_s28 = sshll.u32 %s4006_s27, 4  ;;  %s51_s28 = int_to_ptr.vmem [resolvable:$true] %s50_s28 }
   0xb   :  { %s3822_s29 = scalar_lea.vmem %s51_s28, 8192  ;;  %p3827_p1 = scmp.lt.s32.totalorder %s51_s28, %s51_s28 }
   0xc   :  { %p3823_p0 = scmp.ne.s32.totalorder %s51_s28, %s3822_s29  ;;  %p3828_p2 = scmp.lt.s32.totalorder %s3822_s29, %s3822_s29 }
   0xe   :  { %p3829_p3 = por %p3828_p2, %p3827_p1 }
  0x10   :  { %p3830_p4 = pnand %p3829_p3, %p3823_p0 }
  0x12   :  { %3833 = shalt.err (!%p3830_p4)
}
  0x13   :  { %s4007_s30 = smov 256   ;;  %s4008_s0 = smov 16  }
  0x14   :  { %56 = dma.hbm_to_vmem [thread:$0]  %s4484_s3, 8192, %s51_s28, [#allocation9], %s4007_s30, %s4007_s30, %s4008_s0  }
  0x15   :  { %s4009_s20 = smov [#allocation11]   ;;  %s4010_s22 = smov [#allocation14]  }
  0x16   :  { %s78_s21 = sshll.u32 %s4009_s20, 4  ;;  %s104_s2 = sshll.u32 %s4010_s22, 4  ;;  %s79_s21 = int_to_ptr.vmem [resolvable:$true] %s78_s21  ;;  %s105_s2 = int_to_ptr.vmem [resolvable:$true] %s104_s2 }
  0x17   :  { %s3842_s23 = scalar_lea.vmem %s79_s21, 2048  ;;  %p3847_p6 = scmp.lt.s32.totalorder %s79_s21, %s79_s21 }
  0x18   :  { %p3843_p5 = scmp.ne.s32.totalorder %s79_s21, %s3842_s23  ;;  %p3848_p7 = scmp.lt.s32.totalorder %s3842_s23, %s3842_s23 }
  0x1a   :  { %p3849_p8 = por %p3848_p7, %p3847_p6 }
  0x1c   :  { %p3850_p9 = pnand %p3849_p8, %p3843_p5 }
  0x1e   :  { %3853 = shalt.err (!%p3850_p9)
}
  0x1f   :  { %84 = dma.hbm_to_vmem [thread:$0]  %s4488_s7, 2048, %s79_s21, [#allocation12], %s4007_s30, %s4007_s30, %s4008_s0  }
  0x20   :  { %s3862_s3 = scalar_lea.vmem %s105_s2, 2048  ;;  %p3867_p11 = scmp.lt.s32.totalorder %s105_s2, %s105_s2 }
  0x21   :  { %p3863_p10 = scmp.ne.s32.totalorder %s105_s2, %s3862_s3  ;;  %p3868_p12 = scmp.lt.s32.totalorder %s3862_s3, %s3862_s3 }
  0x23   :  { %p3869_p13 = por %p3868_p12, %p3867_p11 }
  0x25   :  { %p3870_p0 = pnand %p3869_p13, %p3863_p10 }
  0x27   :  { %3873 = shalt.err (!%p3870_p0)
}
  0x28   :  { %110 = dma.hbm_to_vmem [thread:$0]  %s4491_s10, 2048, %s105_s2, [#allocation15], %s4007_s30, %s4007_s30, %s4008_s0  }
  0x29   :  { %s4011_s28 = smov [#allocation5]  }
  0x2a   :  { %s36_s29 = sshll.u32 %s4011_s28, 4  ;;  %s37_s29 = int_to_ptr.vmem [resolvable:$true] %s36_s29 }
  0x2b   :  { %s3882_s19 = scalar_lea.vmem %s37_s29, 16384  ;;  %p3887_p2 = scmp.lt.s32.totalorder %s37_s29, %s37_s29 }
  0x2c   :  { %p3883_p1 = scmp.ne.s32.totalorder %s37_s29, %s3882_s19  ;;  %p3888_p3 = scmp.lt.s32.totalorder %s3882_s19, %s3882_s19 }
  0x2e   :  { %p3889_p4 = por %p3888_p3, %p3887_p2 }
  0x30   :  { %p3890_p5 = pnand %p3889_p4, %p3883_p1 }
  0x32   :  { %3893 = shalt.err (!%p3890_p5)
}
  0x33   :  { %s4012_s7 = smov 512   ;;  %s4013_s1 = smov 32  }
  0x34   :  { %s4503_s22 = sld [smem:[#allocation27_spill]]  ;;  %s4014_s23 = smov [#allocation10]  }
  0x35   :  { %s64_s24 = sshll.u32 %s4014_s23, 4  ;;  %s65_s24 = int_to_ptr.vmem [resolvable:$true] %s64_s24 }
  0x36   :  { %s3902_s10 = scalar_lea.vmem %s65_s24, 2048  ;;  %p3907_p7 = scmp.lt.s32.totalorder %s65_s24, %s65_s24 }
  0x37   :  { %p3903_p6 = scmp.ne.s32.totalorder %s65_s24, %s3902_s10  ;;  %p3908_p8 = scmp.lt.s32.totalorder %s3902_s10, %s3902_s10 }
  0x39   :  { %p3909_p9 = por %p3908_p8, %p3907_p7 }
  0x3a   :  { %42 = dma.hbm_to_vmem [thread:$0]  %s4503_s22, 16384, %s37_s29, [#allocation6], %s4012_s7, %s4012_s7, %s4013_s1  }
  0x3b   :  { %p3910_p10 = pnand %p3909_p9, %p3903_p6 }
  0x3d   :  { %3913 = shalt.err (!%p3910_p10)
}
  0x3e   :  { %s4015_s2 = smov 128   ;;  %s4016_s25 = smov 8  }
  0x3f   :  { %70 = dma.hbm_to_vmem [thread:$0]  %s4486_s5, 2048, %s65_s24, [#allocation9], %s4015_s2, %s4015_s2, %s4016_s25  }
  0x40   :  { %s4017_s27 = smov [#allocation13]   ;;  %s4018_s29 = smov [#allocation16]  }
  0x41   :  { %s90_s28 = sshll.u32 %s4017_s27, 4  ;;  %s116_s19 = sshll.u32 %s4018_s29, 4  ;;  %s91_s28 = int_to_ptr.vmem [resolvable:$true] %s90_s28  ;;  %s117_s19 = int_to_ptr.vmem [resolvable:$true] %s116_s19 }
  0x42   :  { %s3922_s7 = scalar_lea.vmem %s91_s28, 2048  ;;  %p3927_p12 = scmp.lt.s32.totalorder %s91_s28, %s91_s28 }
  0x43   :  { %p3923_p11 = scmp.ne.s32.totalorder %s91_s28, %s3922_s7  ;;  %p3928_p13 = scmp.lt.s32.totalorder %s3922_s7, %s3922_s7 }
  0x45   :  { %p3929_p0 = por %p3928_p13, %p3927_p12 }
  0x47   :  { %p3930_p1 = pnand %p3929_p0, %p3923_p11 }
  0x49   :  { %3933 = shalt.err (!%p3930_p1)
}
  0x4a   :  { %96 = dma.hbm_to_vmem [thread:$0]  %s4489_s8, 2048, %s91_s28, [#allocation12], %s4007_s30, %s4007_s30, %s4008_s0  }
  0x4b   :  { %s3942_s5 = scalar_lea.vmem %s117_s19, 2048  ;;  %p3947_p3 = scmp.lt.s32.totalorder %s117_s19, %s117_s19 }
  0x4c   :  { %p3943_p2 = scmp.ne.s32.totalorder %s117_s19, %s3942_s5  ;;  %p3948_p4 = scmp.lt.s32.totalorder %s3942_s5, %s3942_s5 }
  0x4e   :  { %p3949_p5 = por %p3948_p4, %p3947_p3 }
  0x50   :  { %p3950_p6 = pnand %p3949_p5, %p3943_p2 }
  0x52   :  { %3953 = shalt.err (!%p3950_p6)
}
  0x53   :  { %122 = dma.hbm_to_vmem [thread:$0]  %s4492_s11, 2048, %s117_s19, [#allocation15], %s4007_s30, %s4007_s30, %s4008_s0  }
  0x54   :  { %s4019_s24 = smov [#allocation17]  }
  0x55   :  { %s136_s10 = sshll.u32 %s4019_s24, 4  ;;  %s137_s10 = int_to_ptr.vmem [resolvable:$true] %s136_s10 }
  0x56   :  { %s3962_s2 = scalar_lea.vmem %s137_s10, 2048  ;;  %p3967_p8 = scmp.lt.s32.totalorder %s137_s10, %s137_s10 }
  0x57   :  { %p3963_p7 = scmp.ne.s32.totalorder %s137_s10, %s3962_s2  ;;  %p3968_p9 = scmp.lt.s32.totalorder %s3962_s2, %s3962_s2 }
  0x59   :  { %p3969_p10 = por %p3968_p9, %p3967_p8 }
  0x5b   :  { %p3970_p11 = pnand %p3969_p10, %p3963_p7 }
  0x5d   :  { %3973 = shalt.err (!%p3970_p11)
}
  0x5e   :  { %142 = dma.hbm_to_vmem [thread:$0]  %s4497_s16, 2048, %s137_s10, [#allocation18], %s4007_s30, %s4007_s30, %s4008_s0  }
  0x5f   :  { %3994 = dma.done.wait [#allocation6], 16384  }
  0x60   :  { %3995 = vsyncadd [#allocation6], 4294950912 }
  0x61   :  { %3996 = dma.done.wait [#allocation9], 10240  }
  0x62   :  { %3997 = vsyncadd [#allocation9], 4294957056 }
  0x63   :  { %3998 = dma.done.wait [#allocation12], 4096  }
  0x64   :  { %3999 = vsyncadd [#allocation12], 4294963200 }
  0x65   :  { %4000 = dma.done.wait [#allocation15], 4096  }
  0x66   :  { %4001 = vsyncadd [#allocation15], 4294963200 }
  0x67   :  { %4002 = dma.done.wait [#allocation18], 2048  }
  0x68   :  { %4003 = vsyncadd [#allocation18], 4294965248  ;;  %v240_v0 = vld [vmem:[#allocation5 + $0x1c0] sm:$0xff]  ;;  %v241_v2 = vld [vmem:[#allocation5 + $0x1c8] sm:$0xff]  ;;  %s4504_s30 = sld [smem:[#allocation26_spill]]  ;;  %vm1821_vm0 = vcmask 517120  }
  0x69   :  { %v244_v1 = vld [vmem:[#allocation5 + $0x1e0] sm:$0xff]  ;;  %v245_v4 = vld [vmem:[#allocation5 + $0x1e8] sm:$0xff]  ;;  %s4505_s26 = sld [smem:[#allocation28_spill]]  ;;  %vm1863_vm1 = vcmask 523264   ;;  %vm2011_vm2 = vcmask 261120   ;;  %vm2013_vm3 = vcmask 254976  }
  0x6a   :  { %v3352_v3 = vcombine.high %v240_v0, %v244_v1  ;;  %v3351_v5 = vcombine.low %v240_v0, %v244_v1  ;;  %v232_v6 = vld [vmem:[#allocation5 + $0x180] sm:$0xff]  ;;  %v3354_v8 = vcombine.high %v241_v2, %v245_v4  ;;  %v3353_v9 = vcombine.low %v241_v2, %v245_v4  ;;  %v233_v11 = vld [vmem:[#allocation5 + $0x188] sm:$0xff]  ;;  %s4028_s10 = smov [#allocation19]  }
  0x6b   :  { %v236_v7 = vld [vmem:[#allocation5 + $0x1a0] sm:$0xff]  ;;  %v237_v12 = vld [vmem:[#allocation5 + $0x1a8] sm:$0xff]  ;;  %vm2163_vm4 = vcmask 517376   ;;  %vm2018_vm5 = vcmask 523526   ;;  %vm3188_vm6 = vcmask 1041408   ;;  %vm3190_vm7 = vcmask 1043456  }
  0x6c   :  { %v3344_v10 = vcombine.high %v232_v6, %v236_v7  ;;  %v224_v13 = vld [vmem:[#allocation5 + $0x140] sm:$0xff]  ;;  %994 = vmatprep.subr.bf16.mxu0 %v3352_v3  ;;  %v3346_v14 = vcombine.high %v233_v11, %v237_v12  ;;  %v225_v16 = vld [vmem:[#allocation5 + $0x148] sm:$0xff]  ;;  %1035 = vmatprep.subr.bf16.mxu1 %v3354_v8  ;;  %v3343_v18 = vcombine.low %v232_v6, %v236_v7  ;;  %vm3192_vm8 = vcmask 1045504  }
  0x6d   :  { %v228_v15 = vld [vmem:[#allocation5 + $0x160] sm:$0xff]  ;;  %v229_v17 = vld [vmem:[#allocation5 + $0x168] sm:$0xff]  ;;  %995 = vmatpush1.bf16.msra.mxu0 %v3351_v5  ;;  %1036 = vmatpush1.bf16.msra.mxu1 %v3353_v9  ;;  %v3345_v19 = vcombine.low %v233_v11, %v237_v12 }
  0x6e   :  { %996 = vmatprep.subr.bf16.mxu0 %v3344_v10  ;;  %v3336_v20 = vcombine.high %v224_v13, %v228_v15  ;;  %1037 = vmatprep.subr.bf16.mxu1 %v3346_v14  ;;  %v3338_v21 = vcombine.high %v225_v16, %v229_v17  ;;  %v216_v22 = vld [vmem:[#allocation5 + $0x100] sm:$0xff]  ;;  %v217_v24 = vld [vmem:[#allocation5 + $0x108] sm:$0xff]  ;;  %v3335_v26 = vcombine.low %v224_v13, %v228_v15 }
  0x6f   :  { %v220_v23 = vld [vmem:[#allocation5 + $0x120] sm:$0xff]  ;;  %v221_v25 = vld [vmem:[#allocation5 + $0x128] sm:$0xff]  ;;  %v3337_v27 = vcombine.low %v225_v16, %v229_v17 }
  0x70   :  { %v3328_v28 = vcombine.high %v216_v22, %v220_v23  ;;  %v3330_v29 = vcombine.high %v217_v24, %v221_v25  ;;  %v208_v30 = vld [vmem:[#allocation5 + $0xc0] sm:$0xff]  ;;  %v209_v32 = vld [vmem:[#allocation5 + $0xc8] sm:$0xff]  ;;  %v3327_v34 = vcombine.low %v216_v22, %v220_v23  ;;  %v3329_v35 = vcombine.low %v217_v24, %v221_v25 }
  0x71   :  { %997 = vmatpush1.bf16.msra.mxu0 %v3343_v18  ;;  %1038 = vmatpush1.bf16.msra.mxu1 %v3345_v19  ;;  %v212_v31 = vld [vmem:[#allocation5 + $0xe0] sm:$0xff]  ;;  %v213_v33 = vld [vmem:[#allocation5 + $0xe8] sm:$0xff] }
  0x72   :  { %998 = vmatprep.subr.bf16.mxu0 %v3336_v20  ;;  %1039 = vmatprep.subr.bf16.mxu1 %v3338_v21  ;;  %v3320_v36 = vcombine.high %v208_v30, %v212_v31  ;;  %v3322_v37 = vcombine.high %v209_v32, %v213_v33  ;;  %v200_v38 = vld [vmem:[#allocation5 + $0x80] sm:$0xff]  ;;  %v201_v40 = vld [vmem:[#allocation5 + $0x88] sm:$0xff]  ;;  %v3319_v42 = vcombine.low %v208_v30, %v212_v31 }
  0x73   :  { %v204_v39 = vld [vmem:[#allocation5 + $0xa0] sm:$0xff]  ;;  %v205_v41 = vld [vmem:[#allocation5 + $0xa8] sm:$0xff]  ;;  %v3321_v43 = vcombine.low %v209_v32, %v213_v33 }
  0x74   :  { %v3312_v44 = vcombine.high %v200_v38, %v204_v39  ;;  %v3314_v45 = vcombine.high %v201_v40, %v205_v41  ;;  %v192_v46 = vld [vmem:[#allocation5 + $0x40] sm:$0xff]  ;;  %v193_v48 = vld [vmem:[#allocation5 + $0x48] sm:$0xff]  ;;  %v3311_v50 = vcombine.low %v200_v38, %v204_v39  ;;  %v3313_v51 = vcombine.low %v201_v40, %v205_v41 }
  0x75   :  { %999 = vmatpush1.bf16.msra.mxu0 %v3335_v26  ;;  %1040 = vmatpush1.bf16.msra.mxu1 %v3337_v27  ;;  %v196_v47 = vld [vmem:[#allocation5 + $0x60] sm:$0xff]  ;;  %v197_v49 = vld [vmem:[#allocation5 + $0x68] sm:$0xff] }
  0x76   :  { %1000 = vmatprep.subr.bf16.mxu0 %v3328_v28  ;;  %1041 = vmatprep.subr.bf16.mxu1 %v3330_v29  ;;  %v3304_v52 = vcombine.high %v192_v46, %v196_v47  ;;  %v4170_v53 = vld.sshfl [vmem:[%s4504_s30] sm:$0x33 pattern:$0x76325410]  ;;  %v3306_v54 = vcombine.high %v193_v48, %v197_v49  ;;  %v184_v55 = vld [vmem:[#allocation5] sm:$0xff]  ;;  %v3303_v60 = vcombine.low %v192_v46, %v196_v47 }
  0x77   :  { %v188_v56 = vld [vmem:[#allocation5 + $0x20] sm:$0xff]  ;;  %v179_v57 = vcombine.high %v4170_v53, %v4170_v53  ;;  %v185_v58 = vld [vmem:[#allocation5 + $0x8] sm:$0xff]  ;;  %v3305_v62 = vcombine.low %v193_v48, %v197_v49 }
  0x78   :  { %v189_v59 = vld [vmem:[#allocation5 + $0x28] sm:$0xff]  ;;  %v3296_v63 = vcombine.high %v184_v55, %v188_v56  ;;  %v304_v1 = vld [vmem:[#allocation5 + $0x3c0] sm:$0xff]  ;;  %v3295_v5 = vcombine.low %v184_v55, %v188_v56 }
  0x79   :  { %1001 = vmatpush1.bf16.msra.mxu0 %v3327_v34  ;;  %1042 = vmatpush1.bf16.msra.mxu1 %v3329_v35  ;;  %v4174_v61 = vpack.c.bf16 %v179_v57, %v179_v57  ;;  %v3298_v0 = vcombine.high %v185_v58, %v189_v59  ;;  %v308_v2 = vld [vmem:[#allocation5 + $0x3e0] sm:$0xff]  ;;  %v305_v3 = vld [vmem:[#allocation5 + $0x3c8] sm:$0xff]  ;;  %v3297_v6 = vcombine.low %v185_v58, %v189_v59 }
  0x7a   :  { %1002 = vmatprep.subr.bf16.mxu0 %v3320_v36  ;;  %1043 = vmatprep.subr.bf16.mxu1 %v3322_v37  ;;  %v309_v4 = vld [vmem:[#allocation5 + $0x3e8] sm:$0xff]  ;;  %v3416_v7 = vcombine.high %v304_v1, %v308_v2  ;;  %v296_v9 = vld [vmem:[#allocation5 + $0x380] sm:$0xff]  ;;  %v3415_v13 = vcombine.low %v304_v1, %v308_v2  ;;  %v246_v1 = vld [vmem:[#allocation5 + $0x1f0] sm:$0xff] }
  0x7b   :  { %1026 = vmatprep.mubr.bf16.mxu0 %v4174_v61  ;;  %1067 = vmatprep.mubr.bf16.mxu1 %v4174_v61  ;;  %v3418_v8 = vcombine.high %v305_v3, %v309_v4  ;;  %v300_v10 = vld [vmem:[#allocation5 + $0x3a0] sm:$0xff]  ;;  %v297_v11 = vld [vmem:[#allocation5 + $0x388] sm:$0xff]  ;;  %v3417_v14 = vcombine.low %v305_v3, %v309_v4  ;;  %v243_v4 = vld [vmem:[#allocation5 + $0x1d8] sm:$0xff] }
  0x7c   :  { %v301_v12 = vld [vmem:[#allocation5 + $0x3a8] sm:$0xff]  ;;  %v3408_v15 = vcombine.high %v296_v9, %v300_v10  ;;  %v288_v17 = vld [vmem:[#allocation5 + $0x340] sm:$0xff]  ;;  %v3407_v21 = vcombine.low %v296_v9, %v300_v10  ;;  %v238_v9 = vld [vmem:[#allocation5 + $0x1b0] sm:$0xff] }
  0x7d   :  { %1003 = vmatpush1.bf16.msra.mxu0 %v3319_v42  ;;  %1044 = vmatpush1.bf16.msra.mxu1 %v3321_v43  ;;  %v3410_v16 = vcombine.high %v297_v11, %v301_v12  ;;  %v292_v18 = vld [vmem:[#allocation5 + $0x360] sm:$0xff]  ;;  %v289_v19 = vld [vmem:[#allocation5 + $0x348] sm:$0xff]  ;;  %v3409_v22 = vcombine.low %v297_v11, %v301_v12  ;;  %v235_v12 = vld [vmem:[#allocation5 + $0x198] sm:$0xff] }
  0x7e   :  { %1004 = vmatprep.subr.bf16.mxu0 %v3312_v44  ;;  %1045 = vmatprep.subr.bf16.mxu1 %v3314_v45  ;;  %v293_v20 = vld [vmem:[#allocation5 + $0x368] sm:$0xff]  ;;  %v3400_v23 = vcombine.high %v288_v17, %v292_v18  ;;  %v280_v25 = vld [vmem:[#allocation5 + $0x300] sm:$0xff]  ;;  %v3399_v29 = vcombine.low %v288_v17, %v292_v18  ;;  %v226_v17 = vld [vmem:[#allocation5 + $0x150] sm:$0xff] }
  0x7f   :  { %v3402_v24 = vcombine.high %v289_v19, %v293_v20  ;;  %v284_v26 = vld [vmem:[#allocation5 + $0x320] sm:$0xff]  ;;  %v281_v27 = vld [vmem:[#allocation5 + $0x308] sm:$0xff]  ;;  %v3401_v30 = vcombine.low %v289_v19, %v293_v20  ;;  %v230_v18 = vld [vmem:[#allocation5 + $0x170] sm:$0xff] }
  0x80   :  { %v285_v28 = vld [vmem:[#allocation5 + $0x328] sm:$0xff]  ;;  %v3392_v31 = vcombine.high %v280_v25, %v284_v26  ;;  %v272_v33 = vld [vmem:[#allocation5 + $0x2c0] sm:$0xff]  ;;  %v3391_v37 = vcombine.low %v280_v25, %v284_v26  ;;  %v3340_v25 = vcombine.high %v226_v17, %v230_v18 }
  0x81   :  { %1005 = vmatpush1.bf16.msra.mxu0 %v3311_v50  ;;  %1046 = vmatpush1.bf16.msra.mxu1 %v3313_v51  ;;  %v3394_v32 = vcombine.high %v281_v27, %v285_v28  ;;  %v276_v34 = vld [vmem:[#allocation5 + $0x2e0] sm:$0xff]  ;;  %v273_v35 = vld [vmem:[#allocation5 + $0x2c8] sm:$0xff]  ;;  %v3393_v40 = vcombine.low %v281_v27, %v285_v28  ;;  %v218_v27 = vld [vmem:[#allocation5 + $0x110] sm:$0xff] }
  0x82   :  { %1006 = vmatprep.subr.bf16.mxu0 %v3304_v52  ;;  %1047 = vmatprep.subr.bf16.mxu1 %v3306_v54  ;;  %v277_v36 = vld [vmem:[#allocation5 + $0x2e8] sm:$0xff]  ;;  %v264_v38 = vld [vmem:[#allocation5 + $0x280] sm:$0xff]  ;;  %v3384_v41 = vcombine.high %v272_v33, %v276_v34  ;;  %v3383_v45 = vcombine.low %v272_v33, %v276_v34  ;;  %v222_v28 = vld [vmem:[#allocation5 + $0x130] sm:$0xff] }
  0x83   :  { %v268_v39 = vld [vmem:[#allocation5 + $0x2a0] sm:$0xff]  ;;  %v265_v42 = vld [vmem:[#allocation5 + $0x288] sm:$0xff]  ;;  %v3386_v44 = vcombine.high %v273_v35, %v277_v36  ;;  %v3385_v48 = vcombine.low %v273_v35, %v277_v36  ;;  %v3332_v33 = vcombine.high %v218_v27, %v222_v28  ;;  %v210_v35 = vld [vmem:[#allocation5 + $0xd0] sm:$0xff] }
  0x84   :  { %v269_v43 = vld [vmem:[#allocation5 + $0x2a8] sm:$0xff]  ;;  %v256_v46 = vld [vmem:[#allocation5 + $0x240] sm:$0xff]  ;;  %v3376_v49 = vcombine.high %v264_v38, %v268_v39  ;;  %v3375_v54 = vcombine.low %v264_v38, %v268_v39  ;;  %v214_v36 = vld [vmem:[#allocation5 + $0xf0] sm:$0xff]  ;;  %v3331_v39 = vcombine.low %v218_v27, %v222_v28 }
  0x85   :  { %1007 = vmatpush1.bf16.msra.mxu0 %v3303_v60  ;;  %1048 = vmatpush1.bf16.msra.mxu1 %v3305_v62  ;;  %v260_v47 = vld [vmem:[#allocation5 + $0x260] sm:$0xff]  ;;  %v257_v50 = vld [vmem:[#allocation5 + $0x248] sm:$0xff]  ;;  %v3378_v52 = vcombine.high %v265_v42, %v269_v43  ;;  %v3377_v57 = vcombine.low %v265_v42, %v269_v43  ;;  %v215_v38 = vld [vmem:[#allocation5 + $0xf8] sm:$0xff] }
  0x86   :  { %1008 = vmatprep.subr.bf16.mxu0 %v3296_v63  ;;  %1049 = vmatprep.subr.bf16.mxu1 %v3298_v0  ;;  %v261_v51 = vld [vmem:[#allocation5 + $0x268] sm:$0xff]  ;;  %v248_v55 = vld [vmem:[#allocation5 + $0x200] sm:$0xff]  ;;  %v3368_v58 = vcombine.high %v256_v46, %v260_v47  ;;  %v3367_v63 = vcombine.low %v256_v46, %v260_v47  ;;  %v242_v0 = vld [vmem:[#allocation5 + $0x1d0] sm:$0xff]  ;;  %v3323_v46 = vcombine.low %v210_v35, %v214_v36 }
  0x87   :  { %v252_v56 = vld [vmem:[#allocation5 + $0x220] sm:$0xff]  ;;  %v249_v59 = vld [vmem:[#allocation5 + $0x208] sm:$0xff]  ;;  %v3370_v62 = vcombine.high %v257_v50, %v261_v51  ;;  %v3369_v2 = vcombine.low %v257_v50, %v261_v51  ;;  %v3356_v11 = vcombine.high %v242_v0, %v246_v1  ;;  %v202_v42 = vld [vmem:[#allocation5 + $0x90] sm:$0xff] }
  0x88   :  { %v253_v60 = vld [vmem:[#allocation5 + $0x228] sm:$0xff]  ;;  %v3360_v3 = vcombine.high %v248_v55, %v252_v56  ;;  %v206_v43 = vld [vmem:[#allocation5 + $0xb0] sm:$0xff] }
  0x89   :  { %1009 = vmatpush1.bf16.msra.mxu0 %v3295_v5  ;;  %1050 = vmatpush1.bf16.msra.mxu1 %v3297_v6  ;;  %v247_v5 = vld [vmem:[#allocation5 + $0x1f8] sm:$0xff]  ;;  %v3362_v6 = vcombine.high %v249_v59, %v253_v60  ;;  %v3361_v10 = vcombine.low %v249_v59, %v253_v60  ;;  %v194_v50 = vld [vmem:[#allocation5 + $0x50] sm:$0xff] }
  0x8a   :  { %1010 = vmatprep.subr.bf16.mxu0 %v3416_v7  ;;  %1051 = vmatprep.subr.bf16.mxu1 %v3418_v8  ;;  %v3359_v7 = vcombine.low %v248_v55, %v252_v56  ;;  %v234_v8 = vld [vmem:[#allocation5 + $0x190] sm:$0xff]  ;;  %v3357_v19 = vcombine.low %v243_v4, %v247_v5  ;;  %v3315_v55 = vcombine.low %v202_v42, %v206_v43 }
  0x8b   :  { %v3348_v20 = vcombine.high %v234_v8, %v238_v9  ;;  %v198_v51 = vld [vmem:[#allocation5 + $0x70] sm:$0xff] }
  0x8c   :  { %v186_v59 = vld [vmem:[#allocation5 + $0x10] sm:$0xff] }
  0x8d   :  { %1011 = vmatpush2.bf16.msra.mxu0 %v3415_v13  ;;  %1052 = vmatpush2.bf16.msra.mxu1 %v3417_v14  ;;  %v239_v13 = vld [vmem:[#allocation5 + $0x1b8] sm:$0xff]  ;;  %v3358_v14 = vcombine.high %v243_v4, %v247_v5  ;;  %v190_v60 = vld [vmem:[#allocation5 + $0x30] sm:$0xff] }
  0x8e   :  { %1012 = vmatprep.subr.bf16.mxu0 %v3408_v15  ;;  %1053 = vmatprep.subr.bf16.mxu1 %v3410_v16  ;;  %v4180_v15 = vpack.c.bf16 %v4170_v53, %v4170_v53  ;;  %v3355_v16 = vcombine.low %v242_v0, %v246_v1  ;;  %v3349_v53 = vcombine.low %v235_v12, %v239_v13  ;;  %v306_v4 = vld [vmem:[#allocation5 + $0x3d0] sm:$0xff] }
  0x8f   :  { %v3307_v0 = vcombine.low %v194_v50, %v198_v51  ;;  %v310_v5 = vld [vmem:[#allocation5 + $0x3f0] sm:$0xff] }
  0x90   :  { %v282_v28 = vld [vmem:[#allocation5 + $0x310] sm:$0xff] }
  0x91   :  { %1013 = vmatpush2.bf16.msra.mxu0 %v3407_v21  ;;  %1054 = vmatpush2.bf16.msra.mxu1 %v3409_v22  ;;  %v227_v21 = vld [vmem:[#allocation5 + $0x158] sm:$0xff] }
  0x92   :  { %1014 = vmatprep.subr.bf16.mxu0 %v3400_v23  ;;  %1055 = vmatprep.subr.bf16.mxu1 %v3402_v24  ;;  %v231_v22 = vld [vmem:[#allocation5 + $0x178] sm:$0xff]  ;;  %v3350_v23 = vcombine.high %v235_v12, %v239_v13  ;;  %v3347_v24 = vcombine.low %v234_v8, %v238_v9  ;;  %v3299_v8 = vcombine.low %v186_v59, %v190_v60  ;;  %v298_v12 = vld [vmem:[#allocation5 + $0x390] sm:$0xff] }
  0x93   :  { %v3342_v26 = vcombine.high %v227_v21, %v231_v22  ;;  %v302_v13 = vld [vmem:[#allocation5 + $0x3b0] sm:$0xff] }
  0x95   :  { %1015 = vmatpush2.bf16.msra.mxu0 %v3399_v29  ;;  %1056 = vmatpush2.bf16.msra.mxu1 %v3401_v30  ;;  %v219_v29 = vld [vmem:[#allocation5 + $0x118] sm:$0xff] }
  0x96   :  { %1016 = vmatprep.subr.bf16.mxu0 %v3392_v31  ;;  %1057 = vmatprep.subr.bf16.mxu1 %v3394_v32  ;;  %v223_v30 = vld [vmem:[#allocation5 + $0x138] sm:$0xff]  ;;  %v3339_v31 = vcombine.low %v226_v17, %v230_v18  ;;  %v3341_v32 = vcombine.low %v227_v21, %v231_v22  ;;  %v3419_v17 = vcombine.low %v306_v4, %v310_v5  ;;  %v290_v21 = vld [vmem:[#allocation5 + $0x350] sm:$0xff] }
  0x97   :  { %v3334_v34 = vcombine.high %v219_v29, %v223_v30  ;;  %v294_v22 = vld [vmem:[#allocation5 + $0x370] sm:$0xff] }
  0x99   :  { %1017 = vmatpush2.bf16.msra.mxu0 %v3391_v37  ;;  %1058 = vmatpush2.bf16.msra.mxu1 %v3393_v40  ;;  %v211_v37 = vld [vmem:[#allocation5 + $0xd8] sm:$0xff]  ;;  %v3333_v40 = vcombine.low %v219_v29, %v223_v30  ;;  %v286_v29 = vld [vmem:[#allocation5 + $0x330] sm:$0xff] }
  0x9a   :  { %1018 = vmatprep.subr.bf16.mxu0 %v3384_v41  ;;  %1059 = vmatprep.subr.bf16.mxu1 %v3386_v44  ;;  %v3324_v41 = vcombine.high %v210_v35, %v214_v36  ;;  %v203_v44 = vld [vmem:[#allocation5 + $0x98] sm:$0xff]  ;;  %v3325_v47 = vcombine.low %v211_v37, %v215_v38  ;;  %v274_v36 = vld [vmem:[#allocation5 + $0x2d0] sm:$0xff] }
  0x9b   :  { %v283_v30 = vld [vmem:[#allocation5 + $0x318] sm:$0xff] }
  0x9d   :  { %1019 = vmatpush2.bf16.msra.mxu0 %v3383_v45  ;;  %1060 = vmatpush2.bf16.msra.mxu1 %v3385_v48  ;;  %v207_v45 = vld [vmem:[#allocation5 + $0xb8] sm:$0xff]  ;;  %v3316_v48 = vcombine.high %v202_v42, %v206_v43  ;;  %v266_v43 = vld [vmem:[#allocation5 + $0x290] sm:$0xff] }
  0x9e   :  { %1020 = vmatprep.subr.bf16.mxu0 %v3376_v49  ;;  %1061 = vmatprep.subr.bf16.mxu1 %v3378_v52  ;;  %v3318_v49 = vcombine.high %v203_v44, %v207_v45  ;;  %v195_v52 = vld [vmem:[#allocation5 + $0x58] sm:$0xff]  ;;  %v3317_v56 = vcombine.low %v203_v44, %v207_v45  ;;  %v270_v44 = vld [vmem:[#allocation5 + $0x2b0] sm:$0xff] }
  0x9f   :  { %v267_v45 = vld [vmem:[#allocation5 + $0x298] sm:$0xff] }
  0xa1   :  { %1021 = vmatpush2.bf16.msra.mxu0 %v3375_v54  ;;  %1062 = vmatpush2.bf16.msra.mxu1 %v3377_v57  ;;  %v199_v54 = vld [vmem:[#allocation5 + $0x78] sm:$0xff]  ;;  %v3308_v57 = vcombine.high %v194_v50, %v198_v51  ;;  %v258_v51 = vld [vmem:[#allocation5 + $0x250] sm:$0xff] }
  0xa2   :  { %1022 = vmatprep.subr.bf16.mxu0 %v3368_v58  ;;  %1063 = vmatprep.subr.bf16.mxu1 %v3370_v62  ;;  %v3310_v58 = vcombine.high %v195_v52, %v199_v54  ;;  %v187_v62 = vld [vmem:[#allocation5 + $0x18] sm:$0xff]  ;;  %v3309_v1 = vcombine.low %v195_v52, %v199_v54  ;;  %v262_v52 = vld [vmem:[#allocation5 + $0x270] sm:$0xff] }
  0xa3   :  { %v259_v54 = vld [vmem:[#allocation5 + $0x258] sm:$0xff] }
  0xa5   :  { %1023 = vmatpush2.bf16.msra.mxu0 %v3367_v63  ;;  %1064 = vmatpush2.bf16.msra.mxu1 %v3369_v2  ;;  %v191_v63 = vld [vmem:[#allocation5 + $0x38] sm:$0xff]  ;;  %v3300_v2 = vcombine.high %v186_v59, %v190_v60  ;;  %v250_v60 = vld [vmem:[#allocation5 + $0x210] sm:$0xff] }
  0xa6   :  { %1024 = vmatprep.subr.bf16.mxu0 %v3360_v3  ;;  %1065 = vmatprep.subr.bf16.mxu1 %v3362_v6  ;;  %v3302_v3 = vcombine.high %v187_v62, %v191_v63  ;;  %v307_v6 = vld [vmem:[#allocation5 + $0x3d8] sm:$0xff]  ;;  %v3301_v9 = vcombine.low %v187_v62, %v191_v63  ;;  %v254_v62 = vld [vmem:[#allocation5 + $0x230] sm:$0xff] }
  0xa7   :  { %v251_v63 = vld [vmem:[#allocation5 + $0x218] sm:$0xff] }
  0xa9   :  { %1025 = vmatpush2.bf16.msra.mxu0 %v3359_v7  ;;  %1066 = vmatpush2.bf16.msra.mxu1 %v3361_v10  ;;  %v311_v7 = vld [vmem:[#allocation5 + $0x3f8] sm:$0xff]  ;;  %v3420_v10 = vcombine.high %v306_v4, %v310_v5  ;;  %v3363_v5 = vcombine.low %v250_v60, %v254_v62 }
  0xaa   :  { %1076 = vmatprep.subr.bf16.mxu0 %v3356_v11  ;;  %1117 = vmatprep.subr.bf16.mxu1 %v3358_v14  ;;  %v3422_v11 = vcombine.high %v307_v6, %v311_v7  ;;  %v299_v14 = vld [vmem:[#allocation5 + $0x398] sm:$0xff]  ;;  %v3421_v18 = vcombine.low %v307_v6, %v311_v7  ;;  %v3560_v7 = vld [vmem:[#allocation8 + $0xe0] ss:$16 sps:$4 sm:$0xff]  }
  0xac   :  { %1027 = vmatmul.mubr.bf16.vlgmr.msra.gmra.mxu0 %v4180_v15  ;;  %1068 = vmatmul.mubr.bf16.vlgmr.msra.gmra.mxu1 %v4180_v15 }
  0xad   :  { %1077 = vmatpush1.bf16.msra.mxu0 %v3355_v16  ;;  %1118 = vmatpush1.bf16.msra.mxu1 %v3357_v19  ;;  %v303_v16 = vld [vmem:[#allocation5 + $0x3b8] sm:$0xff]  ;;  %v3412_v19 = vcombine.high %v298_v12, %v302_v13 }
  0xae   :  { %1078 = vmatprep.subr.bf16.mxu0 %v3348_v20  ;;  %1119 = vmatprep.subr.bf16.mxu1 %v3350_v23  ;;  %v3414_v20 = vcombine.high %v299_v14, %v303_v16  ;;  %v291_v23 = vld [vmem:[#allocation5 + $0x358] sm:$0xff] }
  0xaf   :  { %1108 = vmatprep.mubr.bf16.mxu0 %v4174_v61  ;;  %1149 = vmatprep.mubr.bf16.mxu1 %v4174_v61  ;;  %v3326_v61 = vcombine.high %v211_v37, %v215_v38  ;;  %v278_v37 = vld [vmem:[#allocation5 + $0x2f0] sm:$0xff]  ;;  %v275_v38 = vld [vmem:[#allocation5 + $0x2d8] sm:$0xff] }
  0xb1   :  { %1079 = vmatpush1.bf16.msra.mxu0 %v3347_v24  ;;  %1120 = vmatpush1.bf16.msra.mxu1 %v3349_v53  ;;  %v295_v24 = vld [vmem:[#allocation5 + $0x378] sm:$0xff]  ;;  %v3411_v53 = vcombine.low %v298_v12, %v302_v13  ;;  %v3566_v13 = vld [vmem:[#allocation8 + $0xc0] ss:$16 sps:$4 sm:$0xff]  }
  0xb2   :  { %1080 = vmatprep.subr.bf16.mxu0 %v3340_v25  ;;  %1121 = vmatprep.subr.bf16.mxu1 %v3342_v26  ;;  %v3413_v25 = vcombine.low %v299_v14, %v303_v16  ;;  %v3404_v26 = vcombine.high %v290_v21, %v294_v22  ;;  %v3406_v27 = vcombine.high %v291_v23, %v295_v24  ;;  %v3571_v12 = vld [vmem:[#allocation8 + $0xcc] ss:$16 sps:$4 sm:$0xff]   ;;  %v3569_v14 = vld [vmem:[#allocation8 + $0xc8] ss:$16 sps:$4 sm:$0xff]   ;;  %v3574_v16 = vld [vmem:[#allocation8 + $0xa4] ss:$16 sps:$4 sm:$0xff]  }
  0xb5   :  { %1081 = vmatpush1.bf16.msra.mxu0 %v3339_v31  ;;  %1122 = vmatpush1.bf16.msra.mxu1 %v3341_v32  ;;  %v287_v31 = vld [vmem:[#allocation5 + $0x338] sm:$0xff]  ;;  %v3403_v32 = vcombine.low %v290_v21, %v294_v22  ;;  %v3578_v21 = vld [vmem:[#allocation8 + $0x80] ss:$16 sps:$4 sm:$0xff]  }
  0xb6   :  { %1082 = vmatprep.subr.bf16.mxu0 %v3332_v33  ;;  %1123 = vmatprep.subr.bf16.mxu1 %v3334_v34  ;;  %v3405_v33 = vcombine.low %v291_v23, %v295_v24  ;;  %v3396_v34 = vcombine.high %v282_v28, %v286_v29  ;;  %v3398_v35 = vcombine.high %v283_v30, %v287_v31  ;;  %v3581_v22 = vld [vmem:[#allocation8 + $0x88] ss:$16 sps:$4 sm:$0xff]   ;;  %v3586_v23 = vld [vmem:[#allocation8 + $0x64] ss:$16 sps:$4 sm:$0xff]   ;;  %v3589_v24 = vld [vmem:[#allocation8 + $0x6c] ss:$16 sps:$4 sm:$0xff]  }
  0xb9   :  { %1083 = vmatpush1.bf16.msra.mxu0 %v3331_v39  ;;  %1124 = vmatpush1.bf16.msra.mxu1 %v3333_v40  ;;  %v279_v39 = vld [vmem:[#allocation5 + $0x2f8] sm:$0xff]  ;;  %v3395_v40 = vcombine.low %v282_v28, %v286_v29  ;;  %v3590_v28 = vld [vmem:[#allocation8 + $0x40] ss:$16 sps:$4 sm:$0xff]  }
  0xba   :  { %1084 = vmatprep.subr.bf16.mxu0 %v3324_v41  ;;  %1125 = vmatprep.subr.bf16.mxu1 %v3326_v61  ;;  %v3397_v41 = vcombine.low %v283_v30, %v287_v31  ;;  %v3388_v61 = vcombine.high %v274_v36, %v278_v37  ;;  %v3390_v42 = vcombine.high %v275_v38, %v279_v39  ;;  %v3593_v29 = vld [vmem:[#allocation8 + $0x48] ss:$16 sps:$4 sm:$0xff]   ;;  %v3598_v30 = vld [vmem:[#allocation8 + $0x24] ss:$16 sps:$4 sm:$0xff]   ;;  %v3601_v31 = vld [vmem:[#allocation8 + $0x2c] ss:$16 sps:$4 sm:$0xff]  }
  0xbd   :  { %1085 = vmatpush1.bf16.msra.mxu0 %v3323_v46  ;;  %1126 = vmatpush1.bf16.msra.mxu1 %v3325_v47  ;;  %v271_v46 = vld [vmem:[#allocation5 + $0x2b8] sm:$0xff]  ;;  %v3387_v47 = vcombine.low %v274_v36, %v278_v37  ;;  %v3602_v36 = vld [vmem:[#allocation8] ss:$16 sps:$4 sm:$0xff]  }
  0xbe   :  { %1086 = vmatprep.subr.bf16.mxu0 %v3316_v48  ;;  %1127 = vmatprep.subr.bf16.mxu1 %v3318_v49  ;;  %v3389_v48 = vcombine.low %v275_v38, %v279_v39  ;;  %v3380_v49 = vcombine.high %v266_v43, %v270_v44  ;;  %v3382_v50 = vcombine.high %v267_v45, %v271_v46  ;;  %v3605_v37 = vld [vmem:[#allocation8 + $0x8] ss:$16 sps:$4 sm:$0xff]   ;;  %v3610_v38 = vld [vmem:[#allocation8 + $0x1e4] ss:$16 sps:$4 sm:$0xff]   ;;  %v3613_v39 = vld [vmem:[#allocation8 + $0x1ec] ss:$16 sps:$4 sm:$0xff]  }
  0xc1   :  { %1087 = vmatpush1.bf16.msra.mxu0 %v3315_v55  ;;  %1128 = vmatpush1.bf16.msra.mxu1 %v3317_v56  ;;  %v263_v55 = vld [vmem:[#allocation5 + $0x278] sm:$0xff]  ;;  %v3379_v56 = vcombine.low %v266_v43, %v270_v44  ;;  %v3614_v43 = vld [vmem:[#allocation8 + $0x1c0] ss:$16 sps:$4 sm:$0xff]  }
  0xc2   :  { %1088 = vmatprep.subr.bf16.mxu0 %v3308_v57  ;;  %1129 = vmatprep.subr.bf16.mxu1 %v3310_v58  ;;  %v3381_v57 = vcombine.low %v267_v45, %v271_v46  ;;  %v3372_v58 = vcombine.high %v258_v51, %v262_v52  ;;  %v3374_v59 = vcombine.high %v259_v54, %v263_v55  ;;  %v3617_v44 = vld [vmem:[#allocation8 + $0x1c8] ss:$16 sps:$4 sm:$0xff]   ;;  %v3622_v45 = vld [vmem:[#allocation8 + $0x1a4] ss:$16 sps:$4 sm:$0xff]   ;;  %v3625_v46 = vld [vmem:[#allocation8 + $0x1ac] ss:$16 sps:$4 sm:$0xff]  }
  0xc5   :  { %1089 = vmatpush1.bf16.msra.mxu0 %v3307_v0  ;;  %1130 = vmatpush1.bf16.msra.mxu1 %v3309_v1  ;;  %v255_v0 = vld [vmem:[#allocation5 + $0x238] sm:$0xff]  ;;  %v3371_v1 = vcombine.low %v258_v51, %v262_v52  ;;  %v3626_v51 = vld [vmem:[#allocation8 + $0x180] ss:$16 sps:$4 sm:$0xff]  }
  0xc6   :  { %1090 = vmatprep.subr.bf16.mxu0 %v3300_v2  ;;  %1131 = vmatprep.subr.bf16.mxu1 %v3302_v3  ;;  %v3373_v2 = vcombine.low %v259_v54, %v263_v55  ;;  %v3364_v3 = vcombine.high %v250_v60, %v254_v62  ;;  %v3366_v4 = vcombine.high %v251_v63, %v255_v0  ;;  %v3629_v52 = vld [vmem:[#allocation8 + $0x188] ss:$16 sps:$4 sm:$0xff]   ;;  %v3634_v54 = vld [vmem:[#allocation8 + $0x164] ss:$16 sps:$4 sm:$0xff]   ;;  %v3637_v55 = vld [vmem:[#allocation8 + $0x16c] ss:$16 sps:$4 sm:$0xff]  }
  0xc7   :  { %v3365_v6 = vcombine.low %v251_v63, %v255_v0  ;;  %v3638_v60 = vld [vmem:[#allocation8 + $0x140] ss:$16 sps:$4 sm:$0xff]   ;;  %v3641_v62 = vld [vmem:[#allocation8 + $0x148] ss:$16 sps:$4 sm:$0xff]   ;;  %v3646_v63 = vld [vmem:[#allocation8 + $0x124] ss:$16 sps:$4 sm:$0xff]  }
  0xc8   :  { %v3649_v0 = vld [vmem:[#allocation8 + $0x12c] ss:$16 sps:$4 sm:$0xff]  }
  0xc9   :  { %1091 = vmatpush1.bf16.msra.mxu0 %v3299_v8  ;;  %1132 = vmatpush1.bf16.msra.mxu1 %v3301_v9  ;;  %v3562_v8 = vld [vmem:[#allocation8 + $0xe4] ss:$16 sps:$4 sm:$0xff]   ;;  %v3563_v9 = vld [vmem:[#allocation8 + $0xe8] ss:$16 sps:$4 sm:$0xff]  }
  0xca   :  { %1092 = vmatprep.subr.bf16.mxu0 %v3420_v10  ;;  %1133 = vmatprep.subr.bf16.mxu1 %v3422_v11  ;;  %v3565_v10 = vld [vmem:[#allocation8 + $0xec] ss:$16 sps:$4 sm:$0xff]   ;;  %v3568_v11 = vld [vmem:[#allocation8 + $0xc4] ss:$16 sps:$4 sm:$0xff]  }
  0xcd   :  { %1093 = vmatpush2.bf16.msra.mxu0 %v3419_v17  ;;  %1134 = vmatpush2.bf16.msra.mxu1 %v3421_v18  ;;  %v3577_v17 = vld [vmem:[#allocation8 + $0xac] ss:$16 sps:$4 sm:$0xff]   ;;  %v3572_v18 = vld [vmem:[#allocation8 + $0xa0] ss:$16 sps:$4 sm:$0xff]  }
  0xce   :  { %1094 = vmatprep.subr.bf16.mxu0 %v3412_v19  ;;  %1135 = vmatprep.subr.bf16.mxu1 %v3414_v20  ;;  %v3580_v19 = vld [vmem:[#allocation8 + $0x84] ss:$16 sps:$4 sm:$0xff]   ;;  %v3583_v20 = vld [vmem:[#allocation8 + $0x8c] ss:$16 sps:$4 sm:$0xff]  }
  0xd1   :  { %1095 = vmatpush2.bf16.msra.mxu0 %v3411_v53  ;;  %1136 = vmatpush2.bf16.msra.mxu1 %v3413_v25  ;;  %v3584_v53 = vld [vmem:[#allocation8 + $0x60] ss:$16 sps:$4 sm:$0xff]   ;;  %v3587_v25 = vld [vmem:[#allocation8 + $0x68] ss:$16 sps:$4 sm:$0xff]  }
  0xd2   :  { %1096 = vmatprep.subr.bf16.mxu0 %v3404_v26  ;;  %1137 = vmatprep.subr.bf16.mxu1 %v3406_v27  ;;  %v3592_v26 = vld [vmem:[#allocation8 + $0x44] ss:$16 sps:$4 sm:$0xff]   ;;  %v3595_v27 = vld [vmem:[#allocation8 + $0x4c] ss:$16 sps:$4 sm:$0xff]  }
  0xd5   :  { %1097 = vmatpush2.bf16.msra.mxu0 %v3403_v32  ;;  %1138 = vmatpush2.bf16.msra.mxu1 %v3405_v33  ;;  %v3596_v32 = vld [vmem:[#allocation8 + $0x20] ss:$16 sps:$4 sm:$0xff]   ;;  %v3599_v33 = vld [vmem:[#allocation8 + $0x28] ss:$16 sps:$4 sm:$0xff]  }
  0xd6   :  { %1098 = vmatprep.subr.bf16.mxu0 %v3396_v34  ;;  %1139 = vmatprep.subr.bf16.mxu1 %v3398_v35  ;;  %v3604_v34 = vld [vmem:[#allocation8 + $0x4] ss:$16 sps:$4 sm:$0xff]   ;;  %v3607_v35 = vld [vmem:[#allocation8 + $0xc] ss:$16 sps:$4 sm:$0xff]  }
  0xd9   :  { %1099 = vmatpush2.bf16.msra.mxu0 %v3395_v40  ;;  %1140 = vmatpush2.bf16.msra.mxu1 %v3397_v41  ;;  %v3608_v40 = vld [vmem:[#allocation8 + $0x1e0] ss:$16 sps:$4 sm:$0xff]   ;;  %v3611_v41 = vld [vmem:[#allocation8 + $0x1e8] ss:$16 sps:$4 sm:$0xff]  }
  0xda   :  { %1100 = vmatprep.subr.bf16.mxu0 %v3388_v61  ;;  %1141 = vmatprep.subr.bf16.mxu1 %v3390_v42  ;;  %v3616_v61 = vld [vmem:[#allocation8 + $0x1c4] ss:$16 sps:$4 sm:$0xff]   ;;  %v3619_v42 = vld [vmem:[#allocation8 + $0x1cc] ss:$16 sps:$4 sm:$0xff]  }
  0xdd   :  { %1101 = vmatpush2.bf16.msra.mxu0 %v3387_v47  ;;  %1142 = vmatpush2.bf16.msra.mxu1 %v3389_v48  ;;  %v3620_v47 = vld [vmem:[#allocation8 + $0x1a0] ss:$16 sps:$4 sm:$0xff]   ;;  %v3623_v48 = vld [vmem:[#allocation8 + $0x1a8] ss:$16 sps:$4 sm:$0xff]  }
  0xde   :  { %1102 = vmatprep.subr.bf16.mxu0 %v3380_v49  ;;  %1143 = vmatprep.subr.bf16.mxu1 %v3382_v50  ;;  %v3628_v49 = vld [vmem:[#allocation8 + $0x184] ss:$16 sps:$4 sm:$0xff]   ;;  %v3631_v50 = vld [vmem:[#allocation8 + $0x18c] ss:$16 sps:$4 sm:$0xff]  }
  0xe1   :  { %1103 = vmatpush2.bf16.msra.mxu0 %v3379_v56  ;;  %1144 = vmatpush2.bf16.msra.mxu1 %v3381_v57  ;;  %v3632_v56 = vld [vmem:[#allocation8 + $0x160] ss:$16 sps:$4 sm:$0xff]   ;;  %v3635_v57 = vld [vmem:[#allocation8 + $0x168] ss:$16 sps:$4 sm:$0xff]  }
  0xe2   :  { %1104 = vmatprep.subr.bf16.mxu0 %v3372_v58  ;;  %1145 = vmatprep.subr.bf16.mxu1 %v3374_v59  ;;  %v3640_v58 = vld [vmem:[#allocation8 + $0x144] ss:$16 sps:$4 sm:$0xff]   ;;  %v3643_v59 = vld [vmem:[#allocation8 + $0x14c] ss:$16 sps:$4 sm:$0xff]  }
  0xe5   :  { %1105 = vmatpush2.bf16.msra.mxu0 %v3371_v1  ;;  %1146 = vmatpush2.bf16.msra.mxu1 %v3373_v2  ;;  %v3644_v1 = vld [vmem:[#allocation8 + $0x120] ss:$16 sps:$4 sm:$0xff]   ;;  %v3647_v2 = vld [vmem:[#allocation8 + $0x128] ss:$16 sps:$4 sm:$0xff]  }
  0xe6   :  { %1106 = vmatprep.subr.bf16.mxu0 %v3364_v3  ;;  %1147 = vmatprep.subr.bf16.mxu1 %v3366_v4  ;;  %v3652_v3 = vld [vmem:[#allocation8 + $0x104] ss:$16 sps:$4 sm:$0xff]   ;;  %v3655_v4 = vld [vmem:[#allocation8 + $0x10c] ss:$16 sps:$4 sm:$0xff]  }
  0xe9   :  { %1107 = vmatpush2.bf16.msra.mxu0 %v3363_v5  ;;  %1148 = vmatpush2.bf16.msra.mxu1 %v3365_v6  ;;  %v3650_v5 = vld [vmem:[#allocation8 + $0x100] ss:$16 sps:$4 sm:$0xff]   ;;  %v3653_v6 = vld [vmem:[#allocation8 + $0x108] ss:$16 sps:$4 sm:$0xff]  }
  0xea   :  { %1580 = vmatprep.subr.bf16.mxu0 %v3562_v8  ;;  %1621 = vmatprep.subr.bf16.mxu1 %v3565_v10  ;;  %v314_v8 = vlaneseq }
  0xec   :  { %1109 = vmatmul.mubr.bf16.vlgmr.msra.gmra.mxu0 %v4180_v15  ;;  %1150 = vmatmul.mubr.bf16.vlgmr.msra.gmra.mxu1 %v4180_v15  ;;  %v3575_v15 = vld [vmem:[#allocation8 + $0xa8] ss:$16 sps:$4 sm:$0xff]  }
  0xed   :  { %1581 = vmatpush1.bf16.msra.mxu0 %v3560_v7  ;;  %1622 = vmatpush1.bf16.msra.mxu1 %v3563_v9  ;;  %v3658_v7 = vld [vmem:[#allocation10 + $0x74] ss:$8 sps:$4 sm:$0xff]   ;;  %v4188_v9 = vshrl.u32 %v314_v8, 7  ;;  %v3667_v8 = vld [vmem:[#allocation10 + $0x44] ss:$8 sps:$4 sm:$0xff]  }
  0xee   :  { %1582 = vmatprep.subr.bf16.mxu0 %v3568_v11  ;;  %1623 = vmatprep.subr.bf16.mxu1 %v3571_v12  ;;  %v312_v11 = vld [vmem:[%s4505_s26] sm:$0xff] }
  0xef   :  { %v4191_v10 = vsub.s32 0, %v4188_v9  ;;  %v324_v12 = vsub.s32 2, %v4188_v9 }
  0xf1   :  { %1583 = vmatpush1.bf16.msra.mxu0 %v3566_v13  ;;  %1624 = vmatpush1.bf16.msra.mxu1 %v3569_v14  ;;  %v4198_v13 = vsub.s32 1, %v4188_v9  ;;  %v328_v14 = vsub.s32 3, %v4188_v9 }
  0xf2   :  { %1584 = vmatprep.subr.bf16.mxu0 %v3574_v16  ;;  %1625 = vmatprep.subr.bf16.mxu1 %v3577_v17  ;;  %v317_v16 = vrot.slane %v312_v11, %v4191_v10  ;;  %v325_v17 = vrot.slane %v312_v11, %v324_v12 }
  0xf5   :  { %1585 = vmatpush1.bf16.msra.mxu0 %v3572_v18  ;;  %1626 = vmatpush1.bf16.msra.mxu1 %v3575_v15  ;;  %v321_v18 = vrot.slane %v312_v11, %v4198_v13 }
  0xf6   :  { %1586 = vmatprep.subr.bf16.mxu0 %v3580_v19  ;;  %1627 = vmatprep.subr.bf16.mxu1 %v3583_v20  ;;  %v329_v19 = vrot.slane %v312_v11, %v328_v14 }
  0xf9   :  { %1587 = vmatpush1.bf16.msra.mxu0 %v3578_v21  ;;  %1628 = vmatpush1.bf16.msra.mxu1 %v3581_v22 }
  0xfa   :  { %1588 = vmatprep.subr.bf16.mxu0 %v3586_v23  ;;  %1629 = vmatprep.subr.bf16.mxu1 %v3589_v24 }
  0xfd   :  { %1589 = vmatpush1.bf16.msra.mxu0 %v3584_v53  ;;  %1630 = vmatpush1.bf16.msra.mxu1 %v3587_v25 }
  0xfe   :  { %1590 = vmatprep.subr.bf16.mxu0 %v3592_v26  ;;  %1631 = vmatprep.subr.bf16.mxu1 %v3595_v27 }
 0x101   :  { %1591 = vmatpush1.bf16.msra.mxu0 %v3590_v28  ;;  %1632 = vmatpush1.bf16.msra.mxu1 %v3593_v29 }
 0x102   :  { %1592 = vmatprep.subr.bf16.mxu0 %v3598_v30  ;;  %1633 = vmatprep.subr.bf16.mxu1 %v3601_v31 }
 0x105   :  { %1593 = vmatpush1.bf16.msra.mxu0 %v3596_v32  ;;  %1634 = vmatpush1.bf16.msra.mxu1 %v3599_v33 }
 0x106   :  { %1594 = vmatprep.subr.bf16.mxu0 %v3604_v34  ;;  %1635 = vmatprep.subr.bf16.mxu1 %v3607_v35 }
 0x109   :  { %1595 = vmatpush1.bf16.msra.mxu0 %v3602_v36  ;;  %1636 = vmatpush1.bf16.msra.mxu1 %v3605_v37  ;;  %v332_v36 = vsub.s32 4, %v4188_v9  ;;  %v340_v37 = vsub.s32 6, %v4188_v9 }
 0x10a   :  { %1596 = vmatprep.subr.bf16.mxu0 %v3610_v38  ;;  %1637 = vmatprep.subr.bf16.mxu1 %v3613_v39  ;;  %v336_v38 = vsub.s32 5, %v4188_v9  ;;  %v344_v39 = vsub.s32 7, %v4188_v9 }
 0x10d   :  { %1597 = vmatpush2.bf16.msra.mxu0 %v3608_v40  ;;  %1638 = vmatpush2.bf16.msra.mxu1 %v3611_v41  ;;  %v333_v40 = vrot.slane %v312_v11, %v332_v36  ;;  %v341_v41 = vrot.slane %v312_v11, %v340_v37 }
 0x10e   :  { %1598 = vmatprep.subr.bf16.mxu0 %v3616_v61  ;;  %1639 = vmatprep.subr.bf16.mxu1 %v3619_v42  ;;  %v337_v61 = vrot.slane %v312_v11, %v336_v38 }
 0x111   :  { %1599 = vmatpush2.bf16.msra.mxu0 %v3614_v43  ;;  %1640 = vmatpush2.bf16.msra.mxu1 %v3617_v44  ;;  %v345_v43 = vrot.slane %v312_v11, %v344_v39  ;;  %v3665_v11 = vld [vmem:[#allocation10 + $0x40] ss:$8 sps:$4 sm:$0xff]  }
 0x112   :  { %1600 = vmatprep.subr.bf16.mxu0 %v3622_v45  ;;  %1641 = vmatprep.subr.bf16.mxu1 %v3625_v46 }
 0x115   :  { %1601 = vmatpush2.bf16.msra.mxu0 %v3620_v47  ;;  %1642 = vmatpush2.bf16.msra.mxu1 %v3623_v48 }
 0x116   :  { %1602 = vmatprep.subr.bf16.mxu0 %v3628_v49  ;;  %1643 = vmatprep.subr.bf16.mxu1 %v3631_v50 }
 0x119   :  { %1603 = vmatpush2.bf16.msra.mxu0 %v3626_v51  ;;  %1644 = vmatpush2.bf16.msra.mxu1 %v3629_v52 }
 0x11a   :  { %1604 = vmatprep.subr.bf16.mxu0 %v3634_v54  ;;  %1645 = vmatprep.subr.bf16.mxu1 %v3637_v55 }
 0x11d   :  { %1605 = vmatpush2.bf16.msra.mxu0 %v3632_v56  ;;  %1646 = vmatpush2.bf16.msra.mxu1 %v3635_v57 }
 0x11e   :  { %1606 = vmatprep.subr.bf16.mxu0 %v3640_v58  ;;  %1647 = vmatprep.subr.bf16.mxu1 %v3643_v59 }
 0x121   :  { %1607 = vmatpush2.bf16.msra.mxu0 %v3638_v60  ;;  %1648 = vmatpush2.bf16.msra.mxu1 %v3641_v62 }
 0x122   :  { %1608 = vmatprep.subr.bf16.mxu0 %v3646_v63  ;;  %1649 = vmatprep.subr.bf16.mxu1 %v3649_v0 }
 0x125   :  { %1609 = vmatpush2.bf16.msra.mxu0 %v3644_v1  ;;  %1650 = vmatpush2.bf16.msra.mxu1 %v3647_v2  ;;  %v3656_v2 = vld [vmem:[#allocation10 + $0x70] ss:$8 sps:$4 sm:$0xff]  }
 0x126   :  { %1610 = vmatprep.subr.bf16.mxu0 %v3652_v3  ;;  %1651 = vmatprep.subr.bf16.mxu1 %v3655_v4  ;;  %v3661_v4 = vld [vmem:[#allocation10 + $0x64] ss:$8 sps:$4 sm:$0xff]  }
 0x129   :  { %1611 = vmatpush2.bf16.msra.mxu0 %v3650_v5  ;;  %1652 = vmatpush2.bf16.msra.mxu1 %v3653_v6  ;;  %v3659_v5 = vld [vmem:[#allocation10 + $0x60] ss:$8 sps:$4 sm:$0xff]   ;;  %v3664_v6 = vld [vmem:[#allocation10 + $0x54] ss:$8 sps:$4 sm:$0xff]  }
 0x12a   :  { %1778 = vmatprep.subr.bf16.mxu0 %v3658_v7  ;;  %v3662_v7 = vld [vmem:[#allocation10 + $0x50] ss:$8 sps:$4 sm:$0xff]  }
 0x16c   :  { %v1028_v15 = vpop.f32.mrf.mxu0  ;;  %v1069_v21 = vpop.f32.mrf.mxu1 }
 0x16d   :  { %v1029_v20 = vadd.f32 %v1028_v15, %v317_v16  ;;  %v1070_v22 = vadd.f32 %v1069_v21, %v325_v17  ;;  %v3670_v16 = vld [vmem:[#allocation10 + $0x34] ss:$8 sps:$4 sm:$0xff]   ;;  %v3668_v17 = vld [vmem:[#allocation10 + $0x30] ss:$8 sps:$4 sm:$0xff]   ;;  %v3671_v15 = vld [vmem:[#allocation10 + $0x20] ss:$8 sps:$4 sm:$0xff]  }
 0x16e   :  { %v1030_v23 = vpop.f32.mrf.mxu0  ;;  %v1071_v25 = vpop.f32.mrf.mxu1  ;;  %v3679_v21 = vld [vmem:[#allocation10 + $0x4] ss:$8 sps:$4 sm:$0xff]  }
 0x16f   :  { %v1158_v24 = vmax.f32 %v1029_v20, 0.0  ;;  %v1031_v53 = vadd.f32 %v1030_v23, %v321_v18  ;;  %v1160_v26 = vmax.f32 %v1070_v22, 0.0  ;;  %v1072_v27 = vadd.f32 %v1071_v25, %v329_v19  ;;  %v3673_v18 = vld [vmem:[#allocation10 + $0x24] ss:$8 sps:$4 sm:$0xff]   ;;  %v3676_v19 = vld [vmem:[#allocation10 + $0x14] ss:$8 sps:$4 sm:$0xff]  }
 0x170   :  { %v1032_v28 = vpop.f32.mrf.mxu0  ;;  %v1073_v30 = vpop.f32.mrf.mxu1  ;;  %v3674_v20 = vld [vmem:[#allocation10 + $0x10] ss:$8 sps:$4 sm:$0xff]   ;;  %v3677_v22 = vld [vmem:[#allocation10] ss:$8 sps:$4 sm:$0xff]   ;;  %v4020_v23 = vmov 0  }
 0x171   :  { %v1159_v29 = vmax.f32 %v1031_v53, 0.0  ;;  %v1166_v31 = vmax.f32 %v1158_v24, %v1160_v26  ;;  %v1161_v32 = vmax.f32 %v1072_v27, 0.0  ;;  %v1238_v24 = vld [vmem:[%s4485_s4] sm:$0xf] }
 0x172   :  { %v1033_v33 = vpop.f32.mrf.mxu0  ;;  %v1074_v34 = vpop.f32.mrf.mxu1  ;;  %v1243_v53 = vrot.slane %v1238_v24, %v4191_v10  ;;  %v1251_v25 = vrot.slane %v1238_v24, %v324_v12  ;;  %v1247_v26 = vrot.slane %v1238_v24, %v4198_v13  ;;  %v1255_v27 = vrot.slane %v1238_v24, %v328_v14 }
 0x173   :  { %v1167_v35 = vmax.f32 %v1159_v29, %v1161_v32 }
 0x1ac   :  { %v1110_v42 = vpop.f32.mrf.mxu0  ;;  %v1151_v45 = vpop.f32.mrf.mxu1 }
 0x1ad   :  { %v1111_v44 = vadd.f32 %v1110_v42, %v333_v40  ;;  %v1152_v46 = vadd.f32 %v1151_v45, %v341_v41  ;;  %v1849_v45 = vld [vmem:[#allocation11 + $0x70] sm:$0xff] }
 0x1ae   :  { %v1112_v47 = vpop.f32.mrf.mxu0  ;;  %v1153_v50 = vpop.f32.mrf.mxu1 }
 0x1af   :  { %v1162_v48 = vmax.f32 %v1111_v44, 0.0  ;;  %v1113_v49 = vadd.f32 %v1112_v47, %v337_v61  ;;  %v1164_v51 = vmax.f32 %v1152_v46, 0.0  ;;  %v1154_v52 = vadd.f32 %v1153_v50, %v345_v43  ;;  %v1850_v44 = vld [vmem:[#allocation11 + $0x78] sm:$0xff]  ;;  %v1848_v46 = vld [vmem:[#allocation11 + $0x68] sm:$0xff]  ;;  %v1847_v47 = vld [vmem:[#allocation11 + $0x60] sm:$0xff] }
 0x1b0   :  { %v1114_v54 = vpop.f32.mrf.mxu0  ;;  %v1155_v56 = vpop.f32.mrf.mxu1  ;;  %1883 = vmatprep.subr.mxu1 %v1850_v44  ;;  %v1844_v50 = vld [vmem:[#allocation11 + $0x48] sm:$0xff]  ;;  %v4273_v44 = vld [vmem:[#allocation13 + $0x58] sm:$0xff] }
 0x1b1   :  { %v1163_v55 = vmax.f32 %v1113_v49, 0.0  ;;  %v1168_v57 = vmax.f32 %v1162_v48, %v1164_v51  ;;  %v1165_v58 = vmax.f32 %v1154_v52, 0.0  ;;  %v1846_v48 = vld [vmem:[#allocation11 + $0x58] sm:$0xff]  ;;  %v1845_v49 = vld [vmem:[#allocation11 + $0x50] sm:$0xff]  ;;  %v1843_v51 = vld [vmem:[#allocation11 + $0x40] sm:$0xff] }
 0x1b2   :  { %v1115_v59 = vpop.f32.mrf.mxu0  ;;  %v1156_v60 = vpop.f32.mrf.mxu1  ;;  %v1686_v52 = vld [vmem:[%s4487_s6] sm:$0x3]  ;;  %v1842_v54 = vld [vmem:[#allocation11 + $0x38] sm:$0xff]  ;;  %s4022_s6 = smov 64  }
 0x1b3   :  { %v1169_v62 = vmax.f32 %v1163_v55, %v1165_v58  ;;  %v1170_v63 = vmax.f32 %v1166_v31, %v1168_v57  ;;  %v1841_v55 = vld [vmem:[#allocation11 + $0x30] sm:$0xff]  ;;  %v1840_v56 = vld [vmem:[#allocation11 + $0x28] sm:$0xff]  ;;  %v1839_v57 = vld [vmem:[#allocation11 + $0x20] sm:$0xff]  ;;  %v1691_v58 = vrot.slane %v1686_v52, %v4191_v10  ;;  %v4021_v60 = vmov 0.0  }
 0x1b4   :  { %v1838_v59 = vld [vmem:[#allocation11 + $0x18] sm:$0xff] }
 0x1b5   :  { %v1171_v0 = vmax.f32 %v1167_v35, %v1169_v62  ;;  %v1172_v3 = vpack.c.bf16 %v1170_v63, %v1170_v63  ;;  %v1837_v62 = vld [vmem:[#allocation11 + $0x10] sm:$0xff]  ;;  %v1695_v63 = vrot.slane %v1686_v52, %v4198_v13  ;;  %v1942_v52 = vld [vmem:[#allocation13 + $0x20] sm:$0xff] }
 0x1b7   :  { %v1173_v1 = vpack.c.bf16 %v1171_v0, %v1171_v0  ;;  %v1836_v0 = vld [vmem:[#allocation11 + $0x8] sm:$0xff] }
 0x1b9   :  { %1612 = vmatprep.mubr.bf16.mxu0 %v1173_v1  ;;  %1653 = vmatprep.mubr.bf16.mxu1 %v1173_v1 }
 0x1ba   :  { %1613 = vmatmul.mubr.bf16.vlgmr.msra.gmra.mxu0 %v1172_v3  ;;  %1654 = vmatmul.mubr.bf16.vlgmr.msra.gmra.mxu1 %v1172_v3 }
 0x1bb   :  { %1779 = vmatpush1.bf16.msra.mxu0 %v3656_v2  ;;  %1810 = vmatprep.mubr.bf16.mxu0 %v4020_v23  ;;  %v1835_v2 = vld [vmem:[#allocation11] sm:$0xff] }
 0x1bc   :  { %1780 = vmatprep.subr.bf16.mxu0 %v3661_v4  ;;  %1884 = vmatpush1.msra.mxu1 %v1849_v45  ;;  %v1948_v45 = vld [vmem:[#allocation13 + $0x50] sm:$0xff] }
 0x1bd   :  { %1885 = vmatprep.subr.mxu1 %v1848_v46  ;;  %1931 = vmatprep.mubr.f32.mxu1 %v4021_v60  ;;  %v1947_v46 = vld [vmem:[#allocation13 + $0x48] sm:$0xff] }
 0x1be   :  { %1886 = vmatpush1.msra.mxu1 %v1847_v47  ;;  %v1946_v47 = vld [vmem:[#allocation13 + $0x40] sm:$0xff] }
 0x1bf   :  { %1781 = vmatpush1.bf16.msra.mxu0 %v3659_v5  ;;  %1887 = vmatprep.subr.mxu1 %v1846_v48 }
 0x1c0   :  { %1782 = vmatprep.subr.bf16.mxu0 %v3664_v6  ;;  %1888 = vmatpush1.msra.mxu1 %v1845_v49  ;;  %v1945_v49 = vld [vmem:[#allocation13 + $0x38] sm:$0xff] }
 0x1c1   :  { %1889 = vmatprep.subr.mxu1 %v1844_v50  ;;  %v1944_v50 = vld [vmem:[#allocation13 + $0x30] sm:$0xff] }
 0x1c2   :  { %1890 = vmatpush1.msra.mxu1 %v1843_v51  ;;  %v1943_v51 = vld [vmem:[#allocation13 + $0x28] sm:$0xff] }
 0x1c3   :  { %1783 = vmatpush1.bf16.msra.mxu0 %v3662_v7  ;;  %1891 = vmatprep.subr.mxu1 %v1842_v54 }
 0x1c4   :  { %1784 = vmatprep.subr.bf16.mxu0 %v3667_v8  ;;  %1892 = vmatpush1.msra.mxu1 %v1841_v55  ;;  %v1941_v55 = vld [vmem:[#allocation13 + $0x18] sm:$0xff] }
 0x1c5   :  { %1893 = vmatprep.subr.mxu1 %v1840_v56  ;;  %v1940_v56 = vld [vmem:[#allocation13 + $0x10] sm:$0xff] }
 0x1c6   :  { %1894 = vmatpush1.msra.mxu1 %v1839_v57  ;;  %v1939_v57 = vld [vmem:[#allocation13 + $0x8] sm:$0xff] }
 0x1c7   :  { %1785 = vmatpush1.bf16.msra.mxu0 %v3665_v11  ;;  %1895 = vmatprep.subr.mxu1 %v1838_v59 }
 0x1c8   :  { %1786 = vmatprep.subr.bf16.mxu0 %v3670_v16  ;;  %1896 = vmatpush1.msra.mxu1 %v1837_v62 }
 0x1c9   :  { %1897 = vmatprep.subr.mxu1 %v1836_v0 }
 0x1ca   :  { %1898 = vmatpush1.msra.mxu1 %v1835_v2 }
 0x1cb   :  { %1787 = vmatpush1.bf16.msra.mxu0 %v3668_v17 }
 0x1cc   :  { %1788 = vmatprep.subr.bf16.mxu0 %v3673_v18 }
 0x1cf   :  { %1789 = vmatpush1.bf16.msra.mxu0 %v3671_v15  ;;  %v1851_v15 = vld [vmem:[%s4490_s9] sm:$0x3] }
 0x1d0   :  { %1790 = vmatprep.subr.bf16.mxu0 %v3676_v19  ;;  %v1860_v19 = vrot.slane %v1851_v15, %v4198_v13 }
 0x1d3   :  { %1791 = vmatpush1.bf16.msra.mxu0 %v3674_v20 }
 0x1d4   :  { %1792 = vmatprep.subr.bf16.mxu0 %v3679_v21  ;;  %v1856_v21 = vrot.slane %v1851_v15, %v4191_v10 }
 0x1d7   :  { %1793 = vmatpush1.bf16.msra.mxu0 %v3677_v22 }
 0x27a   :  { %v1614_v28 = vpop.f32.mrf.mxu0  ;;  %v1655_v29 = vpop.f32.mrf.mxu1 }
 0x27b   :  { %v1615_v30 = vadd.f32 %v1614_v28, %v1243_v53  ;;  %v1656_v31 = vadd.f32 %v1655_v29, %v1251_v25 }
 0x27c   :  { %v1616_v32 = vpop.f32.mrf.mxu0  ;;  %v1657_v33 = vpop.f32.mrf.mxu1 }
 0x27d   :  { %v1617_v34 = vadd.f32 %v1616_v32, %v1247_v26  ;;  %v1658_v35 = vadd.f32 %v1657_v33, %v1255_v27  ;;  %v1662_v38 = vmax.f32 %v1615_v30, 0.0  ;;  %v1664_v39 = vmax.f32 %v1656_v31, 0.0 }
 0x27e   :  { %v1618_v36 = vpop.f32.mrf.mxu0  ;;  %v1659_v37 = vpop.f32.mrf.mxu1 }
 0x27f   :  { %v1663_v40 = vmax.f32 %v1617_v34, 0.0  ;;  %v1665_v41 = vmax.f32 %v1658_v35, 0.0 }
 0x280   :  { %v1619_v12 = vpop.f32.mrf.mxu0  ;;  %v1660_v61 = vpop.f32.mrf.mxu1 }
 0x281   :  { %v1666_v42 = vmax.f32 %v1662_v38, %v1663_v40  ;;  %v1667_v43 = vmax.f32 %v1664_v39, %v1665_v41 }
 0x283   :  { %v1668_v9 = vmax.f32 %v1666_v42, %v1667_v43  ;;  %v1953_v42 = vld [vmem:[#allocation13 + $0x78] sm:$0xff]  ;;  %v4266_v43 = vld [vmem:[#allocation13 + $0x70] sm:$0xff] }
 0x284   :  { %2039 = vmatprep.subr.mxu1 %v1953_v42  ;;  %2184 = vmatprep.subr.mxu0 %v1953_v42 }
 0x285   :  { %v1669_v14 = vpack.c.bf16 %v1668_v9, %v1668_v9  ;;  %v4268_v9 = vld [vmem:[#allocation13 + $0x68] sm:$0xff] }
 0x287   :  { %1811 = vmatmul.mubr.bf16.vlgmr.msra.gmra.mxu0 %v1669_v14  ;;  %v4270_v14 = vld [vmem:[#allocation13 + $0x60] sm:$0xff] }
 0x288   :  { %2232 = vmatprep.mubr.f32.mxu0 %v4021_v60  ;;  %2185 = vmatpush1.msra.mxu0 %v4266_v43 }
 0x289   :  { %2186 = vmatprep.subr.mxu0 %v4268_v9 }
 0x28a   :  { %2187 = vmatpush1.msra.mxu0 %v4270_v14 }
 0x28b   :  { %2188 = vmatprep.subr.mxu0 %v4273_v44 }
 0x28c   :  { %2189 = vmatpush1.msra.mxu0 %v1948_v45 }
 0x28d   :  { %2190 = vmatprep.subr.mxu0 %v1947_v46 }
 0x28e   :  { %2191 = vmatpush1.msra.mxu0 %v1946_v47 }
 0x28f   :  { %2192 = vmatprep.subr.mxu0 %v1945_v49 }
 0x290   :  { %2193 = vmatpush1.msra.mxu0 %v1944_v50 }
 0x291   :  { %2194 = vmatprep.subr.mxu0 %v1943_v51 }
 0x292   :  { %2195 = vmatpush1.msra.mxu0 %v1942_v52 }
 0x293   :  { %2196 = vmatprep.subr.mxu0 %v1941_v55 }
 0x294   :  { %2197 = vmatpush1.msra.mxu0 %v1940_v56 }
 0x295   :  { %2198 = vmatprep.subr.mxu0 %v1939_v57 }
 0x347   :  { %v1812_v1 = vpop.f32.mrf.mxu0 }
 0x348   :  { %v1813_v3 = vadd.f32 %v1812_v1, %v1691_v58  ;;  %v1938_v58 = vld [vmem:[#allocation13] sm:$0xff] }
 0x349   :  { %v1814_v4 = vpop.f32.mrf.mxu0  ;;  %2199 = vmatpush1.msra.mxu0 %v1938_v58 }
 0x34a   :  { %v1819_v5 = vmax.f32 %v1813_v3, 0.0  ;;  %v1815_v6 = vadd.f32 %v1814_v4, %v1695_v63 }
 0x34b   :  { %v1816_v7 = vpop.f32.mrf.mxu0 }
 0x34c   :  { %1822 = vst.msk [vmem:[#allocation2] sm:$0x3] %vm1821_vm0, %v1819_v5  ;;  %v1820_v8 = vmax.f32 %v1815_v6, 0.0  ;;  %1824 = vrot.lane.b32.xlu0 %v1819_v5, %s4022_s6 }
 0x34d   :  { %v1817_v11 = vpop.f32.mrf.mxu0 }
 0x34e   :  { %1828 = vst.msk [vmem:[#allocation2 + $0x4] sm:$0x3] %vm1821_vm0, %v1820_v8 }
 0x350   :  { %1830 = vrot.lane.b32.xlu0 %v1820_v8, %s4022_s6 }
 0x3be   :  { %v1825_v16 = vpop.permute.xlu0 %1824 }
 0x3bf   :  { %1827 = vst.msk [vmem:[#allocation2 + $0x2] sm:$0x3] %vm1821_vm0, %v1825_v16 }
 0x3c2   :  { %v1831_v17 = vpop.permute.xlu0 %1830 }
 0x3c3   :  { %1833 = vst.msk [vmem:[#allocation2 + $0x6] sm:$0x3] %vm1821_vm0, %v1831_v17 }
 0x3ca   :  { %v1834_v18 = vld [vmem:[#allocation2] sm:$0xff] }
 0x3cb   :  { %3503 = vmatmul.mubr.msk.f32.vlgmr.msra.gmra.mxu1 %vm1863_vm1, %v1834_v18 }
 0x3cc   :  { %2087 = vmatprep.mubr.f32.mxu1 %v4021_v60  ;;  %2040 = vmatpush1.msra.mxu1 %v4266_v43 }
 0x3cd   :  { %2041 = vmatprep.subr.mxu1 %v4268_v9 }
 0x3ce   :  { %2042 = vmatpush1.msra.mxu1 %v4270_v14 }
 0x3cf   :  { %2043 = vmatprep.subr.mxu1 %v4273_v44 }
 0x3d0   :  { %2044 = vmatpush1.msra.mxu1 %v1948_v45 }
 0x3d1   :  { %2045 = vmatprep.subr.mxu1 %v1947_v46 }
 0x3d2   :  { %2046 = vmatpush1.msra.mxu1 %v1946_v47 }
 0x3d3   :  { %2047 = vmatprep.subr.mxu1 %v1945_v49 }
 0x3d4   :  { %2048 = vmatpush1.msra.mxu1 %v1944_v50 }
 0x3d5   :  { %2049 = vmatprep.subr.mxu1 %v1943_v51 }
 0x3d6   :  { %2050 = vmatpush1.msra.mxu1 %v1942_v52 }
 0x3d7   :  { %2051 = vmatprep.subr.mxu1 %v1941_v55 }
 0x3d8   :  { %2052 = vmatpush1.msra.mxu1 %v1940_v56 }
 0x3d9   :  { %2053 = vmatprep.subr.mxu1 %v1939_v57 }
 0x3da   :  { %2054 = vmatpush1.msra.mxu1 %v1938_v58 }
 0x3db   :  { %2323 = vmatprep.subr.mxu1 %v1953_v42 }
 0x48b   :  { %v1933_v20 = vpop.f32.mrf.mxu1 }
 0x48c   :  { %v4242_v24 = vadd.f32 %v1933_v20, %v1856_v21 }
 0x48d   :  { %v1935_v22 = vpop.f32.mrf.mxu1 }
 0x48e   :  { %v4240_v23 = vadd.f32 %v1935_v22, %v1860_v19  ;;  %v3504_v27 = vmul.f32 -1.442695, %v4242_v24  ;;  %v2095_v5 = vrot.slane %v4242_v24, 2 }
 0x490   :  { %3680 = vtanh.f32 %v4240_v23  ;;  %v3505_v26 = vmul.f32 -1.442695, %v4240_v23  ;;  %v2099_v8 = vrot.slane %v4240_v23, 4 }
 0x491   :  { %3682 = vtanh.f32 %v4242_v24 }
 0x492   :  { %3684 = vpow2.f32 %v3505_v26 }
 0x493   :  { %3686 = vpow2.f32 %v3504_v27 }
 0x49d   :  { %v3681_v53 = vpop.eup %3680 }
 0x49e   :  { %1987 = vrot.lane.b32.xlu1 %v3681_v53, %s4022_s6  ;;  %v3683_v25 = vpop.eup %3682 }
 0x49f   :  { %v3685_v28 = vpop.eup %3684 }
 0x4a0   :  { %v1981_v29 = vadd.f32 1.0, %v3685_v28  ;;  %v3687_v30 = vpop.eup %3686 }
 0x4a1   :  { %v1957_v31 = vadd.f32 1.0, %v3687_v30 }
 0x4a2   :  { %1963 = vrot.lane.b32.xlu1 %v3683_v25, %s4022_s6  ;;  %3688 = vrcp.f32 %v1981_v29 }
 0x4a3   :  { %3690 = vrcp.f32 %v1957_v31 }
 0x4af   :  { %v4250_v32 = vpop.eup %3688 }
 0x4b0   :  { %v4254_v35 = vpop.eup %3690  ;;  %v1985_v38 = vmul.f32 0.0, %v4250_v32 }
 0x4b1   :  { %v1961_v41 = vmul.f32 0.0, %v4254_v35 }
 0x510   :  { %v1988_v33 = vpop.permute.xlu1 %1987 }
 0x511   :  { %v1990_v34 = vmul.f32 %v4250_v32, %v1988_v33 }
 0x513   :  { %1992 = vrot.lane.b32.xlu0 %v1990_v34, %s4013_s1 }
 0x514   :  { %v1964_v36 = vpop.permute.xlu1 %1963 }
 0x515   :  { %v1966_v37 = vmul.f32 %v4254_v35, %v1964_v36 }
 0x517   :  { %1968 = vrot.lane.b32.xlu1 %v1966_v37, %s4013_s1 }
 0x585   :  { %v1993_v39 = vpop.permute.xlu0 %1992 }
 0x586   :  { %v4259_v40 = vadd.f32 %v1993_v39, %v1985_v38 }
 0x588   :  { %3692 = vtanh.f32 %v4259_v40 }
 0x589   :  { %v1969_v12 = vpop.permute.xlu1 %1968 }
 0x58a   :  { %v4263_v61 = vadd.f32 %v1969_v12, %v1961_v41 }
 0x58c   :  { %3694 = vtanh.f32 %v4263_v61 }
 0x595   :  { %v3693_v48 = vpop.eup %3692 }
 0x596   :  { %1998 = vrot.lane.b32.xlu0 %v3693_v48, %s4022_s6 }
 0x599   :  { %v3695_v54 = vpop.eup %3694 }
 0x59a   :  { %1974 = vrot.lane.b32.xlu1 %v3695_v54, %s4022_s6 }
 0x608   :  { %v1999_v59 = vpop.permute.xlu0 %1998 }
 0x609   :  { %v4285_v62 = vmul.f32 %v4250_v32, %v1999_v59  ;;  %v2134_v32 = vrot.slane %v4259_v40, 6 }
 0x60b   :  { %v2007_v63 = vrot.slane %v4285_v62, 6 }
 0x60c   :  { %v1975_v0 = vpop.permute.xlu1 %1974 }
 0x60d   :  { %v1977_v1 = vmul.f32 %v4254_v35, %v1975_v0  ;;  %2008 = vrot.lane.b32.xlu1 %v2007_v63, %s4022_s6 }
 0x60f   :  { %2003 = vrot.lane.b32.xlu0 %v1977_v1, %s4013_s1 }
 0x67f   :  { %v2009_v2 = vpop.permute.xlu1 %2008 }
 0x681   :  { %v2004_v3 = vpop.permute.xlu0 %2003 }
 0x682   :  { %v2012_v4 = vsel %vm2011_vm2, %v2004_v3, %v2009_v2  ;;  %2014 = vst.msk [vmem:[#allocation3] sm:$0x3] %vm2013_vm3, %v2004_v3 }
 0x683   :  { %3506 = vmatmul.mubr.msk.f32.vlgmr.msra.gmra.mxu1 %vm1863_vm1, %v2012_v4 }
 0x684   :  { %2324 = vmatpush1.msra.mxu1 %v4266_v43  ;;  %2371 = vmatprep.mubr.f32.mxu1 %v4021_v60 }
 0x685   :  { %2325 = vmatprep.subr.mxu1 %v4268_v9 }
 0x686   :  { %2326 = vmatpush1.msra.mxu1 %v4270_v14  ;;  %v2239_v14 = vrot.slane %v4242_v24, 4 }
 0x687   :  { %2327 = vmatprep.subr.mxu1 %v4273_v44 }
 0x688   :  { %2328 = vmatpush1.msra.mxu1 %v1948_v45 }
 0x689   :  { %2329 = vmatprep.subr.mxu1 %v1947_v46  ;;  %v2242_v46 = vrot.slane %v4240_v23, 2 }
 0x68a   :  { %2330 = vmatpush1.msra.mxu1 %v1946_v47 }
 0x68b   :  { %2331 = vmatprep.subr.mxu1 %v1945_v49 }
 0x68c   :  { %2332 = vmatpush1.msra.mxu1 %v1944_v50 }
 0x68d   :  { %2333 = vmatprep.subr.mxu1 %v1943_v51 }
 0x68e   :  { %2334 = vmatpush1.msra.mxu1 %v1942_v52 }
 0x68f   :  { %2335 = vmatprep.subr.mxu1 %v1941_v55 }
 0x690   :  { %2336 = vmatpush1.msra.mxu1 %v1940_v56 }
 0x691   :  { %2337 = vmatprep.subr.mxu1 %v1939_v57 }
 0x692   :  { %2338 = vmatpush1.msra.mxu1 %v1938_v58 }
 0x743   :  { %v2089_v6 = vpop.f32.mrf.mxu1 }
 0x744   :  { %v2097_v7 = vadd.f32 %v2095_v5, %v2089_v6 }
 0x745   :  { %v2091_v11 = vpop.f32.mrf.mxu1 }
 0x746   :  { %3696 = vtanh.f32 %v2097_v7  ;;  %v2101_v16 = vadd.f32 %v2099_v8, %v2091_v11  ;;  %v3507_v15 = vmul.f32 -1.442695, %v2097_v7 }
 0x748   :  { %3698 = vtanh.f32 %v2101_v16  ;;  %v3508_v19 = vmul.f32 -1.442695, %v2101_v16 }
 0x749   :  { %3700 = vpow2.f32 %v3507_v15 }
 0x74a   :  { %3702 = vpow2.f32 %v3508_v19 }
 0x753   :  { %v3697_v17 = vpop.eup %3696 }
 0x754   :  { %2111 = vrot.lane.b32.xlu0 %v3697_v17, %s4022_s6 }
 0x755   :  { %v3699_v18 = vpop.eup %3698 }
 0x756   :  { %2138 = vrot.lane.b32.xlu1 %v3699_v18, %s4022_s6  ;;  %v3701_v20 = vpop.eup %3700 }
 0x757   :  { %v3703_v21 = vpop.eup %3702  ;;  %v2105_v22 = vadd.f32 1.0, %v3701_v20 }
 0x758   :  { %v2129_v53 = vadd.f32 1.0, %v3703_v21 }
 0x759   :  { %3704 = vrcp.f32 %v2105_v22 }
 0x75a   :  { %3706 = vrcp.f32 %v2129_v53  ;;  %v2378_v53 = vrot.slane %v4242_v24, 6 }
 0x766   :  { %v3705_v25 = vpop.eup %3704 }
 0x767   :  { %v3707_v28 = vpop.eup %3706  ;;  %v2109_v31 = vmul.f32 %v3705_v25, %v4263_v61 }
 0x768   :  { %v2136_v35 = vmul.f32 %v3707_v28, %v2134_v32 }
 0x7c6   :  { %v2112_v26 = vpop.permute.xlu0 %2111 }
 0x7c7   :  { %v2114_v27 = vmul.f32 %v3705_v25, %v2112_v26 }
 0x7c8   :  { %v2139_v29 = vpop.permute.xlu1 %2138 }
 0x7c9   :  { %2116 = vrot.lane.b32.xlu0 %v2114_v27, %s4013_s1  ;;  %v2141_v30 = vmul.f32 %v3707_v28, %v2139_v29 }
 0x7cb   :  { %2143 = vrot.lane.b32.xlu1 %v2141_v30, %s4013_s1 }
 0x83b   :  { %v2117_v33 = vpop.permute.xlu0 %2116 }
 0x83c   :  { %v2119_v34 = vadd.f32 %v2117_v33, %v2109_v31 }
 0x83d   :  { %v2144_v36 = vpop.permute.xlu1 %2143 }
 0x83e   :  { %3708 = vtanh.f32 %v2119_v34  ;;  %v2146_v37 = vadd.f32 %v2144_v36, %v2136_v35 }
 0x840   :  { %3710 = vtanh.f32 %v2146_v37 }
 0x84b   :  { %v3709_v38 = vpop.eup %3708 }
 0x84c   :  { %2122 = vrot.lane.b32.xlu0 %v3709_v38, %s4022_s6 }
 0x84d   :  { %v3711_v39 = vpop.eup %3710 }
 0x84e   :  { %2149 = vrot.lane.b32.xlu1 %v3711_v39, %s4022_s6 }
 0x8be   :  { %v2123_v41 = vpop.permute.xlu0 %2122 }
 0x8bf   :  { %v2125_v12 = vmul.f32 %v3705_v25, %v2123_v41 }
 0x8c0   :  { %v2150_v42 = vpop.permute.xlu1 %2149 }
 0x8c1   :  { %2154 = vrot.lane.b32.xlu0 %v2125_v12, %s4013_s1  ;;  %v2152_v61 = vmul.f32 %v3707_v28, %v2150_v42 }
 0x8c3   :  { %2158 = vrot.lane.b32.xlu1 %v2152_v61, %s4022_s6 }
 0x933   :  { %v2155_v40 = vpop.permute.xlu0 %2154 }
 0x934   :  { %2162 = vst.msk [vmem:[#allocation3 + $0x2] sm:$0x3] %vm2013_vm3, %v2155_v40 }
 0x935   :  { %v2159_v43 = vpop.permute.xlu1 %2158 }
 0x936   :  { %v2161_v9 = vsel %vm2011_vm2, %v2155_v40, %v2159_v43  ;;  %2164 = vst.msk [vmem:[#allocation3 + $0x4] sm:$0x3] %vm2163_vm4, %v2159_v43 }
 0x937   :  { %3509 = vmatmul.mubr.msk.f32.vlgmr.msra.gmra.mxu0 %vm1863_vm1, %v2161_v9 }
 0x938   :  { %2536 = vmatprep.mubr.f32.mxu0 %v4021_v60 }
 0x9f7   :  { %v2234_v44 = vpop.f32.mrf.mxu0 }
 0x9f8   :  { %v2241_v45 = vadd.f32 %v2239_v14, %v2234_v44  ;;  %v2456_v14 = vld [vmem:[#allocation14 + $0x78] sm:$0xff]  ;;  %v2455_v44 = vld [vmem:[#allocation14 + $0x70] sm:$0xff] }
 0x9f9   :  { %v2236_v47 = vpop.f32.mrf.mxu0  ;;  %2488 = vmatprep.subr.mxu0 %v2456_v14  ;;  %v2549_v14 = vld [vmem:[#allocation16 + $0x30] sm:$0xff] }
 0x9fa   :  { %3712 = vtanh.f32 %v2241_v45  ;;  %v2244_v48 = vadd.f32 %v2242_v46, %v2236_v47  ;;  %v3510_v51 = vmul.f32 -1.442695, %v2241_v45  ;;  %v2454_v45 = vld [vmem:[#allocation14 + $0x68] sm:$0xff]  ;;  %v2453_v46 = vld [vmem:[#allocation14 + $0x60] sm:$0xff]  ;;  %2489 = vmatpush1.msra.mxu0 %v2455_v44  ;;  %v2452_v47 = vld [vmem:[#allocation14 + $0x58] sm:$0xff] }
 0x9fb   :  { %2490 = vmatprep.subr.mxu0 %v2454_v45  ;;  %v2548_v45 = vld [vmem:[#allocation16 + $0x28] sm:$0xff] }
 0x9fc   :  { %3714 = vtanh.f32 %v2244_v48  ;;  %v3511_v52 = vmul.f32 -1.442695, %v2244_v48  ;;  %v2451_v48 = vld [vmem:[#allocation14 + $0x50] sm:$0xff]  ;;  %2491 = vmatpush1.msra.mxu0 %v2453_v46  ;;  %v2547_v46 = vld [vmem:[#allocation16 + $0x20] sm:$0xff] }
 0x9fd   :  { %3716 = vpow2.f32 %v3510_v51  ;;  %2492 = vmatprep.subr.mxu0 %v2452_v47  ;;  %v2450_v51 = vld [vmem:[#allocation14 + $0x48] sm:$0xff]  ;;  %v2546_v47 = vld [vmem:[#allocation16 + $0x18] sm:$0xff] }
 0x9fe   :  { %3718 = vpow2.f32 %v3511_v52  ;;  %2493 = vmatpush1.msra.mxu0 %v2451_v48  ;;  %v2449_v52 = vld [vmem:[#allocation14 + $0x40] sm:$0xff]  ;;  %v2545_v48 = vld [vmem:[#allocation16 + $0x10] sm:$0xff] }
 0x9ff   :  { %2494 = vmatprep.subr.mxu0 %v2450_v51 }
 0xa00   :  { %2495 = vmatpush1.msra.mxu0 %v2449_v52 }
 0xa07   :  { %v3713_v49 = vpop.eup %3712 }
 0xa08   :  { %2254 = vrot.lane.b32.xlu0 %v3713_v49, %s4022_s6 }
 0xa09   :  { %v3715_v50 = vpop.eup %3714 }
 0xa0a   :  { %2278 = vrot.lane.b32.xlu1 %v3715_v50, %s4022_s6  ;;  %v3717_v54 = vpop.eup %3716 }
 0xa0b   :  { %v3719_v55 = vpop.eup %3718  ;;  %v2248_v56 = vadd.f32 1.0, %v3717_v54  ;;  %v2448_v54 = vld [vmem:[#allocation14 + $0x38] sm:$0xff] }
 0xa0c   :  { %v2272_v57 = vadd.f32 1.0, %v3719_v55  ;;  %2496 = vmatprep.subr.mxu0 %v2448_v54  ;;  %v2447_v55 = vld [vmem:[#allocation14 + $0x30] sm:$0xff] }
 0xa0d   :  { %3720 = vrcp.f32 %v2248_v56  ;;  %v2446_v56 = vld [vmem:[#allocation14 + $0x28] sm:$0xff]  ;;  %2497 = vmatpush1.msra.mxu0 %v2447_v55 }
 0xa0e   :  { %3722 = vrcp.f32 %v2272_v57  ;;  %v2445_v57 = vld [vmem:[#allocation14 + $0x20] sm:$0xff]  ;;  %2498 = vmatprep.subr.mxu0 %v2446_v56 }
 0xa0f   :  { %2499 = vmatpush1.msra.mxu0 %v2445_v57 }
 0xa1a   :  { %v3721_v58 = vpop.eup %3720 }
 0xa1b   :  { %v3723_v0 = vpop.eup %3722  ;;  %v2252_v3 = vmul.f32 %v3721_v58, %v2119_v34 }
 0xa1c   :  { %v2276_v6 = vmul.f32 %v3723_v0, %v2146_v37 }
 0xa7a   :  { %v2255_v59 = vpop.permute.xlu0 %2254 }
 0xa7b   :  { %v2257_v63 = vmul.f32 %v3721_v58, %v2255_v59  ;;  %v2443_v59 = vld [vmem:[#allocation14 + $0x10] sm:$0xff] }
 0xa7c   :  { %v2279_v1 = vpop.permute.xlu1 %2278 }
 0xa7d   :  { %2259 = vrot.lane.b32.xlu0 %v2257_v63, %s4013_s1  ;;  %v2281_v2 = vmul.f32 %v3723_v0, %v2279_v1  ;;  %v2442_v63 = vld [vmem:[#allocation14 + $0x8] sm:$0xff] }
 0xa7f   :  { %2283 = vrot.lane.b32.xlu1 %v2281_v2, %s4013_s1 }
 0xaef   :  { %v2260_v4 = vpop.permute.xlu0 %2259 }
 0xaf0   :  { %v2262_v5 = vadd.f32 %v2260_v4, %v2252_v3 }
 0xaf1   :  { %v2284_v7 = vpop.permute.xlu1 %2283 }
 0xaf2   :  { %3724 = vtanh.f32 %v2262_v5  ;;  %v2286_v8 = vadd.f32 %v2284_v7, %v2276_v6 }
 0xaf4   :  { %3726 = vtanh.f32 %v2286_v8 }
 0xaff   :  { %v3725_v11 = vpop.eup %3724 }
 0xb00   :  { %2265 = vrot.lane.b32.xlu0 %v3725_v11, %s4022_s6 }
 0xb01   :  { %v3727_v16 = vpop.eup %3726 }
 0xb02   :  { %2289 = vrot.lane.b32.xlu1 %v3727_v16, %s4022_s6 }
 0xb72   :  { %v2266_v17 = vpop.permute.xlu0 %2265 }
 0xb73   :  { %v2268_v18 = vmul.f32 %v3721_v58, %v2266_v17  ;;  %v2444_v58 = vld [vmem:[#allocation14 + $0x18] sm:$0xff] }
 0xb74   :  { %v2290_v15 = vpop.permute.xlu1 %2289  ;;  %2500 = vmatprep.subr.mxu0 %v2444_v58 }
 0xb75   :  { %2294 = vrot.lane.b32.xlu0 %v2268_v18, %s4013_s1  ;;  %v2292_v19 = vmul.f32 %v3723_v0, %v2290_v15  ;;  %v2441_v0 = vld [vmem:[#allocation14] sm:$0xff]  ;;  %2501 = vmatpush1.msra.mxu0 %v2443_v59 }
 0xb76   :  { %2502 = vmatprep.subr.mxu0 %v2442_v63 }
 0xb77   :  { %2298 = vrot.lane.b32.xlu1 %v2292_v19, %s4022_s6  ;;  %2503 = vmatpush1.msra.mxu0 %v2441_v0 }
 0xbe7   :  { %v2295_v20 = vpop.permute.xlu0 %2294 }
 0xbe8   :  { %2302 = vst.msk [vmem:[#allocation3 + $0x4] sm:$0x3] %vm2013_vm3, %v2295_v20 }
 0xbe9   :  { %v2299_v21 = vpop.permute.xlu1 %2298 }
 0xbea   :  { %v2301_v22 = vsel %vm2011_vm2, %v2295_v20, %v2299_v21  ;;  %2303 = vst.msk [vmem:[#allocation3 + $0x2] sm:$0x3] %vm2163_vm4, %v2299_v21 }
 0xbeb   :  { %3512 = vmatmul.mubr.msk.f32.vlgmr.msra.gmra.mxu1 %vm1863_vm1, %v2301_v22 }
 0xbec   :  { %2689 = vmatprep.mubr.f32.mxu1 %v4021_v60 }
 0xcab   :  { %v2373_v25 = vpop.f32.mrf.mxu1 }
 0xcac   :  { %v2380_v26 = vadd.f32 %v2378_v53, %v2373_v25 }
 0xcad   :  { %v2375_v27 = vpop.f32.mrf.mxu1 }
 0xcae   :  { %3728 = vtanh.f32 %v2380_v26  ;;  %v2381_v28 = vadd.f32 %v2375_v27, %v4240_v23  ;;  %v3513_v31 = vmul.f32 -1.442695, %v2380_v26 }
 0xcb0   :  { %3730 = vtanh.f32 %v2381_v28  ;;  %v3514_v32 = vmul.f32 -1.442695, %v2381_v28 }
 0xcb1   :  { %3732 = vpow2.f32 %v3513_v31 }
 0xcb2   :  { %3734 = vpow2.f32 %v3514_v32 }
 0xcbb   :  { %v3729_v29 = vpop.eup %3728 }
 0xcbc   :  { %2391 = vrot.lane.b32.xlu0 %v3729_v29, %s4022_s6 }
 0xcbd   :  { %v3731_v30 = vpop.eup %3730 }
 0xcbe   :  { %2415 = vrot.lane.b32.xlu1 %v3731_v30, %s4022_s6  ;;  %v3733_v33 = vpop.eup %3732 }
 0xcbf   :  { %v3735_v34 = vpop.eup %3734  ;;  %v2385_v24 = vadd.f32 1.0, %v3733_v33 }
 0xcc0   :  { %v2409_v35 = vadd.f32 1.0, %v3735_v34 }
 0xcc1   :  { %3736 = vrcp.f32 %v2385_v24 }
 0xcc2   :  { %3738 = vrcp.f32 %v2409_v35 }
 0xcce   :  { %v3737_v36 = vpop.eup %3736 }
 0xccf   :  { %v3739_v38 = vpop.eup %3738  ;;  %v2389_v12 = vmul.f32 %v3737_v36, %v2262_v5 }
 0xcd0   :  { %v2413_v40 = vmul.f32 %v3739_v38, %v2286_v8  ;;  %v2457_v8 = vld [vmem:[%s4493_s12] sm:$0x3] }
 0xcd1   :  { %v2462_v11 = vrot.slane %v2457_v8, %v4191_v10  ;;  %v2466_v16 = vrot.slane %v2457_v8, %v4198_v13 }
 0xd2e   :  { %v2392_v37 = vpop.permute.xlu0 %2391 }
 0xd2f   :  { %v2394_v23 = vmul.f32 %v3737_v36, %v2392_v37 }
 0xd30   :  { %v2416_v39 = vpop.permute.xlu1 %2415 }
 0xd31   :  { %2396 = vrot.lane.b32.xlu0 %v2394_v23, %s4013_s1  ;;  %v2418_v41 = vmul.f32 %v3739_v38, %v2416_v39  ;;  %v2558_v23 = vld [vmem:[#allocation16 + $0x78] sm:$0xff]  ;;  %v4381_v39 = vld [vmem:[#allocation16 + $0x68] sm:$0xff] }
 0xd32   :  { %2641 = vmatprep.subr.mxu1 %v2558_v23  ;;  %2785 = vmatprep.subr.mxu0 %v2558_v23 }
 0xd33   :  { %2420 = vrot.lane.b32.xlu1 %v2418_v41, %s4013_s1  ;;  %v4383_v41 = vld [vmem:[#allocation16 + $0x60] sm:$0xff] }
 0xda3   :  { %v2397_v42 = vpop.permute.xlu0 %2396 }
 0xda4   :  { %v2399_v61 = vadd.f32 %v2397_v42, %v2389_v12  ;;  %v2554_v12 = vld [vmem:[#allocation16 + $0x58] sm:$0xff]  ;;  %v2553_v42 = vld [vmem:[#allocation16 + $0x50] sm:$0xff] }
 0xda5   :  { %v2421_v43 = vpop.permute.xlu1 %2420 }
 0xda6   :  { %3740 = vtanh.f32 %v2399_v61  ;;  %v2423_v9 = vadd.f32 %v2421_v43, %v2413_v40  ;;  %v2552_v61 = vld [vmem:[#allocation16 + $0x48] sm:$0xff]  ;;  %v2551_v43 = vld [vmem:[#allocation16 + $0x40] sm:$0xff] }
 0xda8   :  { %3742 = vtanh.f32 %v2423_v9  ;;  %v2550_v9 = vld [vmem:[#allocation16 + $0x38] sm:$0xff] }
 0xdb3   :  { %v3741_v49 = vpop.eup %3740 }
 0xdb4   :  { %2402 = vrot.lane.b32.xlu0 %v3741_v49, %s4022_s6  ;;  %v2544_v49 = vld [vmem:[#allocation16 + $0x8] sm:$0xff] }
 0xdb5   :  { %v3743_v50 = vpop.eup %3742 }
 0xdb6   :  { %2426 = vrot.lane.b32.xlu1 %v3743_v50, %s4022_s6  ;;  %v2543_v50 = vld [vmem:[#allocation16] sm:$0xff] }
 0xdb8   :  { %2015 = vrot.lane.b32.xlu0 %v4285_v62, %s4022_s6 }
 0xe26   :  { %v2403_v62 = vpop.permute.xlu0 %2402 }
 0xe27   :  { %v2405_v1 = vmul.f32 %v3737_v36, %v2403_v62 }
 0xe28   :  { %v2427_v2 = vpop.permute.xlu1 %2426 }
 0xe29   :  { %2431 = vrot.lane.b32.xlu1 %v2405_v1, %s4013_s1  ;;  %v2429_v3 = vmul.f32 %v3739_v38, %v2427_v2  ;;  %v4379_v38 = vld [vmem:[#allocation16 + $0x70] sm:$0xff] }
 0xe2a   :  { %v2016_v4 = vpop.permute.xlu0 %2015  ;;  %2642 = vmatpush1.msra.mxu1 %v4379_v38 }
 0xe2b   :  { %2019 = vst.msk [vmem:[#allocation3] sm:$0xc0] %vm2018_vm5, %v2016_v4  ;;  %2436 = vrot.lane.b32.xlu0 %v2429_v3, %s4022_s6  ;;  %2643 = vmatprep.subr.mxu1 %v4381_v39 }
 0xe2c   :  { %2644 = vmatpush1.msra.mxu1 %v4383_v41 }
 0xe2d   :  { %2645 = vmatprep.subr.mxu1 %v2554_v12 }
 0xe2e   :  { %2646 = vmatpush1.msra.mxu1 %v2553_v42 }
 0xe2f   :  { %2647 = vmatprep.subr.mxu1 %v2552_v61 }
 0xe30   :  { %2648 = vmatpush1.msra.mxu1 %v2551_v43 }
 0xe31   :  { %2649 = vmatprep.subr.mxu1 %v2550_v9 }
 0xe32   :  { %2650 = vmatpush1.msra.mxu1 %v2549_v14 }
 0xe33   :  { %2651 = vmatprep.subr.mxu1 %v2548_v45 }
 0xe34   :  { %2652 = vmatpush1.msra.mxu1 %v2547_v46 }
 0xe35   :  { %2653 = vmatprep.subr.mxu1 %v2546_v47 }
 0xe36   :  { %2654 = vmatpush1.msra.mxu1 %v2545_v48 }
 0xe37   :  { %2655 = vmatprep.subr.mxu1 %v2544_v49 }
 0xe38   :  { %2656 = vmatpush1.msra.mxu1 %v2543_v50 }
 0xe39   :  { %2924 = vmatprep.subr.mxu1 %v2558_v23 }
 0xe9b   :  { %v2432_v5 = vpop.permute.xlu1 %2431 }
 0xe9c   :  { %2434 = vst.msk [vmem:[#allocation3 + $0x6] sm:$0x3] %vm2013_vm3, %v2432_v5 }
 0xe9d   :  { %v2437_v6 = vpop.permute.xlu0 %2436 }
 0xe9e   :  { %2439 = vst.msk [vmem:[#allocation3] sm:$0x3] %vm2163_vm4, %v2437_v6 }
 0xea5   :  { %v2440_v7 = vld [vmem:[#allocation3] sm:$0xff] }
 0xea6   :  { %3515 = vmatmul.mubr.msk.f32.vlgmr.msra.gmra.mxu0 %vm1863_vm1, %v2440_v7 }
 0xea7   :  { %2833 = vmatprep.mubr.f32.mxu0 %v4021_v60  ;;  %2786 = vmatpush1.msra.mxu0 %v4379_v38 }
 0xea8   :  { %2787 = vmatprep.subr.mxu0 %v4381_v39 }
 0xea9   :  { %2788 = vmatpush1.msra.mxu0 %v4383_v41 }
 0xeaa   :  { %2789 = vmatprep.subr.mxu0 %v2554_v12 }
 0xeab   :  { %2790 = vmatpush1.msra.mxu0 %v2553_v42 }
 0xeac   :  { %2791 = vmatprep.subr.mxu0 %v2552_v61 }
 0xead   :  { %2792 = vmatpush1.msra.mxu0 %v2551_v43 }
 0xeae   :  { %2793 = vmatprep.subr.mxu0 %v2550_v9 }
 0xeaf   :  { %2794 = vmatpush1.msra.mxu0 %v2549_v14 }
 0xeb0   :  { %2795 = vmatprep.subr.mxu0 %v2548_v45 }
 0xeb1   :  { %2796 = vmatpush1.msra.mxu0 %v2547_v46 }
 0xeb2   :  { %2797 = vmatprep.subr.mxu0 %v2546_v47 }
 0xeb3   :  { %2798 = vmatpush1.msra.mxu0 %v2545_v48 }
 0xeb4   :  { %2799 = vmatprep.subr.mxu0 %v2544_v49 }
 0xeb5   :  { %2800 = vmatpush1.msra.mxu0 %v2543_v50 }
 0xf66   :  { %v2538_v17 = vpop.f32.mrf.mxu0 }
 0xf67   :  { %v4353_v18 = vadd.f32 %v2538_v17, %v2462_v11 }
 0xf68   :  { %v2540_v15 = vpop.f32.mrf.mxu0 }
 0xf69   :  { %3744 = vtanh.f32 %v4353_v18  ;;  %v4356_v19 = vadd.f32 %v2540_v15, %v2466_v16  ;;  %v3516_v10 = vmul.f32 -1.442695, %v4353_v18  ;;  %v2697_v63 = vrot.slane %v4353_v18, 2 }
 0xf6b   :  { %3746 = vtanh.f32 %v4356_v19  ;;  %v3517_v13 = vmul.f32 -1.442695, %v4356_v19  ;;  %v2701_v1 = vrot.slane %v4356_v19, 4 }
 0xf6c   :  { %3748 = vpow2.f32 %v3516_v10 }
 0xf6d   :  { %3750 = vpow2.f32 %v3517_v13 }
 0xf76   :  { %v3745_v20 = vpop.eup %3744 }
 0xf77   :  { %2568 = vrot.lane.b32.xlu0 %v3745_v20, %s4022_s6 }
 0xf78   :  { %v3747_v21 = vpop.eup %3746 }
 0xf79   :  { %2592 = vrot.lane.b32.xlu1 %v3747_v21, %s4022_s6  ;;  %v3749_v22 = vpop.eup %3748 }
 0xf7a   :  { %v3751_v53 = vpop.eup %3750  ;;  %v2562_v25 = vadd.f32 1.0, %v3749_v22 }
 0xf7b   :  { %v2586_v26 = vadd.f32 1.0, %v3751_v53 }
 0xf7c   :  { %3752 = vrcp.f32 %v2562_v25 }
 0xf7d   :  { %3754 = vrcp.f32 %v2586_v26 }
 0xf89   :  { %v4363_v27 = vpop.eup %3752 }
 0xf8a   :  { %v4366_v30 = vpop.eup %3754  ;;  %v2566_v33 = vmul.f32 0.0, %v4363_v27 }
 0xf8b   :  { %v2590_v35 = vmul.f32 0.0, %v4366_v30 }
 0xfe9   :  { %v2569_v28 = vpop.permute.xlu0 %2568 }
 0xfea   :  { %v2571_v29 = vmul.f32 %v4363_v27, %v2569_v28 }
 0xfeb   :  { %v2593_v31 = vpop.permute.xlu1 %2592 }
 0xfec   :  { %2573 = vrot.lane.b32.xlu0 %v2571_v29, %s4013_s1  ;;  %v2595_v32 = vmul.f32 %v4366_v30, %v2593_v31 }
 0xfee   :  { %2597 = vrot.lane.b32.xlu1 %v2595_v32, %s4013_s1 }
0x105e   :  { %v2574_v34 = vpop.permute.xlu0 %2573 }
0x105f   :  { %v4372_v24 = vadd.f32 %v2574_v34, %v2566_v33 }
0x1060   :  { %v2598_v36 = vpop.permute.xlu1 %2597 }
0x1061   :  { %3756 = vtanh.f32 %v4372_v24  ;;  %v4376_v37 = vadd.f32 %v2598_v36, %v2590_v35 }
0x1063   :  { %3758 = vtanh.f32 %v4376_v37  ;;  %v2736_v25 = vrot.slane %v4376_v37, 6 }
0x106e   :  { %v3757_v40 = vpop.eup %3756 }
0x106f   :  { %2579 = vrot.lane.b32.xlu0 %v3757_v40, %s4022_s6 }
0x1070   :  { %v3759_v44 = vpop.eup %3758 }
0x1071   :  { %2603 = vrot.lane.b32.xlu1 %v3759_v44, %s4022_s6 }
0x10e1   :  { %v2580_v51 = vpop.permute.xlu0 %2579 }
0x10e2   :  { %v2582_v52 = vmul.f32 %v4363_v27, %v2580_v51 }
0x10e3   :  { %v2604_v54 = vpop.permute.xlu1 %2603 }
0x10e4   :  { %2608 = vrot.lane.b32.xlu1 %v2582_v52, %s4013_s1  ;;  %v4396_v55 = vmul.f32 %v4366_v30, %v2604_v54 }
0x10e6   :  { %v2612_v56 = vrot.slane %v4396_v55, 6 }
0x10e8   :  { %2613 = vrot.lane.b32.xlu0 %v2612_v56, %s4022_s6 }
0x1156   :  { %v2609_v57 = vpop.permute.xlu1 %2608 }
0x1157   :  { %2617 = vst.msk [vmem:[#allocation4] sm:$0x3] %vm2013_vm3, %v2609_v57 }
0x115a   :  { %v2614_v58 = vpop.permute.xlu0 %2613 }
0x115b   :  { %v2616_v59 = vsel %vm2011_vm2, %v2609_v57, %v2614_v58 }
0x115c   :  { %3518 = vmatmul.mubr.msk.f32.vlgmr.msra.gmra.mxu1 %vm1863_vm1, %v2616_v59 }
0x115d   :  { %2925 = vmatpush1.msra.mxu1 %v4379_v38  ;;  %2972 = vmatprep.mubr.f32.mxu1 %v4021_v60  ;;  %v2840_v38 = vrot.slane %v4353_v18, 4 }
0x115e   :  { %2926 = vmatprep.subr.mxu1 %v4381_v39 }
0x115f   :  { %2927 = vmatpush1.msra.mxu1 %v4383_v41 }
0x1160   :  { %2928 = vmatprep.subr.mxu1 %v2554_v12  ;;  %v2843_v12 = vrot.slane %v4356_v19, 2 }
0x1161   :  { %2929 = vmatpush1.msra.mxu1 %v2553_v42 }
0x1162   :  { %2930 = vmatprep.subr.mxu1 %v2552_v61 }
0x1163   :  { %2931 = vmatpush1.msra.mxu1 %v2551_v43 }
0x1164   :  { %2932 = vmatprep.subr.mxu1 %v2550_v9 }
0x1165   :  { %2933 = vmatpush1.msra.mxu1 %v2549_v14 }
0x1166   :  { %2934 = vmatprep.subr.mxu1 %v2548_v45 }
0x1167   :  { %2935 = vmatpush1.msra.mxu1 %v2547_v46 }
0x1168   :  { %2936 = vmatprep.subr.mxu1 %v2546_v47 }
0x1169   :  { %2937 = vmatpush1.msra.mxu1 %v2545_v48 }
0x116a   :  { %2938 = vmatprep.subr.mxu1 %v2544_v49 }
0x116b   :  { %2939 = vmatpush1.msra.mxu1 %v2543_v50 }
0x121c   :  { %v2691_v0 = vpop.f32.mrf.mxu1 }
0x121d   :  { %v2699_v62 = vadd.f32 %v2697_v63, %v2691_v0 }
0x121e   :  { %v2693_v2 = vpop.f32.mrf.mxu1 }
0x121f   :  { %3760 = vtanh.f32 %v2699_v62  ;;  %v2703_v3 = vadd.f32 %v2701_v1, %v2693_v2  ;;  %v3519_v6 = vmul.f32 -1.442695, %v2699_v62 }
0x1221   :  { %3762 = vtanh.f32 %v2703_v3  ;;  %v3520_v7 = vmul.f32 -1.442695, %v2703_v3 }
0x1222   :  { %3764 = vpow2.f32 %v3519_v6 }
0x1223   :  { %3766 = vpow2.f32 %v3520_v7 }
0x122c   :  { %v3761_v4 = vpop.eup %3760 }
0x122d   :  { %2713 = vrot.lane.b32.xlu1 %v3761_v4, %s4022_s6 }
0x122e   :  { %v3763_v5 = vpop.eup %3762 }
0x122f   :  { %2740 = vrot.lane.b32.xlu0 %v3763_v5, %s4022_s6  ;;  %v3765_v8 = vpop.eup %3764 }
0x1230   :  { %v3767_v11 = vpop.eup %3766  ;;  %v2707_v16 = vadd.f32 1.0, %v3765_v8  ;;  %v2979_v8 = vrot.slane %v4353_v18, 6 }
0x1231   :  { %v2731_v17 = vadd.f32 1.0, %v3767_v11 }
0x1232   :  { %3768 = vrcp.f32 %v2707_v16 }
0x1233   :  { %3770 = vrcp.f32 %v2731_v17 }
0x123f   :  { %v3769_v15 = vpop.eup %3768 }
0x1240   :  { %v3771_v10 = vpop.eup %3770  ;;  %v2711_v53 = vmul.f32 %v3769_v15, %v4372_v24 }
0x1241   :  { %v2738_v28 = vmul.f32 %v3771_v10, %v2736_v25 }
0x129f   :  { %v2714_v20 = vpop.permute.xlu1 %2713 }
0x12a0   :  { %v2716_v21 = vmul.f32 %v3769_v15, %v2714_v20 }
0x12a1   :  { %v2741_v13 = vpop.permute.xlu0 %2740 }
0x12a2   :  { %2718 = vrot.lane.b32.xlu1 %v2716_v21, %s4013_s1  ;;  %v2743_v22 = vmul.f32 %v3771_v10, %v2741_v13 }
0x12a4   :  { %2745 = vrot.lane.b32.xlu0 %v2743_v22, %s4013_s1 }
0x1314   :  { %v2719_v26 = vpop.permute.xlu1 %2718 }
0x1315   :  { %v2721_v27 = vadd.f32 %v2719_v26, %v2711_v53 }
0x1316   :  { %v2746_v29 = vpop.permute.xlu0 %2745 }
0x1317   :  { %3772 = vtanh.f32 %v2721_v27  ;;  %v2748_v30 = vadd.f32 %v2746_v29, %v2738_v28 }
0x1319   :  { %3774 = vtanh.f32 %v2748_v30 }
0x1324   :  { %v3773_v31 = vpop.eup %3772 }
0x1325   :  { %2724 = vrot.lane.b32.xlu1 %v3773_v31, %s4022_s6 }
0x1326   :  { %v3775_v32 = vpop.eup %3774 }
0x1327   :  { %2751 = vrot.lane.b32.xlu0 %v3775_v32, %s4022_s6 }
0x1397   :  { %v2725_v33 = vpop.permute.xlu1 %2724 }
0x1398   :  { %v2727_v34 = vmul.f32 %v3769_v15, %v2725_v33 }
0x1399   :  { %v2752_v35 = vpop.permute.xlu0 %2751 }
0x139a   :  { %2756 = vrot.lane.b32.xlu1 %v2727_v34, %s4013_s1  ;;  %v2754_v24 = vmul.f32 %v3771_v10, %v2752_v35 }
0x139c   :  { %2760 = vrot.lane.b32.xlu0 %v2754_v24, %s4022_s6 }
0x140c   :  { %v2757_v36 = vpop.permute.xlu1 %2756 }
0x140d   :  { %2764 = vst.msk [vmem:[#allocation4 + $0x2] sm:$0x3] %vm2013_vm3, %v2757_v36 }
0x140e   :  { %v2761_v37 = vpop.permute.xlu0 %2760 }
0x140f   :  { %v2763_v23 = vsel %vm2011_vm2, %v2757_v36, %v2761_v37  ;;  %2765 = vst.msk [vmem:[#allocation4 + $0x4] sm:$0x3] %vm2163_vm4, %v2761_v37 }
0x1410   :  { %3521 = vmatmul.mubr.msk.f32.vlgmr.msra.gmra.mxu0 %vm1863_vm1, %v2763_v23 }
0x1411   :  { %3154 = vmatprep.mubr.f32.mxu0 %v4021_v60 }
0x14d0   :  { %v2835_v39 = vpop.f32.mrf.mxu0 }
0x14d1   :  { %v2842_v41 = vadd.f32 %v2840_v38, %v2835_v39 }
0x14d2   :  { %v2837_v42 = vpop.f32.mrf.mxu0 }
0x14d3   :  { %3776 = vtanh.f32 %v2842_v41  ;;  %v2845_v61 = vadd.f32 %v2843_v12, %v2837_v42  ;;  %v3522_v9 = vmul.f32 -1.442695, %v2842_v41 }
0x14d5   :  { %3778 = vtanh.f32 %v2845_v61  ;;  %v3523_v14 = vmul.f32 -1.442695, %v2845_v61 }
0x14d6   :  { %3780 = vpow2.f32 %v3522_v9 }
0x14d7   :  { %3782 = vpow2.f32 %v3523_v14 }
0x14e0   :  { %v3777_v40 = vpop.eup %3776 }
0x14e1   :  { %2855 = vrot.lane.b32.xlu1 %v3777_v40, %s4022_s6 }
0x14e2   :  { %v3779_v43 = vpop.eup %3778 }
0x14e3   :  { %2879 = vrot.lane.b32.xlu0 %v3779_v43, %s4022_s6  ;;  %v3781_v60 = vpop.eup %3780 }
0x14e4   :  { %v3783_v44 = vpop.eup %3782  ;;  %v2849_v45 = vadd.f32 1.0, %v3781_v60 }
0x14e5   :  { %v2873_v46 = vadd.f32 1.0, %v3783_v44 }
0x14e6   :  { %3784 = vrcp.f32 %v2849_v45  ;;  %v3086_v45 = vld [vmem:[#allocation17 + $0x78] sm:$0xff] }
0x14e7   :  { %3786 = vrcp.f32 %v2873_v46  ;;  %3106 = vmatprep.subr.mxu0 %v3086_v45  ;;  %v3085_v46 = vld [vmem:[#allocation17 + $0x70] sm:$0xff] }
0x14e8   :  { %3107 = vmatpush1.msra.mxu0 %v3085_v46 }
0x14f3   :  { %v3785_v47 = vpop.eup %3784 }
0x14f4   :  { %v3787_v50 = vpop.eup %3786  ;;  %v2853_v54 = vmul.f32 %v3785_v47, %v2721_v27 }
0x14f5   :  { %v2877_v58 = vmul.f32 %v3787_v50, %v2748_v30 }
0x1553   :  { %v2856_v48 = vpop.permute.xlu1 %2855 }
0x1554   :  { %v2858_v49 = vmul.f32 %v3785_v47, %v2856_v48  ;;  %v3083_v48 = vld [vmem:[#allocation17 + $0x60] sm:$0xff] }
0x1555   :  { %v2880_v51 = vpop.permute.xlu0 %2879 }
0x1556   :  { %2860 = vrot.lane.b32.xlu1 %v2858_v49, %s4013_s1  ;;  %v2882_v52 = vmul.f32 %v3787_v50, %v2880_v51  ;;  %v3082_v49 = vld [vmem:[#allocation17 + $0x58] sm:$0xff]  ;;  %v3080_v51 = vld [vmem:[#allocation17 + $0x48] sm:$0xff] }
0x1558   :  { %2884 = vrot.lane.b32.xlu0 %v2882_v52, %s4013_s1  ;;  %v3079_v52 = vld [vmem:[#allocation17 + $0x40] sm:$0xff] }
0x15c8   :  { %v2861_v56 = vpop.permute.xlu1 %2860 }
0x15c9   :  { %v2863_v57 = vadd.f32 %v2861_v56, %v2853_v54  ;;  %v3078_v54 = vld [vmem:[#allocation17 + $0x38] sm:$0xff]  ;;  %v3077_v56 = vld [vmem:[#allocation17 + $0x30] sm:$0xff] }
0x15ca   :  { %v2885_v59 = vpop.permute.xlu0 %2884 }
0x15cb   :  { %3788 = vtanh.f32 %v2863_v57  ;;  %v2887_v63 = vadd.f32 %v2885_v59, %v2877_v58  ;;  %v3075_v58 = vld [vmem:[#allocation17 + $0x20] sm:$0xff]  ;;  %v3074_v59 = vld [vmem:[#allocation17 + $0x18] sm:$0xff] }
0x15cd   :  { %3790 = vtanh.f32 %v2887_v63 }
0x15d8   :  { %v3789_v0 = vpop.eup %3788 }
0x15d9   :  { %2866 = vrot.lane.b32.xlu1 %v3789_v0, %s4022_s6  ;;  %v3072_v0 = vld [vmem:[#allocation17 + $0x8] sm:$0xff] }
0x15da   :  { %v3791_v62 = vpop.eup %3790 }
0x15db   :  { %2890 = vrot.lane.b32.xlu0 %v3791_v62, %s4022_s6  ;;  %v3071_v62 = vld [vmem:[#allocation17] sm:$0xff] }
0x164b   :  { %v2867_v1 = vpop.permute.xlu1 %2866 }
0x164c   :  { %v2869_v2 = vmul.f32 %v3785_v47, %v2867_v1  ;;  %v3084_v47 = vld [vmem:[#allocation17 + $0x68] sm:$0xff] }
0x164d   :  { %v2891_v3 = vpop.permute.xlu0 %2890  ;;  %3108 = vmatprep.subr.mxu0 %v3084_v47  ;;  %v3530_v1 = vld [vmem:[%s4496_s15] ss:$0 sm:$0xff] }
0x164e   :  { %2895 = vrot.lane.b32.xlu1 %v2869_v2, %s4013_s1  ;;  %v2893_v4 = vmul.f32 %v3787_v50, %v2891_v3  ;;  %3109 = vmatpush1.msra.mxu0 %v3083_v48  ;;  %v3081_v50 = vld [vmem:[#allocation17 + $0x50] sm:$0xff] }
0x164f   :  { %3110 = vmatprep.subr.mxu0 %v3082_v49 }
0x1650   :  { %2899 = vrot.lane.b32.xlu0 %v2893_v4, %s4022_s6  ;;  %3111 = vmatpush1.msra.mxu0 %v3081_v50 }
0x1651   :  { %3112 = vmatprep.subr.mxu0 %v3080_v51 }
0x1652   :  { %3113 = vmatpush1.msra.mxu0 %v3079_v52 }
0x1653   :  { %3114 = vmatprep.subr.mxu0 %v3078_v54 }
0x1654   :  { %3115 = vmatpush1.msra.mxu0 %v3077_v56 }
0x16c0   :  { %v2896_v5 = vpop.permute.xlu1 %2895 }
0x16c1   :  { %2903 = vst.msk [vmem:[#allocation4 + $0x4] sm:$0x3] %vm2013_vm3, %v2896_v5 }
0x16c2   :  { %v2900_v6 = vpop.permute.xlu0 %2899 }
0x16c3   :  { %v2902_v7 = vsel %vm2011_vm2, %v2896_v5, %v2900_v6  ;;  %2904 = vst.msk [vmem:[#allocation4 + $0x2] sm:$0x3] %vm2163_vm4, %v2900_v6  ;;  %v3527_v6 = vld [vmem:[%s4494_s13] ss:$0 sm:$0xff]  ;;  %s4027_s13 = smov 96  }
0x16c4   :  { %3524 = vmatmul.mubr.msk.f32.vlgmr.msra.gmra.mxu1 %vm1863_vm1, %v2902_v7 }
0x1784   :  { %v2974_v11 = vpop.f32.mrf.mxu1 }
0x1785   :  { %v2981_v16 = vadd.f32 %v2979_v8, %v2974_v11  ;;  %v3528_v8 = vld [vmem:[%s4495_s14] ss:$0 sm:$0xff] }
0x1786   :  { %v2976_v17 = vpop.f32.mrf.mxu1 }
0x1787   :  { %3792 = vtanh.f32 %v2981_v16  ;;  %v2982_v15 = vadd.f32 %v2976_v17, %v4356_v19  ;;  %v3525_v10 = vmul.f32 -1.442695, %v2981_v16  ;;  %v4023_v17 = vmov 34  }
0x1788   :  { %3556 = vset.pattern.permute.xlu0 %v4023_v17 }
0x1789   :  { %3794 = vtanh.f32 %v2982_v15  ;;  %v3526_v13 = vmul.f32 -1.442695, %v2982_v15  ;;  %v4024_v15 = vmov 33  }
0x178a   :  { %3796 = vpow2.f32 %v3525_v10  ;;  %3555 = vset.pattern.permute.xlu1 %v4024_v15 }
0x178b   :  { %3798 = vpow2.f32 %v3526_v13 }
0x1794   :  { %v3793_v20 = vpop.eup %3792 }
0x1795   :  { %2992 = vrot.lane.b32.xlu1 %v3793_v20, %s4022_s6 }
0x1796   :  { %v3795_v21 = vpop.eup %3794 }
0x1797   :  { %3016 = vrot.lane.b32.xlu0 %v3795_v21, %s4022_s6  ;;  %v3797_v22 = vpop.eup %3796 }
0x1798   :  { %v3799_v53 = vpop.eup %3798  ;;  %v2986_v18 = vadd.f32 1.0, %v3797_v22 }
0x1799   :  { %v3010_v25 = vadd.f32 1.0, %v3799_v53 }
0x179a   :  { %3800 = vrcp.f32 %v2986_v18 }
0x179b   :  { %3802 = vrcp.f32 %v3010_v25 }
0x17a7   :  { %v3801_v26 = vpop.eup %3800 }
0x17a8   :  { %v3803_v28 = vpop.eup %3802  ;;  %v2990_v31 = vmul.f32 %v3801_v26, %v2863_v57  ;;  %v3076_v57 = vld [vmem:[#allocation17 + $0x28] sm:$0xff] }
0x17a9   :  { %v3014_v34 = vmul.f32 %v3803_v28, %v2887_v63  ;;  %3116 = vmatprep.subr.mxu0 %v3076_v57  ;;  %v3073_v63 = vld [vmem:[#allocation17 + $0x10] sm:$0xff] }
0x17aa   :  { %3117 = vmatpush1.msra.mxu0 %v3075_v58 }
0x17ab   :  { %3118 = vmatprep.subr.mxu0 %v3074_v59 }
0x17ac   :  { %3119 = vmatpush1.msra.mxu0 %v3073_v63 }
0x17ad   :  { %3120 = vmatprep.subr.mxu0 %v3072_v0 }
0x17ae   :  { %3121 = vmatpush1.msra.mxu0 %v3071_v62 }
0x1807   :  { %v2993_v27 = vpop.permute.xlu1 %2992 }
0x1808   :  { %v2995_v19 = vmul.f32 %v3801_v26, %v2993_v27 }
0x1809   :  { %v3017_v29 = vpop.permute.xlu0 %3016 }
0x180a   :  { %2997 = vrot.lane.b32.xlu1 %v2995_v19, %s4013_s1  ;;  %v3019_v30 = vmul.f32 %v3803_v28, %v3017_v29 }
0x180c   :  { %3021 = vrot.lane.b32.xlu0 %v3019_v30, %s4013_s1 }
0x187c   :  { %v2998_v32 = vpop.permute.xlu1 %2997 }
0x187d   :  { %v3000_v33 = vadd.f32 %v2998_v32, %v2990_v31 }
0x187e   :  { %v3022_v35 = vpop.permute.xlu0 %3021 }
0x187f   :  { %3804 = vtanh.f32 %v3000_v33  ;;  %v3024_v24 = vadd.f32 %v3022_v35, %v3014_v34 }
0x1881   :  { %3806 = vtanh.f32 %v3024_v24 }
0x188c   :  { %v3805_v36 = vpop.eup %3804 }
0x188d   :  { %3003 = vrot.lane.b32.xlu1 %v3805_v36, %s4022_s6 }
0x188e   :  { %v3807_v37 = vpop.eup %3806 }
0x188f   :  { %3027 = vrot.lane.b32.xlu0 %v3807_v37, %s4022_s6 }
0x1891   :  { %2618 = vrot.lane.b32.xlu1 %v4396_v55, %s4022_s6 }
0x18ff   :  { %v3004_v23 = vpop.permute.xlu1 %3003 }
0x1900   :  { %v3006_v38 = vmul.f32 %v3801_v26, %v3004_v23 }
0x1901   :  { %v3028_v39 = vpop.permute.xlu0 %3027 }
0x1902   :  { %3032 = vrot.lane.b32.xlu0 %v3006_v38, %s4013_s1  ;;  %v3030_v41 = vmul.f32 %v3803_v28, %v3028_v39 }
0x1903   :  { %v2619_v12 = vpop.permute.xlu1 %2618 }
0x1904   :  { %2621 = vst.msk [vmem:[#allocation4] sm:$0xc0] %vm2018_vm5, %v2619_v12  ;;  %3037 = vrot.lane.b32.xlu1 %v3030_v41, %s4022_s6 }
0x1974   :  { %v3033_v42 = vpop.permute.xlu0 %3032 }
0x1975   :  { %3035 = vst.msk [vmem:[#allocation4 + $0x6] sm:$0x3] %vm2013_vm3, %v3033_v42 }
0x1976   :  { %v3038_v61 = vpop.permute.xlu1 %3037 }
0x1977   :  { %3040 = vst.msk [vmem:[#allocation4] sm:$0x3] %vm2163_vm4, %v3038_v61 }
0x197e   :  { %v3041_v40 = vld [vmem:[#allocation4] sm:$0xff] }
0x197f   :  { %v3042_v55 = vsel %vm1863_vm1, %v3041_v40, 0.0 }
0x1980   :  { %3043 = vadd.xlane.f32.xlu0 %v3042_v55 }
0x1996   :  { %3167 = vrot.lane.b32.xlu0 %v3530_v1, %s4013_s1 }
0x1a09   :  { %v3044_v43 = vpop.xlane.xlu0 %3043 }
0x1a0a   :  { %v3045_v9 = vmul.f32 0.015625, %v3044_v43 }
0x1a0c   :  { %v3046_v14 = vsub.f32 %v3041_v40, %v3045_v9 }
0x1a0d   :  { %v3168_v21 = vpop.permute.xlu0 %3167 }
0x1a0e   :  { %v3047_v60 = vmul.f32 %v3046_v14, %v3046_v14 }
0x1a10   :  { %v3048_v44 = vsel %vm1863_vm1, %v3047_v60, 0.0  ;;  %v4026_v60 = vmov 32  }
0x1a11   :  { %3049 = vadd.xlane.f32.xlu1 %v3048_v44 }
0x1a9a   :  { %v3050_v2 = vpop.xlane.xlu1 %3049 }
0x1a9b   :  { %v3051_v3 = vmul.f32 0.015625, %v3050_v2 }
0x1a9d   :  { %v3052_v4 = vadd.f32 1e-05, %v3051_v3 }
0x1a9f   :  { %3808 = vrsqrt.f32 %v3052_v4  ;;  %v3531_v4 = vld [vmem:[%s4498_s17] ss:$0 sm:$0xff] }
0x1aac   :  { %v3809_v5 = vpop.eup %3808 }
0x1aad   :  { %v3054_v7 = vmul.f32 %v3809_v5, %v3046_v14  ;;  %v4025_v14 = vmov 35  }
0x1aaf   :  { %v3062_v11 = vmul.f32 %v3527_v6, %v3054_v7 }
0x1ab1   :  { %v3070_v16 = vadd.f32 %v3528_v8, %v3062_v11 }
0x1ab3   :  { %3529 = vmatmul.mubr.msk.f32.vlgmr.msra.gmra.mxu0 %vm1863_vm1, %v3070_v16 }
0x1b73   :  { %v3156_v20 = vpop.f32.mrf.mxu0 }
0x1b75   :  { %v3158_v10 = vpop.f32.mrf.mxu0 }
0x1b76   :  { %v3170_v13 = vadd.f32 %v3168_v21, %v3158_v10 }
0x1b78   :  { %v3172_v22 = vrot.slane %v3170_v13, 2  ;;  %v3175_v18 = vrot.slane %v3170_v13, 4  ;;  %v3178_v26 = vrot.slane %v3170_v13, 6 }
0x1b7a   :  { %v3174_v53 = vmax.f32 %v3170_v13, %v3172_v22 }
0x1b7c   :  { %v3177_v25 = vmax.f32 %v3174_v53, %v3175_v18 }
0x1b7e   :  { %v3180_v27 = vmax.f32 %v3177_v25, %v3178_v26 }
0x1b80   :  { %v3182_v19 = vrot.slane %v3180_v27, 6  ;;  %v3184_v28 = vrot.slane %v3180_v27, 4  ;;  %v3186_v29 = vrot.slane %v3180_v27, 2 }
0x1b82   :  { %v3189_v30 = vsel %vm3188_vm6, %v3180_v27, %v3182_v19 }
0x1b83   :  { %v3191_v31 = vsel %vm3190_vm7, %v3189_v30, %v3184_v28 }
0x1b84   :  { %v3193_v32 = vsel %vm3192_vm8, %v3191_v31, %v3186_v29 }
0x1b85   :  { %v3194_v33 = vsub.f32 %v3170_v13, %v3193_v32 }
0x1b87   :  { %v3195_v34 = vmul.f32 1.442695, %v3194_v33 }
0x1b89   :  { %3810 = vpow2.f32 %v3195_v34 }
0x1b96   :  { %v3811_v35 = vpop.eup %3810 }
0x1b97   :  { %v3198_v24 = vrot.slane %v3811_v35, 2  ;;  %v3201_v37 = vrot.slane %v3811_v35, 4  ;;  %v3204_v38 = vrot.slane %v3811_v35, 6 }
0x1b99   :  { %v3200_v36 = vadd.f32 %v3811_v35, %v3198_v24 }
0x1b9b   :  { %v3203_v23 = vadd.f32 %v3201_v37, %v3200_v36 }
0x1b9d   :  { %v3206_v39 = vadd.f32 %v3204_v38, %v3203_v23 }
0x1b9f   :  { %v3208_v41 = vrot.slane %v3206_v39, 6  ;;  %v3210_v12 = vrot.slane %v3206_v39, 4  ;;  %v3212_v42 = vrot.slane %v3206_v39, 2 }
0x1ba1   :  { %v3214_v61 = vsel %vm3188_vm6, %v3206_v39, %v3208_v41 }
0x1ba2   :  { %v3215_v40 = vsel %vm3190_vm7, %v3214_v61, %v3210_v12 }
0x1ba3   :  { %v3216_v55 = vsel %vm3192_vm8, %v3215_v40, %v3212_v42 }
0x1ba4   :  { %3812 = vrcp.f32 %v3216_v55 }
0x1bb1   :  { %v3813_v43 = vpop.eup %3812 }
0x1bb2   :  { %v3218_v9 = vmul.f32 %v3813_v43, %v3811_v35 }
0x1bb4   :  { %3237 = vperm.xlu0 %3556, %v3218_v9   ;;  %3227 = vperm.xlu1 %3555, %v3218_v9  }
0x1bb8   :  { %3557 = vset.pattern.permute.xlu1 %v4025_v14  ;;  %3559 = vset.pattern.permute.xlu0 %v4025_v14 }
0x1bb9   :  { %3247 = vperm.xlu1 %3557, %v3218_v9  }
0x1bbd   :  { %3558 = vset.pattern.permute.xlu1 %v4026_v60 }
0x1bbe   :  { %3221 = vperm.xlu1 %3558, %v3218_v9  }
0x1c2f   :  { %v3238_v44 = vpop.permute.xlu0 %3237  ;;  %v3228_v45 = vpop.permute.xlu1 %3227 }
0x1c30   :  { %v3240_v46 = vmul.f32 %v3238_v44, %v3156_v20  ;;  %v3230_v47 = vmul.f32 %v3228_v45, %v3156_v20 }
0x1c32   :  { %3242 = vrot.lane.b32.xlu1 %v3240_v46, %s4022_s6  ;;  %3232 = vrot.lane.b32.xlu0 %v3230_v47, %s4027_s13 }
0x1c34   :  { %v3248_v48 = vpop.permute.xlu1 %3247 }
0x1c35   :  { %v3250_v49 = vmul.f32 %v3248_v48, %v3156_v20 }
0x1c37   :  { %3252 = vrot.lane.b32.xlu0 %v3250_v49, %s4013_s1  ;;  %s3281_s1 = sshll.u32 %s4028_s10, 4  ;;  %s3282_s1 = int_to_ptr.vmem [resolvable:$true] %s3281_s1 }
0x1c38   :  { %s3974_s2 = scalar_lea.vmem %s3282_s1, 32  ;;  %p3979_p13 = scmp.lt.s32.totalorder %s3282_s1, %s3282_s1 }
0x1c39   :  { %v3222_v50 = vpop.permute.xlu1 %3221  ;;  %p3975_p12 = scmp.ne.s32.totalorder %s3282_s1, %s3974_s2  ;;  %p3980_p0 = scmp.lt.s32.totalorder %s3974_s2, %s3974_s2 }
0x1c3a   :  { %v3224_v51 = vmul.f32 %v3222_v50, %v3156_v20 }
0x1c3b   :  { %p3981_p1 = por %p3980_p0, %p3979_p13 }
0x1c3c   :  { %v3225_v52 = vadd.f32 %v3224_v51, %v3158_v10 }
0x1c3d   :  { %p3982_p2 = pnand %p3981_p1, %p3975_p12 }
0x1ca4   :  { %v3233_v54 = vpop.permute.xlu0 %3232  ;;  %v3243_v57 = vpop.permute.xlu1 %3242 }
0x1ca5   :  { %v3235_v56 = vadd.f32 %v3233_v54, %v3225_v52 }
0x1ca7   :  { %v3245_v58 = vadd.f32 %v3243_v57, %v3235_v56 }
0x1ca9   :  { %v3253_v59 = vpop.permute.xlu0 %3252 }
0x1caa   :  { %v3255_v63 = vadd.f32 %v3253_v59, %v3245_v58 }
0x1cac   :  { %v3257_v0 = vrot.slane %v3255_v63, 2  ;;  %v3260_v1 = vrot.slane %v3255_v63, 4  ;;  %v3263_v2 = vrot.slane %v3255_v63, 6 }
0x1cae   :  { %v3259_v62 = vadd.f32 %v3257_v0, %v3255_v63 }
0x1cb0   :  { %v3262_v3 = vadd.f32 %v3260_v1, %v3259_v62 }
0x1cb2   :  { %v3265_v5 = vadd.f32 %v3263_v2, %v3262_v3 }
0x1cb4   :  { %v3273_v6 = vadd.f32 %v3531_v4, %v3265_v5 }
0x1cb6   :  { %3274 = vst.msk [vmem:[#allocation19] sm:$0x3] %vm2013_vm3, %v3273_v6 }
0x1cb7   :  { %3985 = shalt.err (!%p3982_p2)
}
0x1cb8   :  { %3284 = dma.vmem_to_hbm [thread:$0]  %s3282_s1, 32, %s4499_s18, [#allocation7]  }
0x1cb9   :  { %4004 = dma.done.wait [#allocation7], 32  }
0x1cba   :  { %4005 = vsyncadd [#allocation7], 4294967264 }
0x1cbb   :  { %3288 = vsyncpa [#allocation6], 1 }
0x1cbc   :  { %3289 = vsyncpa [#allocation9], 1 }
0x1cbd   :  { %3290 = vsyncpa [#allocation12], 1 }
0x1cbe   :  { %3291 = vsyncpa [#allocation15], 1 }
0x1cbf   :  { %3292 = vsyncpa [#allocation18], 1 }
0x1cc0   :  { %3293 = vsyncpa [#allocation7], 1 }

</bundles_post_ra>
